<compile_context>
chip_gen: v7x
topology: tpu7x:2x2x1
jax: 0.10.0
libtpu: 0.0.40
codegen_flags: <defaults>
</compile_context>

<pallas_src>
import math

import numpy as np

import jax
import jax.numpy as jnp
from jax.experimental import pallas as pl
from jax.experimental.pallas import tpu as pltpu

# ----------------------------- configuration -------------------------------
B = 2                      # batch
CAM = 3                    # camera_num
T = 8                      # frame_num
FRAME_SHAPE = (3, 16, 16)  # small stand-in for (3, 224, 224)
CNN_FDIM = 32
V_HDIM = 32                # bidirectional LSTM -> per-direction hidden size:
HID = V_HDIM // 2          # 16
MLP_DIM = (128, 64)
OUT_DIM = 2
SCHEDULED_K = 0.997

N = B * CAM                # real rows per timestep (6)
NP = 8                     # rows per timestep, padded to one sublane tile
FEAT_IN = FRAME_SHAPE[0] * FRAME_SHAPE[1] * FRAME_SHAPE[2]
TB = T * B                 # rows per camera block (camera-major frame layout)
ROWS = CAM * T * B         # total frame rows, ordered (camera, time, batch)
GATES = 8 * HID            # 128 fused gate lanes: i_f|i_b|f_f|f_b|g_f|g_b|o_f|o_b
OUT_LANES = 128            # lane-dense padded output width


# --------- row-regroup + camera-max-broadcast permutation (constant) ---------
def _build_regroup_matrix():
    # x_regrouped[t*NP + c*B + b] = loc_proj[c*TB + t*B + b] + glob_proj[t*B + b]
    P = np.zeros((T * NP, ROWS + TB), np.float32)
    for t in range(T):
        for c in range(CAM):
            for b in range(B):
                r = t * NP + c * B + b
                P[r, c * TB + t * B + b] = 1.0          # per-camera local features
                P[r, ROWS + t * B + b] = 1.0            # camera-max (global) features
    return P


_P_CAT = _build_regroup_matrix()


# ------------------------------ fused kernel --------------------------------
def _dsnet_ar_kernel(
    flags_ref,                                   # SMEM (T,) int32 sampling flags
    frames_ref,                                  # (ROWS, FEAT_IN), rows (cam, t, b)
    gt0_ref,                                     # (T, NP, 1)  class-0 ground truth
    p_cat_ref,                                   # (T*NP, ROWS+TB) regroup matrix
    cnn_w_ref, cnn_b_ref,                        # CNN stand-in projection
    w_loc_ref, w_glob_ref, b_lstm_ref, w_hh_ref, # fused bidir LSTM weights
    w1_ref, b1_ref, w1pd_ref,                    # MLP layer 1 (hidden part / prev diff)
    w2_ref, b2_ref,                              # MLP layer 2
    w3d_ref, b3d_ref,                            # head logit-difference row / bias
    w3p_ref, b3p_ref,                            # lane-padded head weights
    out_ref,                                     # (T*NP, 128) lane-dense logits slab
):
    f32 = jnp.float32

    def mm(a, b):
        return jnp.dot(a, b, preferred_element_type=f32)

    def sigm(x):                                 # sigmoid via tanh -> EUP, no overflow
        return 0.5 * (jnp.tanh(0.5 * x) + 1.0)

    def leaky(x):
        return jnp.where(x > 0, x, 0.01 * x)

    # ---- stage 1: CNN stand-in, one batched matmul over all frames ---------
    local = mm(frames_ref[...], cnn_w_ref[...]) + cnn_b_ref[...]       # (ROWS, 32)

    # ---- stage 2: per-(t,b) max over cameras (3 aligned 16-row slabs) -------
    g = jnp.maximum(jnp.maximum(local[0:TB, :], local[TB:2 * TB, :]),
                    local[2 * TB:3 * TB, :])                            # (TB, 32)

    # ---- stage 3: fused fwd|bwd input projections + regroup via ONE matmul --
    loc_proj = mm(local, w_loc_ref[...])                                # (ROWS, 128)
    glob_proj = mm(g, w_glob_ref[...])                                  # (TB, 128)
    x_all = mm(p_cat_ref[...],
               jnp.concatenate([loc_proj, glob_proj], axis=0)) \
        + b_lstm_ref[...]                                               # (T*NP, 128)

    # pair fwd time s with bwd time T-1-s: fwd lanes from x_all[s], bwd from x_all[T-1-s]
    lane = jax.lax.broadcasted_iota(jnp.int32, (NP, GATES), 1)
    fwd_mask = (lane % (2 * HID)) < HID
    x_t = [x_all[t * NP:(t + 1) * NP, :] for t in range(T)]
    x_fused = [jnp.where(fwd_mask, x_t[s], x_t[T - 1 - s]) for s in range(T)]

    # ---- stage 4: fused bidirectional LSTM, one (8,32)x(32,128) mm per step -
    w_hh = w_hh_ref[...]
    h = jnp.zeros((NP, 2 * HID), f32)            # [h_fwd | h_bwd]
    c = jnp.zeros((NP, 2 * HID), f32)            # [c_fwd | c_bwd]
    h_steps = []
    for s in range(T):
        pre = x_fused[s] + mm(h, w_hh)           # (NP, 128)
        gi = sigm(pre[:, 0 * HID:2 * HID])
        gf = sigm(pre[:, 2 * HID:4 * HID])
        gg = jnp.tanh(pre[:, 4 * HID:6 * HID])
        go = sigm(pre[:, 6 * HID:8 * HID])
        c = gf * c + gi * gg
        h = go * jnp.tanh(c)
        h_steps.append(h)                        # fwd time s | bwd time T-1-s

    # per-time combined hidden [h_fwd(t) | h_bwd(t)]
    lane32 = jax.lax.broadcasted_iota(jnp.int32, (NP, 2 * HID), 1)
    fmask32 = lane32 < HID
    h_time = [jnp.where(fmask32, h_steps[t], h_steps[T - 1 - t]) for t in range(T)]

    # ---- stage 5: hoisted MLP layer-1 hidden terms, ONE batched matmul ------
    h_all = jnp.concatenate(h_time, axis=0)                            # (T*NP, 32)
    h1_pre = mm(h_all, w1_ref[...]) + b1_ref[...]                      # (T*NP, 128)

    # ---- stage 6: autoregressive head; only w2 mm + sigmoid on serial path --
    w1pd = w1pd_ref[...]                          # (1, 128)  w1p[0]-w1p[1]
    w2 = w2_ref[...]
    b2 = b2_ref[...]
    w3d = w3d_ref[...]                            # (1, 64)   w3[:,0]-w3[:,1]
    b3d = b3d_ref[...]                            # (1, 1)

    prev0 = gt0_ref[0]                            # (NP, 1) prob of class 0
    h2s = []
    for t in range(T):
        h1 = leaky(h1_pre[t * NP:(t + 1) * NP, :] + prev0 * w1pd)      # (NP, 128)
        h2 = leaky(mm(h1, w2) + b2)                                    # (NP, 64)
        h2s.append(h2)
        d = jnp.sum(h2 * w3d, axis=1, keepdims=True) + b3d             # logit0-logit1
        s0 = sigm(d)                              # 2-class softmax == sigmoid of diff
        f = flags_ref[t].astype(f32)              # scheduled sampling coin (0/1)
        prev0 = f * gt0_ref[t] + (1.0 - f) * s0

    # ---- stage 7: deferred batched head matmul, lane-dense single store -----
    h2_all = jnp.concatenate(h2s, axis=0)                              # (T*NP, 64)
    out_ref[...] = mm(h2_all, w3p_ref[...]) + b3p_ref[...]             # (T*NP, 128)


def _run_dsnet_kernel(flags, frames, gt0, fp):
    in_specs = ([pl.BlockSpec(memory_space=pltpu.MemorySpace.SMEM)]
                + [pl.BlockSpec(memory_space=pltpu.MemorySpace.VMEM)] * 18)
    return pl.pallas_call(
        _dsnet_ar_kernel,
        out_shape=jax.ShapeDtypeStruct((T * NP, OUT_LANES), jnp.float32),
        in_specs=in_specs,
        out_specs=pl.BlockSpec(memory_space=pltpu.MemorySpace.VMEM),
    )(flags, frames, gt0, jnp.asarray(_P_CAT),
      fp['cnn_w'], fp['cnn_b'],
      fp['w_loc'], fp['w_glob'], fp['b_lstm'], fp['w_hh'],
      fp['w1'], fp['b1'], fp['w1p_diff'],
      fp['w2'], fp['b2'],
      fp['w3_diff'], fp['b3_diff'],
      fp['w3_pad'], fp['b3_pad'])


# ------------------------- parameter fusion (layout) -------------------------
def _fuse_params(p):
    def gate_interleave(wf, wb):
        # (.., 4*HID) gate order i|f|g|o  ->  (.., 8*HID) order i_f|i_b|f_f|f_b|...
        parts = []
        for gidx in range(4):
            parts.append(wf[..., gidx * HID:(gidx + 1) * HID])
            parts.append(wb[..., gidx * HID:(gidx + 1) * HID])
        return jnp.concatenate(parts, axis=-1)

    zhh = jnp.zeros_like(p['wf_hh'])
    w3_pad = jnp.zeros((MLP_DIM[1], OUT_LANES), jnp.float32).at[:, :OUT_DIM].set(p['w3'])
    b3_pad = jnp.zeros((1, OUT_LANES), jnp.float32).at[:, :OUT_DIM].set(p['b3'])
    return {
        'cnn_w': p['cnn_w'], 'cnn_b': p['cnn_b'],
        'w_loc': gate_interleave(p['wf_loc'], p['wb_loc']),
        'w_glob': gate_interleave(p['wf_glob'], p['wb_glob']),
        'b_lstm': gate_interleave(p['bf'], p['bb']),
        'w_hh': jnp.concatenate([gate_interleave(p['wf_hh'], zhh),
                                 gate_interleave(zhh, p['wb_hh'])], axis=0),
        'w1': jnp.concatenate([p['w1f'], p['w1b']], axis=0),
        'b1': p['b1'] + p['w1p'][1:2, :],                    # fold prev1 baseline
        'w1p_diff': p['w1p'][0:1, :] - p['w1p'][1:2, :],
        'w2': p['w2'], 'b2': p['b2'],
        'w3_diff': (p['w3'][:, 0] - p['w3'][:, 1]).reshape(1, MLP_DIM[1]),
        'b3_diff': (p['b3'][:, 0] - p['b3'][:, 1]).reshape(1, 1),
        'w3_pad': w3_pad, 'b3_pad': b3_pad,
    }


# ------------------------------ parameters ----------------------------------
def init_params(key):
    ks = iter(jax.random.split(key, 32))

    def u(shape, fan_in):
        bound = 1.0 / math.sqrt(fan_in)
        return jax.random.uniform(next(ks), shape, jnp.float32, -bound, bound)

    p = {}
    p['cnn_w'] = u((FEAT_IN, CNN_FDIM), FEAT_IN)
    p['cnn_b'] = u((1, CNN_FDIM), FEAT_IN)
    # LSTM weights: gates lane-stacked (i | f | g | o); cnn_fdim*2 input split
    # into its [local | global] halves.
    p['wf_loc'] = u((CNN_FDIM, 4 * HID), HID)
    p['wf_glob'] = u((CNN_FDIM, 4 * HID), HID)
    p['wf_hh'] = u((HID, 4 * HID), HID)
    p['bf'] = u((1, 4 * HID), HID)
    p['wb_loc'] = u((CNN_FDIM, 4 * HID), HID)
    p['wb_glob'] = u((CNN_FDIM, 4 * HID), HID)
    p['wb_hh'] = u((HID, 4 * HID), HID)
    p['bb'] = u((1, 4 * HID), HID)
    # MLP layer 1 input = [h_fwd | h_bwd | prev_pred]  (v_hdim + 2 columns)
    p['w1f'] = u((HID, MLP_DIM[0]), V_HDIM + 2)
    p['w1b'] = u((HID, MLP_DIM[0]), V_HDIM + 2)
    p['w1p'] = u((2, MLP_DIM[0]), V_HDIM + 2)
    p['b1'] = u((1, MLP_DIM[0]), V_HDIM + 2)
    p['w2'] = u((MLP_DIM[0], MLP_DIM[1]), MLP_DIM[0])
    p['b2'] = u((1, MLP_DIM[1]), MLP_DIM[0])
    p['w3'] = u((MLP_DIM[1], OUT_DIM), MLP_DIM[1])
    p['b3'] = u((1, OUT_DIM), MLP_DIM[1])
    return p


# ------------------------------- forward ------------------------------------
def dsnet_ar_forward(inputs, gt_label, flags, params):
    # inputs: (B, CAM, T, C, H, W) float32; gt_label: (B, CAM, T) in {0, 1}
    # frame rows ordered (camera, time, batch) -> aligned camera-max slabs
    frames = jnp.transpose(inputs, (1, 2, 0, 3, 4, 5)).reshape(ROWS, FEAT_IN)

    # class-0 ground truth, per-timestep (cam-major, batch-minor), padded to 8 rows
    gt_cb = jnp.transpose(gt_label, (2, 1, 0)).reshape(T, CAM * B)
    gt0 = jnp.pad(gt_cb, ((0, 0), (0, NP - CAM * B)))[:, :, None]       # (T, NP, 1)

    fused = _fuse_params(params)
    out = _run_dsnet_kernel(flags, frames, gt0, fused)                  # (T*NP, 128)

    logits = out.reshape(T, NP, OUT_LANES)[:, :CAM * B, :OUT_DIM]       # (T, 6, 2)
    logits = jnp.transpose(logits.reshape(T, CAM, B, OUT_DIM), (2, 1, 0, 3))
    return logits   # (B, CAM, T, 2)


# --------------------------- pure-JAX reference ------------------------------
def reference_forward(inputs, gt_label, flags, params):
    frames = inputs.reshape(-1, FEAT_IN)                            # rows (b,cam,t)
    local = (frames @ params['cnn_w'] + params['cnn_b']).reshape(B, CAM, T, CNN_FDIM)
    glob = jnp.broadcast_to(jnp.max(local, axis=1, keepdims=True), local.shape)
    loc_tm = jnp.transpose(local, (2, 0, 1, 3)).reshape(T, N, CNN_FDIM)
    glob_tm = jnp.transpose(glob, (2, 0, 1, 3)).reshape(T, N, CNN_FDIM)
    gt2 = jnp.stack([gt_label, jnp.abs(gt_label - 1.0)], axis=-1)
    gtT = jnp.transpose(gt2, (2, 0, 1, 3)).reshape(T, N, 2)

    def sigmoid(x):
        return 1.0 / (1.0 + jnp.exp(-x))

    def run_dir(w_loc, w_glob, w_hh, b, reverse):
        idxs = range(T - 1, -1, -1) if reverse else range(T)
        h = jnp.zeros((N, HID), jnp.float32)
        c = jnp.zeros((N, HID), jnp.float32)
        hs = [None] * T
        for t in idxs:
            pre = loc_tm[t] @ w_loc + glob_tm[t] @ w_glob + h @ w_hh + b
            gi = sigmoid(pre[:, 0 * HID:1 * HID])
            gf = sigmoid(pre[:, 1 * HID:2 * HID])
            gg = jnp.tanh(pre[:, 2 * HID:3 * HID])
            go = sigmoid(pre[:, 3 * HID:4 * HID])
            c = gf * c + gi * gg
            h = go * jnp.tanh(c)
            hs[t] = h
        return hs

    h_fwd = run_dir(params['wf_loc'], params['wf_glob'], params['wf_hh'],
                    params['bf'], False)
    h_bwd = run_dir(params['wb_loc'], params['wb_glob'], params['wb_hh'],
                    params['bb'], True)

    def leaky(x):
        return jnp.where(x > 0, x, 0.01 * x)

    prev = gtT[0]
    preds = []
    for t in range(T):
        h1 = leaky(h_fwd[t] @ params['w1f'] + h_bwd[t] @ params['w1b']
                   + prev @ params['w1p'] + params['b1'])
        h2 = leaky(h1 @ params['w2'] + params['b2'])
        pred = h2 @ params['w3'] + params['b3']
        preds.append(pred)
        sm = jax.nn.softmax(pred, axis=1)
        prev = jnp.where(flags[t] > 0, gtT[t], sm)
    logits_tm = jnp.stack(preds)                                   # (T, N, 2)
    return jnp.transpose(logits_tm.reshape(T, B, CAM, OUT_DIM), (1, 2, 0, 3))


# ---------------------------------- main -------------------------------------
if __name__ == "__main__":
    key = jax.random.PRNGKey(0)
    k_in, k_gt, k_samp, k_par = jax.random.split(key, 4)

    params = init_params(k_par)
    inputs = jax.random.normal(k_in, (B, CAM, T) + FRAME_SHAPE, jnp.float32)
    gt_label = jax.random.bernoulli(k_gt, 0.5, (B, CAM, T)).astype(jnp.float32)

    # torch.distributions.Bernoulli scheduled sampling, drawn host-side per frame
    _iter = 200
    training = True
    p_keep = SCHEDULED_K ** _iter
    samp = jax.random.bernoulli(k_samp, p_keep, (T,))
    flags = jnp.logical_and(samp, jnp.bool_(training)).astype(jnp.int32)

    fwd = jax.jit(dsnet_ar_forward)
    logits = jax.block_until_ready(fwd(inputs, gt_label, flags, params))

    assert logits.shape == (B, CAM, T, OUT_DIM)
    assert bool(jnp.all(jnp.isfinite(logits)))

    ref = reference_forward(inputs, gt_label, flags, params)
    err = float(jnp.max(jnp.abs(logits - ref)))
    if err > 5e-2:
        raise AssertionError(f"kernel/reference mismatch: max abs err = {err}")

    print("KERNEL_OK")
</pallas_src>

<mosaic_0001>
module attributes {stable_mosaic.version = 11 : i64} {
  func.func @_dsnet_ar_kernel(%arg0: memref<8xi32, #tpu.memory_space<smem>>, %arg1: memref<48x768xf32, #tpu.memory_space<vmem>>, %arg2: memref<8x8x1xf32, #tpu.memory_space<vmem>>, %arg3: memref<64x64xf32, #tpu.memory_space<vmem>>, %arg4: memref<768x32xf32, #tpu.memory_space<vmem>>, %arg5: memref<1x32xf32, #tpu.memory_space<vmem>>, %arg6: memref<32x128xf32, #tpu.memory_space<vmem>>, %arg7: memref<32x128xf32, #tpu.memory_space<vmem>>, %arg8: memref<1x128xf32, #tpu.memory_space<vmem>>, %arg9: memref<32x128xf32, #tpu.memory_space<vmem>>, %arg10: memref<32x128xf32, #tpu.memory_space<vmem>>, %arg11: memref<1x128xf32, #tpu.memory_space<vmem>>, %arg12: memref<1x128xf32, #tpu.memory_space<vmem>>, %arg13: memref<128x64xf32, #tpu.memory_space<vmem>>, %arg14: memref<1x64xf32, #tpu.memory_space<vmem>>, %arg15: memref<1x64xf32, #tpu.memory_space<vmem>>, %arg16: memref<1x1xf32, #tpu.memory_space<vmem>>, %arg17: memref<64x128xf32, #tpu.memory_space<vmem>>, %arg18: memref<1x128xf32, #tpu.memory_space<vmem>>, %arg19: memref<64x128xf32, #tpu.memory_space<vmem>>) attributes {dimension_semantics = [], scalar_prefetch = 0 : i64, scratch_operands = 0 : i64, tpu.core_type = #tpu.core_type<tc>} {
    %c0 = arith.constant 0 : index
    %c0_0 = arith.constant 0 : index
    %0 = vector.load %arg1[%c0, %c0_0] : memref<48x768xf32, #tpu.memory_space<vmem>>, vector<48x768xf32>
    %c0_1 = arith.constant 0 : index
    %c0_2 = arith.constant 0 : index
    %1 = vector.load %arg4[%c0_1, %c0_2] : memref<768x32xf32, #tpu.memory_space<vmem>>, vector<768x32xf32>
    %cst = arith.constant dense<0.000000e+00> : vector<48x32xf32>
    %2 = tpu.matmul %0, %1, %cst {dimension_numbers = #tpu.dot_dimension_numbers<[1], [0], [0], [1], [0, 0, 1, 1], [], []>} : vector<48x768xf32>, vector<768x32xf32>, vector<48x32xf32> -> vector<48x32xf32>
    %c0_3 = arith.constant 0 : index
    %c0_4 = arith.constant 0 : index
    %3 = vector.load %arg5[%c0_3, %c0_4] : memref<1x32xf32, #tpu.memory_space<vmem>>, vector<1x32xf32>
    %4 = vector.broadcast %3 : vector<1x32xf32> to vector<48x32xf32>
    %5 = arith.addf %2, %4 : vector<48x32xf32>
    %6 = vector.extract_strided_slice %5 {offsets = [0, 0], sizes = [16, 32], strides = [1, 1]} : vector<48x32xf32> to vector<16x32xf32>
    %7 = vector.extract_strided_slice %5 {offsets = [16, 0], sizes = [16, 32], strides = [1, 1]} : vector<48x32xf32> to vector<16x32xf32>
    %8 = arith.maximumf %6, %7 : vector<16x32xf32>
    %9 = vector.extract_strided_slice %5 {offsets = [32, 0], sizes = [16, 32], strides = [1, 1]} : vector<48x32xf32> to vector<16x32xf32>
    %10 = arith.maximumf %8, %9 : vector<16x32xf32>
    %c0_5 = arith.constant 0 : index
    %c0_6 = arith.constant 0 : index
    %11 = vector.load %arg6[%c0_5, %c0_6] : memref<32x128xf32, #tpu.memory_space<vmem>>, vector<32x128xf32>
    %cst_7 = arith.constant dense<0.000000e+00> : vector<48x128xf32>
    %12 = tpu.matmul %5, %11, %cst_7 {dimension_numbers = #tpu.dot_dimension_numbers<[1], [0], [0], [1], [0, 0, 1, 1], [], []>} : vector<48x32xf32>, vector<32x128xf32>, vector<48x128xf32> -> vector<48x128xf32>
    %c0_8 = arith.constant 0 : index
    %c0_9 = arith.constant 0 : index
    %13 = vector.load %arg7[%c0_8, %c0_9] : memref<32x128xf32, #tpu.memory_space<vmem>>, vector<32x128xf32>
    %cst_10 = arith.constant dense<0.000000e+00> : vector<16x128xf32>
    %14 = tpu.matmul %10, %13, %cst_10 {dimension_numbers = #tpu.dot_dimension_numbers<[1], [0], [0], [1], [0, 0, 1, 1], [], []>} : vector<16x32xf32>, vector<32x128xf32>, vector<16x128xf32> -> vector<16x128xf32>
    %c0_11 = arith.constant 0 : index
    %c0_12 = arith.constant 0 : index
    %15 = vector.load %arg3[%c0_11, %c0_12] : memref<64x64xf32, #tpu.memory_space<vmem>>, vector<64x64xf32>
    %16 = tpu.concatenate %12, %14 in 0 : vector<48x128xf32>, vector<16x128xf32> -> vector<64x128xf32>
    %cst_13 = arith.constant dense<0.000000e+00> : vector<64x128xf32>
    %17 = tpu.matmul %15, %16, %cst_13 {dimension_numbers = #tpu.dot_dimension_numbers<[1], [0], [0], [1], [0, 0, 1, 1], [], []>} : vector<64x64xf32>, vector<64x128xf32>, vector<64x128xf32> -> vector<64x128xf32>
    %c0_14 = arith.constant 0 : index
    %c0_15 = arith.constant 0 : index
    %18 = vector.load %arg8[%c0_14, %c0_15] : memref<1x128xf32, #tpu.memory_space<vmem>>, vector<1x128xf32>
    %19 = vector.broadcast %18 : vector<1x128xf32> to vector<64x128xf32>
    %20 = arith.addf %17, %19 : vector<64x128xf32>
    %21 = tpu.iota {dimensions = array<i32: 1>} : vector<8x128xi32>
    %c32_i32 = arith.constant 32 : i32
    %c0_i32 = arith.constant 0 : i32
    %22 = arith.cmpi eq, %c32_i32, %c0_i32 : i32
    %c1_i32 = arith.constant 1 : i32
    %23 = arith.select %22, %c1_i32, %c32_i32 : i32
    %24 = vector.broadcast %23 : i32 to vector<8x128xi32>
    %25 = arith.remsi %21, %24 : vector<8x128xi32>
    %c0_i32_16 = arith.constant 0 : i32
    %26 = vector.broadcast %c0_i32_16 : i32 to vector<8x128xi32>
    %27 = arith.cmpi ne, %25, %26 : vector<8x128xi32>
    %c0_i32_17 = arith.constant 0 : i32
    %28 = vector.broadcast %c0_i32_17 : i32 to vector<8x128xi32>
    %29 = arith.cmpi slt, %25, %28 : vector<8x128xi32>
    %c0_i32_18 = arith.constant 0 : i32
    %30 = arith.cmpi slt, %23, %c0_i32_18 : i32
    %31 = vector.broadcast %30 : i1 to vector<8x128xi1>
    %32 = vector.broadcast %31 : vector<8x128xi1> to vector<8x128xi1>
    %33 = arith.xori %29, %32 : vector<8x128xi1>
    %34 = arith.andi %33, %27 : vector<8x128xi1>
    %35 = vector.broadcast %23 : i32 to vector<8x128xi32>
    %36 = arith.addi %25, %35 : vector<8x128xi32>
    %37 = arith.select %34, %36, %25 : vector<8x128xi1>, vector<8x128xi32>
    %c16_i32 = arith.constant 16 : i32
    %38 = vector.broadcast %c16_i32 : i32 to vector<8x128xi32>
    %39 = arith.cmpi slt, %37, %38 : vector<8x128xi32>
    %40 = vector.extract_strided_slice %20 {offsets = [0, 0], sizes = [8, 128], strides = [1, 1]} : vector<64x128xf32> to vector<8x128xf32>
    %41 = vector.extract_strided_slice %20 {offsets = [8, 0], sizes = [8, 128], strides = [1, 1]} : vector<64x128xf32> to vector<8x128xf32>
    %42 = vector.extract_strided_slice %20 {offsets = [16, 0], sizes = [8, 128], strides = [1, 1]} : vector<64x128xf32> to vector<8x128xf32>
    %43 = vector.extract_strided_slice %20 {offsets = [24, 0], sizes = [8, 128], strides = [1, 1]} : vector<64x128xf32> to vector<8x128xf32>
    %44 = vector.extract_strided_slice %20 {offsets = [32, 0], sizes = [8, 128], strides = [1, 1]} : vector<64x128xf32> to vector<8x128xf32>
    %45 = vector.extract_strided_slice %20 {offsets = [40, 0], sizes = [8, 128], strides = [1, 1]} : vector<64x128xf32> to vector<8x128xf32>
    %46 = vector.extract_strided_slice %20 {offsets = [48, 0], sizes = [8, 128], strides = [1, 1]} : vector<64x128xf32> to vector<8x128xf32>
    %47 = vector.extract_strided_slice %20 {offsets = [56, 0], sizes = [8, 128], strides = [1, 1]} : vector<64x128xf32> to vector<8x128xf32>
    %48 = arith.select %39, %40, %47 : vector<8x128xi1>, vector<8x128xf32>
    %49 = arith.select %39, %41, %46 : vector<8x128xi1>, vector<8x128xf32>
    %50 = arith.select %39, %42, %45 : vector<8x128xi1>, vector<8x128xf32>
    %51 = arith.select %39, %43, %44 : vector<8x128xi1>, vector<8x128xf32>
    %52 = arith.select %39, %44, %43 : vector<8x128xi1>, vector<8x128xf32>
    %53 = arith.select %39, %45, %42 : vector<8x128xi1>, vector<8x128xf32>
    %54 = arith.select %39, %46, %41 : vector<8x128xi1>, vector<8x128xf32>
    %55 = arith.select %39, %47, %40 : vector<8x128xi1>, vector<8x128xf32>
    %c0_19 = arith.constant 0 : index
    %c0_20 = arith.constant 0 : index
    %56 = vector.load %arg9[%c0_19, %c0_20] : memref<32x128xf32, #tpu.memory_space<vmem>>, vector<32x128xf32>
    %cst_21 = arith.constant 0.000000e+00 : f32
    %57 = vector.broadcast %cst_21 : f32 to vector<8x32xf32>
    %cst_22 = arith.constant 0.000000e+00 : f32
    %58 = vector.broadcast %cst_22 : f32 to vector<8x32xf32>
    %cst_23 = arith.constant dense<0.000000e+00> : vector<8x128xf32>
    %59 = tpu.matmul %57, %56, %cst_23 {dimension_numbers = #tpu.dot_dimension_numbers<[1], [0], [0], [1], [0, 0, 1, 1], [], []>} : vector<8x32xf32>, vector<32x128xf32>, vector<8x128xf32> -> vector<8x128xf32>
    %60 = arith.addf %48, %59 : vector<8x128xf32>
    %61 = vector.extract_strided_slice %60 {offsets = [0, 0], sizes = [8, 32], strides = [1, 1]} : vector<8x128xf32> to vector<8x32xf32>
    %cst_24 = arith.constant 5.000000e-01 : f32
    %62 = vector.broadcast %cst_24 : f32 to vector<8x32xf32>
    %63 = arith.mulf %62, %61 : vector<8x32xf32>
    %64 = math.tanh %63 : vector<8x32xf32>
    %cst_25 = arith.constant 1.000000e+00 : f32
    %65 = vector.broadcast %cst_25 : f32 to vector<8x32xf32>
    %66 = arith.addf %64, %65 : vector<8x32xf32>
    %cst_26 = arith.constant 5.000000e-01 : f32
    %67 = vector.broadcast %cst_26 : f32 to vector<8x32xf32>
    %68 = arith.mulf %67, %66 : vector<8x32xf32>
    %69 = vector.extract_strided_slice %60 {offsets = [0, 32], sizes = [8, 32], strides = [1, 1]} : vector<8x128xf32> to vector<8x32xf32>
    %cst_27 = arith.constant 5.000000e-01 : f32
    %70 = vector.broadcast %cst_27 : f32 to vector<8x32xf32>
    %71 = arith.mulf %70, %69 : vector<8x32xf32>
    %72 = math.tanh %71 : vector<8x32xf32>
    %cst_28 = arith.constant 1.000000e+00 : f32
    %73 = vector.broadcast %cst_28 : f32 to vector<8x32xf32>
    %74 = arith.addf %72, %73 : vector<8x32xf32>
    %cst_29 = arith.constant 5.000000e-01 : f32
    %75 = vector.broadcast %cst_29 : f32 to vector<8x32xf32>
    %76 = arith.mulf %75, %74 : vector<8x32xf32>
    %77 = vector.extract_strided_slice %60 {offsets = [0, 64], sizes = [8, 32], strides = [1, 1]} : vector<8x128xf32> to vector<8x32xf32>
    %78 = math.tanh %77 : vector<8x32xf32>
    %79 = vector.extract_strided_slice %60 {offsets = [0, 96], sizes = [8, 32], strides = [1, 1]} : vector<8x128xf32> to vector<8x32xf32>
    %cst_30 = arith.constant 5.000000e-01 : f32
    %80 = vector.broadcast %cst_30 : f32 to vector<8x32xf32>
    %81 = arith.mulf %80, %79 : vector<8x32xf32>
    %82 = math.tanh %81 : vector<8x32xf32>
    %cst_31 = arith.constant 1.000000e+00 : f32
    %83 = vector.broadcast %cst_31 : f32 to vector<8x32xf32>
    %84 = arith.addf %82, %83 : vector<8x32xf32>
    %cst_32 = arith.constant 5.000000e-01 : f32
    %85 = vector.broadcast %cst_32 : f32 to vector<8x32xf32>
    %86 = arith.mulf %85, %84 : vector<8x32xf32>
    %87 = arith.mulf %76, %58 : vector<8x32xf32>
    %88 = arith.mulf %68, %78 : vector<8x32xf32>
    %89 = arith.addf %87, %88 : vector<8x32xf32>
    %90 = math.tanh %89 : vector<8x32xf32>
    %91 = arith.mulf %86, %90 : vector<8x32xf32>
    %cst_33 = arith.constant dense<0.000000e+00> : vector<8x128xf32>
    %92 = tpu.matmul %91, %56, %cst_33 {dimension_numbers = #tpu.dot_dimension_numbers<[1], [0], [0], [1], [0, 0, 1, 1], [], []>} : vector<8x32xf32>, vector<32x128xf32>, vector<8x128xf32> -> vector<8x128xf32>
    %93 = arith.addf %49, %92 : vector<8x128xf32>
    %94 = vector.extract_strided_slice %93 {offsets = [0, 0], sizes = [8, 32], strides = [1, 1]} : vector<8x128xf32> to vector<8x32xf32>
    %cst_34 = arith.constant 5.000000e-01 : f32
    %95 = vector.broadcast %cst_34 : f32 to vector<8x32xf32>
    %96 = arith.mulf %95, %94 : vector<8x32xf32>
    %97 = math.tanh %96 : vector<8x32xf32>
    %cst_35 = arith.constant 1.000000e+00 : f32
    %98 = vector.broadcast %cst_35 : f32 to vector<8x32xf32>
    %99 = arith.addf %97, %98 : vector<8x32xf32>
    %cst_36 = arith.constant 5.000000e-01 : f32
    %100 = vector.broadcast %cst_36 : f32 to vector<8x32xf32>
    %101 = arith.mulf %100, %99 : vector<8x32xf32>
    %102 = vector.extract_strided_slice %93 {offsets = [0, 32], sizes = [8, 32], strides = [1, 1]} : vector<8x128xf32> to vector<8x32xf32>
    %cst_37 = arith.constant 5.000000e-01 : f32
    %103 = vector.broadcast %cst_37 : f32 to vector<8x32xf32>
    %104 = arith.mulf %103, %102 : vector<8x32xf32>
    %105 = math.tanh %104 : vector<8x32xf32>
    %cst_38 = arith.constant 1.000000e+00 : f32
    %106 = vector.broadcast %cst_38 : f32 to vector<8x32xf32>
    %107 = arith.addf %105, %106 : vector<8x32xf32>
    %cst_39 = arith.constant 5.000000e-01 : f32
    %108 = vector.broadcast %cst_39 : f32 to vector<8x32xf32>
    %109 = arith.mulf %108, %107 : vector<8x32xf32>
    %110 = vector.extract_strided_slice %93 {offsets = [0, 64], sizes = [8, 32], strides = [1, 1]} : vector<8x128xf32> to vector<8x32xf32>
    %111 = math.tanh %110 : vector<8x32xf32>
    %112 = vector.extract_strided_slice %93 {offsets = [0, 96], sizes = [8, 32], strides = [1, 1]} : vector<8x128xf32> to vector<8x32xf32>
    %cst_40 = arith.constant 5.000000e-01 : f32
    %113 = vector.broadcast %cst_40 : f32 to vector<8x32xf32>
    %114 = arith.mulf %113, %112 : vector<8x32xf32>
    %115 = math.tanh %114 : vector<8x32xf32>
    %cst_41 = arith.constant 1.000000e+00 : f32
    %116 = vector.broadcast %cst_41 : f32 to vector<8x32xf32>
    %117 = arith.addf %115, %116 : vector<8x32xf32>
    %cst_42 = arith.constant 5.000000e-01 : f32
    %118 = vector.broadcast %cst_42 : f32 to vector<8x32xf32>
    %119 = arith.mulf %118, %117 : vector<8x32xf32>
    %120 = arith.mulf %109, %89 : vector<8x32xf32>
    %121 = arith.mulf %101, %111 : vector<8x32xf32>
    %122 = arith.addf %120, %121 : vector<8x32xf32>
    %123 = math.tanh %122 : vector<8x32xf32>
    %124 = arith.mulf %119, %123 : vector<8x32xf32>
    %cst_43 = arith.constant dense<0.000000e+00> : vector<8x128xf32>
    %125 = tpu.matmul %124, %56, %cst_43 {dimension_numbers = #tpu.dot_dimension_numbers<[1], [0], [0], [1], [0, 0, 1, 1], [], []>} : vector<8x32xf32>, vector<32x128xf32>, vector<8x128xf32> -> vector<8x128xf32>
    %126 = arith.addf %50, %125 : vector<8x128xf32>
    %127 = vector.extract_strided_slice %126 {offsets = [0, 0], sizes = [8, 32], strides = [1, 1]} : vector<8x128xf32> to vector<8x32xf32>
    %cst_44 = arith.constant 5.000000e-01 : f32
    %128 = vector.broadcast %cst_44 : f32 to vector<8x32xf32>
    %129 = arith.mulf %128, %127 : vector<8x32xf32>
    %130 = math.tanh %129 : vector<8x32xf32>
    %cst_45 = arith.constant 1.000000e+00 : f32
    %131 = vector.broadcast %cst_45 : f32 to vector<8x32xf32>
    %132 = arith.addf %130, %131 : vector<8x32xf32>
    %cst_46 = arith.constant 5.000000e-01 : f32
    %133 = vector.broadcast %cst_46 : f32 to vector<8x32xf32>
    %134 = arith.mulf %133, %132 : vector<8x32xf32>
    %135 = vector.extract_strided_slice %126 {offsets = [0, 32], sizes = [8, 32], strides = [1, 1]} : vector<8x128xf32> to vector<8x32xf32>
    %cst_47 = arith.constant 5.000000e-01 : f32
    %136 = vector.broadcast %cst_47 : f32 to vector<8x32xf32>
    %137 = arith.mulf %136, %135 : vector<8x32xf32>
    %138 = math.tanh %137 : vector<8x32xf32>
    %cst_48 = arith.constant 1.000000e+00 : f32
    %139 = vector.broadcast %cst_48 : f32 to vector<8x32xf32>
    %140 = arith.addf %138, %139 : vector<8x32xf32>
    %cst_49 = arith.constant 5.000000e-01 : f32
    %141 = vector.broadcast %cst_49 : f32 to vector<8x32xf32>
    %142 = arith.mulf %141, %140 : vector<8x32xf32>
    %143 = vector.extract_strided_slice %126 {offsets = [0, 64], sizes = [8, 32], strides = [1, 1]} : vector<8x128xf32> to vector<8x32xf32>
    %144 = math.tanh %143 : vector<8x32xf32>
    %145 = vector.extract_strided_slice %126 {offsets = [0, 96], sizes = [8, 32], strides = [1, 1]} : vector<8x128xf32> to vector<8x32xf32>
    %cst_50 = arith.constant 5.000000e-01 : f32
    %146 = vector.broadcast %cst_50 : f32 to vector<8x32xf32>
    %147 = arith.mulf %146, %145 : vector<8x32xf32>
    %148 = math.tanh %147 : vector<8x32xf32>
    %cst_51 = arith.constant 1.000000e+00 : f32
    %149 = vector.broadcast %cst_51 : f32 to vector<8x32xf32>
    %150 = arith.addf %148, %149 : vector<8x32xf32>
    %cst_52 = arith.constant 5.000000e-01 : f32
    %151 = vector.broadcast %cst_52 : f32 to vector<8x32xf32>
    %152 = arith.mulf %151, %150 : vector<8x32xf32>
    %153 = arith.mulf %142, %122 : vector<8x32xf32>
    %154 = arith.mulf %134, %144 : vector<8x32xf32>
    %155 = arith.addf %153, %154 : vector<8x32xf32>
    %156 = math.tanh %155 : vector<8x32xf32>
    %157 = arith.mulf %152, %156 : vector<8x32xf32>
    %cst_53 = arith.constant dense<0.000000e+00> : vector<8x128xf32>
    %158 = tpu.matmul %157, %56, %cst_53 {dimension_numbers = #tpu.dot_dimension_numbers<[1], [0], [0], [1], [0, 0, 1, 1], [], []>} : vector<8x32xf32>, vector<32x128xf32>, vector<8x128xf32> -> vector<8x128xf32>
    %159 = arith.addf %51, %158 : vector<8x128xf32>
    %160 = vector.extract_strided_slice %159 {offsets = [0, 0], sizes = [8, 32], strides = [1, 1]} : vector<8x128xf32> to vector<8x32xf32>
    %cst_54 = arith.constant 5.000000e-01 : f32
    %161 = vector.broadcast %cst_54 : f32 to vector<8x32xf32>
    %162 = arith.mulf %161, %160 : vector<8x32xf32>
    %163 = math.tanh %162 : vector<8x32xf32>
    %cst_55 = arith.constant 1.000000e+00 : f32
    %164 = vector.broadcast %cst_55 : f32 to vector<8x32xf32>
    %165 = arith.addf %163, %164 : vector<8x32xf32>
    %cst_56 = arith.constant 5.000000e-01 : f32
    %166 = vector.broadcast %cst_56 : f32 to vector<8x32xf32>
    %167 = arith.mulf %166, %165 : vector<8x32xf32>
    %168 = vector.extract_strided_slice %159 {offsets = [0, 32], sizes = [8, 32], strides = [1, 1]} : vector<8x128xf32> to vector<8x32xf32>
    %cst_57 = arith.constant 5.000000e-01 : f32
    %169 = vector.broadcast %cst_57 : f32 to vector<8x32xf32>
    %170 = arith.mulf %169, %168 : vector<8x32xf32>
    %171 = math.tanh %170 : vector<8x32xf32>
    %cst_58 = arith.constant 1.000000e+00 : f32
    %172 = vector.broadcast %cst_58 : f32 to vector<8x32xf32>
    %173 = arith.addf %171, %172 : vector<8x32xf32>
    %cst_59 = arith.constant 5.000000e-01 : f32
    %174 = vector.broadcast %cst_59 : f32 to vector<8x32xf32>
    %175 = arith.mulf %174, %173 : vector<8x32xf32>
    %176 = vector.extract_strided_slice %159 {offsets = [0, 64], sizes = [8, 32], strides = [1, 1]} : vector<8x128xf32> to vector<8x32xf32>
    %177 = math.tanh %176 : vector<8x32xf32>
    %178 = vector.extract_strided_slice %159 {offsets = [0, 96], sizes = [8, 32], strides = [1, 1]} : vector<8x128xf32> to vector<8x32xf32>
    %cst_60 = arith.constant 5.000000e-01 : f32
    %179 = vector.broadcast %cst_60 : f32 to vector<8x32xf32>
    %180 = arith.mulf %179, %178 : vector<8x32xf32>
    %181 = math.tanh %180 : vector<8x32xf32>
    %cst_61 = arith.constant 1.000000e+00 : f32
    %182 = vector.broadcast %cst_61 : f32 to vector<8x32xf32>
    %183 = arith.addf %181, %182 : vector<8x32xf32>
    %cst_62 = arith.constant 5.000000e-01 : f32
    %184 = vector.broadcast %cst_62 : f32 to vector<8x32xf32>
    %185 = arith.mulf %184, %183 : vector<8x32xf32>
    %186 = arith.mulf %175, %155 : vector<8x32xf32>
    %187 = arith.mulf %167, %177 : vector<8x32xf32>
    %188 = arith.addf %186, %187 : vector<8x32xf32>
    %189 = math.tanh %188 : vector<8x32xf32>
    %190 = arith.mulf %185, %189 : vector<8x32xf32>
    %cst_63 = arith.constant dense<0.000000e+00> : vector<8x128xf32>
    %191 = tpu.matmul %190, %56, %cst_63 {dimension_numbers = #tpu.dot_dimension_numbers<[1], [0], [0], [1], [0, 0, 1, 1], [], []>} : vector<8x32xf32>, vector<32x128xf32>, vector<8x128xf32> -> vector<8x128xf32>
    %192 = arith.addf %52, %191 : vector<8x128xf32>
    %193 = vector.extract_strided_slice %192 {offsets = [0, 0], sizes = [8, 32], strides = [1, 1]} : vector<8x128xf32> to vector<8x32xf32>
    %cst_64 = arith.constant 5.000000e-01 : f32
    %194 = vector.broadcast %cst_64 : f32 to vector<8x32xf32>
    %195 = arith.mulf %194, %193 : vector<8x32xf32>
    %196 = math.tanh %195 : vector<8x32xf32>
    %cst_65 = arith.constant 1.000000e+00 : f32
    %197 = vector.broadcast %cst_65 : f32 to vector<8x32xf32>
    %198 = arith.addf %196, %197 : vector<8x32xf32>
    %cst_66 = arith.constant 5.000000e-01 : f32
    %199 = vector.broadcast %cst_66 : f32 to vector<8x32xf32>
    %200 = arith.mulf %199, %198 : vector<8x32xf32>
    %201 = vector.extract_strided_slice %192 {offsets = [0, 32], sizes = [8, 32], strides = [1, 1]} : vector<8x128xf32> to vector<8x32xf32>
    %cst_67 = arith.constant 5.000000e-01 : f32
    %202 = vector.broadcast %cst_67 : f32 to vector<8x32xf32>
    %203 = arith.mulf %202, %201 : vector<8x32xf32>
    %204 = math.tanh %203 : vector<8x32xf32>
    %cst_68 = arith.constant 1.000000e+00 : f32
    %205 = vector.broadcast %cst_68 : f32 to vector<8x32xf32>
    %206 = arith.addf %204, %205 : vector<8x32xf32>
    %cst_69 = arith.constant 5.000000e-01 : f32
    %207 = vector.broadcast %cst_69 : f32 to vector<8x32xf32>
    %208 = arith.mulf %207, %206 : vector<8x32xf32>
    %209 = vector.extract_strided_slice %192 {offsets = [0, 64], sizes = [8, 32], strides = [1, 1]} : vector<8x128xf32> to vector<8x32xf32>
    %210 = math.tanh %209 : vector<8x32xf32>
    %211 = vector.extract_strided_slice %192 {offsets = [0, 96], sizes = [8, 32], strides = [1, 1]} : vector<8x128xf32> to vector<8x32xf32>
    %cst_70 = arith.constant 5.000000e-01 : f32
    %212 = vector.broadcast %cst_70 : f32 to vector<8x32xf32>
    %213 = arith.mulf %212, %211 : vector<8x32xf32>
    %214 = math.tanh %213 : vector<8x32xf32>
    %cst_71 = arith.constant 1.000000e+00 : f32
    %215 = vector.broadcast %cst_71 : f32 to vector<8x32xf32>
    %216 = arith.addf %214, %215 : vector<8x32xf32>
    %cst_72 = arith.constant 5.000000e-01 : f32
    %217 = vector.broadcast %cst_72 : f32 to vector<8x32xf32>
    %218 = arith.mulf %217, %216 : vector<8x32xf32>
    %219 = arith.mulf %208, %188 : vector<8x32xf32>
    %220 = arith.mulf %200, %210 : vector<8x32xf32>
    %221 = arith.addf %219, %220 : vector<8x32xf32>
    %222 = math.tanh %221 : vector<8x32xf32>
    %223 = arith.mulf %218, %222 : vector<8x32xf32>
    %cst_73 = arith.constant dense<0.000000e+00> : vector<8x128xf32>
    %224 = tpu.matmul %223, %56, %cst_73 {dimension_numbers = #tpu.dot_dimension_numbers<[1], [0], [0], [1], [0, 0, 1, 1], [], []>} : vector<8x32xf32>, vector<32x128xf32>, vector<8x128xf32> -> vector<8x128xf32>
    %225 = arith.addf %53, %224 : vector<8x128xf32>
    %226 = vector.extract_strided_slice %225 {offsets = [0, 0], sizes = [8, 32], strides = [1, 1]} : vector<8x128xf32> to vector<8x32xf32>
    %cst_74 = arith.constant 5.000000e-01 : f32
    %227 = vector.broadcast %cst_74 : f32 to vector<8x32xf32>
    %228 = arith.mulf %227, %226 : vector<8x32xf32>
    %229 = math.tanh %228 : vector<8x32xf32>
    %cst_75 = arith.constant 1.000000e+00 : f32
    %230 = vector.broadcast %cst_75 : f32 to vector<8x32xf32>
    %231 = arith.addf %229, %230 : vector<8x32xf32>
    %cst_76 = arith.constant 5.000000e-01 : f32
    %232 = vector.broadcast %cst_76 : f32 to vector<8x32xf32>
    %233 = arith.mulf %232, %231 : vector<8x32xf32>
    %234 = vector.extract_strided_slice %225 {offsets = [0, 32], sizes = [8, 32], strides = [1, 1]} : vector<8x128xf32> to vector<8x32xf32>
    %cst_77 = arith.constant 5.000000e-01 : f32
    %235 = vector.broadcast %cst_77 : f32 to vector<8x32xf32>
    %236 = arith.mulf %235, %234 : vector<8x32xf32>
    %237 = math.tanh %236 : vector<8x32xf32>
    %cst_78 = arith.constant 1.000000e+00 : f32
    %238 = vector.broadcast %cst_78 : f32 to vector<8x32xf32>
    %239 = arith.addf %237, %238 : vector<8x32xf32>
    %cst_79 = arith.constant 5.000000e-01 : f32
    %240 = vector.broadcast %cst_79 : f32 to vector<8x32xf32>
    %241 = arith.mulf %240, %239 : vector<8x32xf32>
    %242 = vector.extract_strided_slice %225 {offsets = [0, 64], sizes = [8, 32], strides = [1, 1]} : vector<8x128xf32> to vector<8x32xf32>
    %243 = math.tanh %242 : vector<8x32xf32>
    %244 = vector.extract_strided_slice %225 {offsets = [0, 96], sizes = [8, 32], strides = [1, 1]} : vector<8x128xf32> to vector<8x32xf32>
    %cst_80 = arith.constant 5.000000e-01 : f32
    %245 = vector.broadcast %cst_80 : f32 to vector<8x32xf32>
    %246 = arith.mulf %245, %244 : vector<8x32xf32>
    %247 = math.tanh %246 : vector<8x32xf32>
    %cst_81 = arith.constant 1.000000e+00 : f32
    %248 = vector.broadcast %cst_81 : f32 to vector<8x32xf32>
    %249 = arith.addf %247, %248 : vector<8x32xf32>
    %cst_82 = arith.constant 5.000000e-01 : f32
    %250 = vector.broadcast %cst_82 : f32 to vector<8x32xf32>
    %251 = arith.mulf %250, %249 : vector<8x32xf32>
    %252 = arith.mulf %241, %221 : vector<8x32xf32>
    %253 = arith.mulf %233, %243 : vector<8x32xf32>
    %254 = arith.addf %252, %253 : vector<8x32xf32>
    %255 = math.tanh %254 : vector<8x32xf32>
    %256 = arith.mulf %251, %255 : vector<8x32xf32>
    %cst_83 = arith.constant dense<0.000000e+00> : vector<8x128xf32>
    %257 = tpu.matmul %256, %56, %cst_83 {dimension_numbers = #tpu.dot_dimension_numbers<[1], [0], [0], [1], [0, 0, 1, 1], [], []>} : vector<8x32xf32>, vector<32x128xf32>, vector<8x128xf32> -> vector<8x128xf32>
    %258 = arith.addf %54, %257 : vector<8x128xf32>
    %259 = vector.extract_strided_slice %258 {offsets = [0, 0], sizes = [8, 32], strides = [1, 1]} : vector<8x128xf32> to vector<8x32xf32>
    %cst_84 = arith.constant 5.000000e-01 : f32
    %260 = vector.broadcast %cst_84 : f32 to vector<8x32xf32>
    %261 = arith.mulf %260, %259 : vector<8x32xf32>
    %262 = math.tanh %261 : vector<8x32xf32>
    %cst_85 = arith.constant 1.000000e+00 : f32
    %263 = vector.broadcast %cst_85 : f32 to vector<8x32xf32>
    %264 = arith.addf %262, %263 : vector<8x32xf32>
    %cst_86 = arith.constant 5.000000e-01 : f32
    %265 = vector.broadcast %cst_86 : f32 to vector<8x32xf32>
    %266 = arith.mulf %265, %264 : vector<8x32xf32>
    %267 = vector.extract_strided_slice %258 {offsets = [0, 32], sizes = [8, 32], strides = [1, 1]} : vector<8x128xf32> to vector<8x32xf32>
    %cst_87 = arith.constant 5.000000e-01 : f32
    %268 = vector.broadcast %cst_87 : f32 to vector<8x32xf32>
    %269 = arith.mulf %268, %267 : vector<8x32xf32>
    %270 = math.tanh %269 : vector<8x32xf32>
    %cst_88 = arith.constant 1.000000e+00 : f32
    %271 = vector.broadcast %cst_88 : f32 to vector<8x32xf32>
    %272 = arith.addf %270, %271 : vector<8x32xf32>
    %cst_89 = arith.constant 5.000000e-01 : f32
    %273 = vector.broadcast %cst_89 : f32 to vector<8x32xf32>
    %274 = arith.mulf %273, %272 : vector<8x32xf32>
    %275 = vector.extract_strided_slice %258 {offsets = [0, 64], sizes = [8, 32], strides = [1, 1]} : vector<8x128xf32> to vector<8x32xf32>
    %276 = math.tanh %275 : vector<8x32xf32>
    %277 = vector.extract_strided_slice %258 {offsets = [0, 96], sizes = [8, 32], strides = [1, 1]} : vector<8x128xf32> to vector<8x32xf32>
    %cst_90 = arith.constant 5.000000e-01 : f32
    %278 = vector.broadcast %cst_90 : f32 to vector<8x32xf32>
    %279 = arith.mulf %278, %277 : vector<8x32xf32>
    %280 = math.tanh %279 : vector<8x32xf32>
    %cst_91 = arith.constant 1.000000e+00 : f32
    %281 = vector.broadcast %cst_91 : f32 to vector<8x32xf32>
    %282 = arith.addf %280, %281 : vector<8x32xf32>
    %cst_92 = arith.constant 5.000000e-01 : f32
    %283 = vector.broadcast %cst_92 : f32 to vector<8x32xf32>
    %284 = arith.mulf %283, %282 : vector<8x32xf32>
    %285 = arith.mulf %274, %254 : vector<8x32xf32>
    %286 = arith.mulf %266, %276 : vector<8x32xf32>
    %287 = arith.addf %285, %286 : vector<8x32xf32>
    %288 = math.tanh %287 : vector<8x32xf32>
    %289 = arith.mulf %284, %288 : vector<8x32xf32>
    %cst_93 = arith.constant dense<0.000000e+00> : vector<8x128xf32>
    %290 = tpu.matmul %289, %56, %cst_93 {dimension_numbers = #tpu.dot_dimension_numbers<[1], [0], [0], [1], [0, 0, 1, 1], [], []>} : vector<8x32xf32>, vector<32x128xf32>, vector<8x128xf32> -> vector<8x128xf32>
    %291 = arith.addf %55, %290 : vector<8x128xf32>
    %292 = vector.extract_strided_slice %291 {offsets = [0, 0], sizes = [8, 32], strides = [1, 1]} : vector<8x128xf32> to vector<8x32xf32>
    %cst_94 = arith.constant 5.000000e-01 : f32
    %293 = vector.broadcast %cst_94 : f32 to vector<8x32xf32>
    %294 = arith.mulf %293, %292 : vector<8x32xf32>
    %295 = math.tanh %294 : vector<8x32xf32>
    %cst_95 = arith.constant 1.000000e+00 : f32
    %296 = vector.broadcast %cst_95 : f32 to vector<8x32xf32>
    %297 = arith.addf %295, %296 : vector<8x32xf32>
    %cst_96 = arith.constant 5.000000e-01 : f32
    %298 = vector.broadcast %cst_96 : f32 to vector<8x32xf32>
    %299 = arith.mulf %298, %297 : vector<8x32xf32>
    %300 = vector.extract_strided_slice %291 {offsets = [0, 32], sizes = [8, 32], strides = [1, 1]} : vector<8x128xf32> to vector<8x32xf32>
    %cst_97 = arith.constant 5.000000e-01 : f32
    %301 = vector.broadcast %cst_97 : f32 to vector<8x32xf32>
    %302 = arith.mulf %301, %300 : vector<8x32xf32>
    %303 = math.tanh %302 : vector<8x32xf32>
    %cst_98 = arith.constant 1.000000e+00 : f32
    %304 = vector.broadcast %cst_98 : f32 to vector<8x32xf32>
    %305 = arith.addf %303, %304 : vector<8x32xf32>
    %cst_99 = arith.constant 5.000000e-01 : f32
    %306 = vector.broadcast %cst_99 : f32 to vector<8x32xf32>
    %307 = arith.mulf %306, %305 : vector<8x32xf32>
    %308 = vector.extract_strided_slice %291 {offsets = [0, 64], sizes = [8, 32], strides = [1, 1]} : vector<8x128xf32> to vector<8x32xf32>
    %309 = math.tanh %308 : vector<8x32xf32>
    %310 = vector.extract_strided_slice %291 {offsets = [0, 96], sizes = [8, 32], strides = [1, 1]} : vector<8x128xf32> to vector<8x32xf32>
    %cst_100 = arith.constant 5.000000e-01 : f32
    %311 = vector.broadcast %cst_100 : f32 to vector<8x32xf32>
    %312 = arith.mulf %311, %310 : vector<8x32xf32>
    %313 = math.tanh %312 : vector<8x32xf32>
    %cst_101 = arith.constant 1.000000e+00 : f32
    %314 = vector.broadcast %cst_101 : f32 to vector<8x32xf32>
    %315 = arith.addf %313, %314 : vector<8x32xf32>
    %cst_102 = arith.constant 5.000000e-01 : f32
    %316 = vector.broadcast %cst_102 : f32 to vector<8x32xf32>
    %317 = arith.mulf %316, %315 : vector<8x32xf32>
    %318 = arith.mulf %307, %287 : vector<8x32xf32>
    %319 = arith.mulf %299, %309 : vector<8x32xf32>
    %320 = arith.addf %318, %319 : vector<8x32xf32>
    %321 = math.tanh %320 : vector<8x32xf32>
    %322 = arith.mulf %317, %321 : vector<8x32xf32>
    %323 = tpu.iota {dimensions = array<i32: 1>} : vector<8x32xi32>
    %c16_i32_103 = arith.constant 16 : i32
    %324 = vector.broadcast %c16_i32_103 : i32 to vector<8x32xi32>
    %325 = arith.cmpi slt, %323, %324 : vector<8x32xi32>
    %326 = arith.select %325, %91, %322 : vector<8x32xi1>, vector<8x32xf32>
    %327 = arith.select %325, %124, %289 : vector<8x32xi1>, vector<8x32xf32>
    %328 = arith.select %325, %157, %256 : vector<8x32xi1>, vector<8x32xf32>
    %329 = arith.select %325, %190, %223 : vector<8x32xi1>, vector<8x32xf32>
    %330 = arith.select %325, %223, %190 : vector<8x32xi1>, vector<8x32xf32>
    %331 = arith.select %325, %256, %157 : vector<8x32xi1>, vector<8x32xf32>
    %332 = arith.select %325, %289, %124 : vector<8x32xi1>, vector<8x32xf32>
    %333 = arith.select %325, %322, %91 : vector<8x32xi1>, vector<8x32xf32>
    %334 = tpu.concatenate %326, %327, %328, %329, %330, %331, %332, %333 in 0 : vector<8x32xf32>, vector<8x32xf32>, vector<8x32xf32>, vector<8x32xf32>, vector<8x32xf32>, vector<8x32xf32>, vector<8x32xf32>, vector<8x32xf32> -> vector<64x32xf32>
    %c0_104 = arith.constant 0 : index
    %c0_105 = arith.constant 0 : index
    %335 = vector.load %arg10[%c0_104, %c0_105] : memref<32x128xf32, #tpu.memory_space<vmem>>, vector<32x128xf32>
    %cst_106 = arith.constant dense<0.000000e+00> : vector<64x128xf32>
    %336 = tpu.matmul %334, %335, %cst_106 {dimension_numbers = #tpu.dot_dimension_numbers<[1], [0], [0], [1], [0, 0, 1, 1], [], []>} : vector<64x32xf32>, vector<32x128xf32>, vector<64x128xf32> -> vector<64x128xf32>
    %c0_107 = arith.constant 0 : index
    %c0_108 = arith.constant 0 : index
    %337 = vector.load %arg11[%c0_107, %c0_108] : memref<1x128xf32, #tpu.memory_space<vmem>>, vector<1x128xf32>
    %338 = vector.broadcast %337 : vector<1x128xf32> to vector<64x128xf32>
    %339 = arith.addf %336, %338 : vector<64x128xf32>
    %c0_109 = arith.constant 0 : index
    %c0_110 = arith.constant 0 : index
    %340 = vector.load %arg12[%c0_109, %c0_110] : memref<1x128xf32, #tpu.memory_space<vmem>>, vector<1x128xf32>
    %c0_111 = arith.constant 0 : index
    %c0_112 = arith.constant 0 : index
    %341 = vector.load %arg13[%c0_111, %c0_112] : memref<128x64xf32, #tpu.memory_space<vmem>>, vector<128x64xf32>
    %c0_113 = arith.constant 0 : index
    %c0_114 = arith.constant 0 : index
    %342 = vector.load %arg14[%c0_113, %c0_114] : memref<1x64xf32, #tpu.memory_space<vmem>>, vector<1x64xf32>
    %c0_115 = arith.constant 0 : index
    %c0_116 = arith.constant 0 : index
    %343 = vector.load %arg15[%c0_115, %c0_116] : memref<1x64xf32, #tpu.memory_space<vmem>>, vector<1x64xf32>
    %c0_117 = arith.constant 0 : index
    %c0_118 = arith.constant 0 : index
    %344 = vector.load %arg16[%c0_117, %c0_118] : memref<1x1xf32, #tpu.memory_space<vmem>>, vector<1x1xf32>
    %c0_119 = arith.constant 0 : index
    %c0_120 = arith.constant 0 : index
    %c0_121 = arith.constant 0 : index
    %345 = vector.load %arg2[%c0_119, %c0_120, %c0_121] : memref<8x8x1xf32, #tpu.memory_space<vmem>>, vector<1x8x1xf32>
    %346 = vector.shape_cast %345 : vector<1x8x1xf32> to vector<8x1xf32>
    %347 = vector.extract_strided_slice %339 {offsets = [0, 0], sizes = [8, 128], strides = [1, 1]} : vector<64x128xf32> to vector<8x128xf32>
    %348 = vector.broadcast %346 : vector<8x1xf32> to vector<8x128xf32>
    %349 = vector.broadcast %340 : vector<1x128xf32> to vector<8x128xf32>
    %350 = arith.mulf %348, %349 : vector<8x128xf32>
    %351 = arith.addf %347, %350 : vector<8x128xf32>
    %cst_122 = arith.constant 0.000000e+00 : f32
    %352 = vector.broadcast %cst_122 : f32 to vector<8x128xf32>
    %353 = arith.cmpf ogt, %351, %352 : vector<8x128xf32>
    %cst_123 = arith.constant 0.00999999977 : f32
    %354 = vector.broadcast %cst_123 : f32 to vector<8x128xf32>
    %355 = arith.mulf %354, %351 : vector<8x128xf32>
    %356 = arith.select %353, %351, %355 : vector<8x128xi1>, vector<8x128xf32>
    %cst_124 = arith.constant dense<0.000000e+00> : vector<8x64xf32>
    %357 = tpu.matmul %356, %341, %cst_124 {dimension_numbers = #tpu.dot_dimension_numbers<[1], [0], [0], [1], [0, 0, 1, 1], [], []>} : vector<8x128xf32>, vector<128x64xf32>, vector<8x64xf32> -> vector<8x64xf32>
    %358 = vector.broadcast %342 : vector<1x64xf32> to vector<8x64xf32>
    %359 = arith.addf %357, %358 : vector<8x64xf32>
    %cst_125 = arith.constant 0.000000e+00 : f32
    %360 = vector.broadcast %cst_125 : f32 to vector<8x64xf32>
    %361 = arith.cmpf ogt, %359, %360 : vector<8x64xf32>
    %cst_126 = arith.constant 0.00999999977 : f32
    %362 = vector.broadcast %cst_126 : f32 to vector<8x64xf32>
    %363 = arith.mulf %362, %359 : vector<8x64xf32>
    %364 = arith.select %361, %359, %363 : vector<8x64xi1>, vector<8x64xf32>
    %365 = vector.broadcast %343 : vector<1x64xf32> to vector<8x64xf32>
    %366 = arith.mulf %364, %365 : vector<8x64xf32>
    %cst_127 = arith.constant dense<0.000000e+00> : vector<8xf32>
    %367 = vector.multi_reduction <add>, %366, %cst_127 [1] : vector<8x64xf32> to vector<8xf32>
    %368 = vector.shape_cast %367 : vector<8xf32> to vector<8x1xf32>
    %369 = vector.broadcast %344 : vector<1x1xf32> to vector<8x1xf32>
    %370 = arith.addf %368, %369 : vector<8x1xf32>
    %cst_128 = arith.constant 5.000000e-01 : f32
    %371 = vector.broadcast %cst_128 : f32 to vector<8x1xf32>
    %372 = arith.mulf %371, %370 : vector<8x1xf32>
    %373 = math.tanh %372 : vector<8x1xf32>
    %cst_129 = arith.constant 1.000000e+00 : f32
    %374 = vector.broadcast %cst_129 : f32 to vector<8x1xf32>
    %375 = arith.addf %373, %374 : vector<8x1xf32>
    %cst_130 = arith.constant 5.000000e-01 : f32
    %376 = vector.broadcast %cst_130 : f32 to vector<8x1xf32>
    %377 = arith.mulf %376, %375 : vector<8x1xf32>
    %c0_131 = arith.constant 0 : index
    %378 = memref.load %arg0[%c0_131] : memref<8xi32, #tpu.memory_space<smem>>
    %379 = arith.sitofp %378 : i32 to f32
    %c0_132 = arith.constant 0 : index
    %c0_133 = arith.constant 0 : index
    %c0_134 = arith.constant 0 : index
    %380 = vector.load %arg2[%c0_132, %c0_133, %c0_134] : memref<8x8x1xf32, #tpu.memory_space<vmem>>, vector<1x8x1xf32>
    %381 = vector.shape_cast %380 : vector<1x8x1xf32> to vector<8x1xf32>
    %382 = vector.broadcast %379 : f32 to vector<8x1xf32>
    %383 = arith.mulf %382, %381 : vector<8x1xf32>
    %cst_135 = arith.constant 1.000000e+00 : f32
    %384 = arith.subf %cst_135, %379 : f32
    %385 = vector.broadcast %384 : f32 to vector<8x1xf32>
    %386 = arith.mulf %385, %377 : vector<8x1xf32>
    %387 = arith.addf %383, %386 : vector<8x1xf32>
    %388 = vector.extract_strided_slice %339 {offsets = [8, 0], sizes = [8, 128], strides = [1, 1]} : vector<64x128xf32> to vector<8x128xf32>
    %389 = vector.broadcast %387 : vector<8x1xf32> to vector<8x128xf32>
    %390 = vector.broadcast %340 : vector<1x128xf32> to vector<8x128xf32>
    %391 = arith.mulf %389, %390 : vector<8x128xf32>
    %392 = arith.addf %388, %391 : vector<8x128xf32>
    %cst_136 = arith.constant 0.000000e+00 : f32
    %393 = vector.broadcast %cst_136 : f32 to vector<8x128xf32>
    %394 = arith.cmpf ogt, %392, %393 : vector<8x128xf32>
    %cst_137 = arith.constant 0.00999999977 : f32
    %395 = vector.broadcast %cst_137 : f32 to vector<8x128xf32>
    %396 = arith.mulf %395, %392 : vector<8x128xf32>
    %397 = arith.select %394, %392, %396 : vector<8x128xi1>, vector<8x128xf32>
    %cst_138 = arith.constant dense<0.000000e+00> : vector<8x64xf32>
    %398 = tpu.matmul %397, %341, %cst_138 {dimension_numbers = #tpu.dot_dimension_numbers<[1], [0], [0], [1], [0, 0, 1, 1], [], []>} : vector<8x128xf32>, vector<128x64xf32>, vector<8x64xf32> -> vector<8x64xf32>
    %399 = vector.broadcast %342 : vector<1x64xf32> to vector<8x64xf32>
    %400 = arith.addf %398, %399 : vector<8x64xf32>
    %cst_139 = arith.constant 0.000000e+00 : f32
    %401 = vector.broadcast %cst_139 : f32 to vector<8x64xf32>
    %402 = arith.cmpf ogt, %400, %401 : vector<8x64xf32>
    %cst_140 = arith.constant 0.00999999977 : f32
    %403 = vector.broadcast %cst_140 : f32 to vector<8x64xf32>
    %404 = arith.mulf %403, %400 : vector<8x64xf32>
    %405 = arith.select %402, %400, %404 : vector<8x64xi1>, vector<8x64xf32>
    %406 = vector.broadcast %343 : vector<1x64xf32> to vector<8x64xf32>
    %407 = arith.mulf %405, %406 : vector<8x64xf32>
    %cst_141 = arith.constant dense<0.000000e+00> : vector<8xf32>
    %408 = vector.multi_reduction <add>, %407, %cst_141 [1] : vector<8x64xf32> to vector<8xf32>
    %409 = vector.shape_cast %408 : vector<8xf32> to vector<8x1xf32>
    %410 = vector.broadcast %344 : vector<1x1xf32> to vector<8x1xf32>
    %411 = arith.addf %409, %410 : vector<8x1xf32>
    %cst_142 = arith.constant 5.000000e-01 : f32
    %412 = vector.broadcast %cst_142 : f32 to vector<8x1xf32>
    %413 = arith.mulf %412, %411 : vector<8x1xf32>
    %414 = math.tanh %413 : vector<8x1xf32>
    %cst_143 = arith.constant 1.000000e+00 : f32
    %415 = vector.broadcast %cst_143 : f32 to vector<8x1xf32>
    %416 = arith.addf %414, %415 : vector<8x1xf32>
    %cst_144 = arith.constant 5.000000e-01 : f32
    %417 = vector.broadcast %cst_144 : f32 to vector<8x1xf32>
    %418 = arith.mulf %417, %416 : vector<8x1xf32>
    %c1 = arith.constant 1 : index
    %419 = memref.load %arg0[%c1] : memref<8xi32, #tpu.memory_space<smem>>
    %420 = arith.sitofp %419 : i32 to f32
    %c1_145 = arith.constant 1 : index
    %c0_146 = arith.constant 0 : index
    %c0_147 = arith.constant 0 : index
    %421 = vector.load %arg2[%c1_145, %c0_146, %c0_147] : memref<8x8x1xf32, #tpu.memory_space<vmem>>, vector<1x8x1xf32>
    %422 = vector.shape_cast %421 : vector<1x8x1xf32> to vector<8x1xf32>
    %423 = vector.broadcast %420 : f32 to vector<8x1xf32>
    %424 = arith.mulf %423, %422 : vector<8x1xf32>
    %cst_148 = arith.constant 1.000000e+00 : f32
    %425 = arith.subf %cst_148, %420 : f32
    %426 = vector.broadcast %425 : f32 to vector<8x1xf32>
    %427 = arith.mulf %426, %418 : vector<8x1xf32>
    %428 = arith.addf %424, %427 : vector<8x1xf32>
    %429 = vector.extract_strided_slice %339 {offsets = [16, 0], sizes = [8, 128], strides = [1, 1]} : vector<64x128xf32> to vector<8x128xf32>
    %430 = vector.broadcast %428 : vector<8x1xf32> to vector<8x128xf32>
    %431 = vector.broadcast %340 : vector<1x128xf32> to vector<8x128xf32>
    %432 = arith.mulf %430, %431 : vector<8x128xf32>
    %433 = arith.addf %429, %432 : vector<8x128xf32>
    %cst_149 = arith.constant 0.000000e+00 : f32
    %434 = vector.broadcast %cst_149 : f32 to vector<8x128xf32>
    %435 = arith.cmpf ogt, %433, %434 : vector<8x128xf32>
    %cst_150 = arith.constant 0.00999999977 : f32
    %436 = vector.broadcast %cst_150 : f32 to vector<8x128xf32>
    %437 = arith.mulf %436, %433 : vector<8x128xf32>
    %438 = arith.select %435, %433, %437 : vector<8x128xi1>, vector<8x128xf32>
    %cst_151 = arith.constant dense<0.000000e+00> : vector<8x64xf32>
    %439 = tpu.matmul %438, %341, %cst_151 {dimension_numbers = #tpu.dot_dimension_numbers<[1], [0], [0], [1], [0, 0, 1, 1], [], []>} : vector<8x128xf32>, vector<128x64xf32>, vector<8x64xf32> -> vector<8x64xf32>
    %440 = vector.broadcast %342 : vector<1x64xf32> to vector<8x64xf32>
    %441 = arith.addf %439, %440 : vector<8x64xf32>
    %cst_152 = arith.constant 0.000000e+00 : f32
    %442 = vector.broadcast %cst_152 : f32 to vector<8x64xf32>
    %443 = arith.cmpf ogt, %441, %442 : vector<8x64xf32>
    %cst_153 = arith.constant 0.00999999977 : f32
    %444 = vector.broadcast %cst_153 : f32 to vector<8x64xf32>
    %445 = arith.mulf %444, %441 : vector<8x64xf32>
    %446 = arith.select %443, %441, %445 : vector<8x64xi1>, vector<8x64xf32>
    %447 = vector.broadcast %343 : vector<1x64xf32> to vector<8x64xf32>
    %448 = arith.mulf %446, %447 : vector<8x64xf32>
    %cst_154 = arith.constant dense<0.000000e+00> : vector<8xf32>
    %449 = vector.multi_reduction <add>, %448, %cst_154 [1] : vector<8x64xf32> to vector<8xf32>
    %450 = vector.shape_cast %449 : vector<8xf32> to vector<8x1xf32>
    %451 = vector.broadcast %344 : vector<1x1xf32> to vector<8x1xf32>
    %452 = arith.addf %450, %451 : vector<8x1xf32>
    %cst_155 = arith.constant 5.000000e-01 : f32
    %453 = vector.broadcast %cst_155 : f32 to vector<8x1xf32>
    %454 = arith.mulf %453, %452 : vector<8x1xf32>
    %455 = math.tanh %454 : vector<8x1xf32>
    %cst_156 = arith.constant 1.000000e+00 : f32
    %456 = vector.broadcast %cst_156 : f32 to vector<8x1xf32>
    %457 = arith.addf %455, %456 : vector<8x1xf32>
    %cst_157 = arith.constant 5.000000e-01 : f32
    %458 = vector.broadcast %cst_157 : f32 to vector<8x1xf32>
    %459 = arith.mulf %458, %457 : vector<8x1xf32>
    %c2 = arith.constant 2 : index
    %460 = memref.load %arg0[%c2] : memref<8xi32, #tpu.memory_space<smem>>
    %461 = arith.sitofp %460 : i32 to f32
    %c2_158 = arith.constant 2 : index
    %c0_159 = arith.constant 0 : index
    %c0_160 = arith.constant 0 : index
    %462 = vector.load %arg2[%c2_158, %c0_159, %c0_160] : memref<8x8x1xf32, #tpu.memory_space<vmem>>, vector<1x8x1xf32>
    %463 = vector.shape_cast %462 : vector<1x8x1xf32> to vector<8x1xf32>
    %464 = vector.broadcast %461 : f32 to vector<8x1xf32>
    %465 = arith.mulf %464, %463 : vector<8x1xf32>
    %cst_161 = arith.constant 1.000000e+00 : f32
    %466 = arith.subf %cst_161, %461 : f32
    %467 = vector.broadcast %466 : f32 to vector<8x1xf32>
    %468 = arith.mulf %467, %459 : vector<8x1xf32>
    %469 = arith.addf %465, %468 : vector<8x1xf32>
    %470 = vector.extract_strided_slice %339 {offsets = [24, 0], sizes = [8, 128], strides = [1, 1]} : vector<64x128xf32> to vector<8x128xf32>
    %471 = vector.broadcast %469 : vector<8x1xf32> to vector<8x128xf32>
    %472 = vector.broadcast %340 : vector<1x128xf32> to vector<8x128xf32>
    %473 = arith.mulf %471, %472 : vector<8x128xf32>
    %474 = arith.addf %470, %473 : vector<8x128xf32>
    %cst_162 = arith.constant 0.000000e+00 : f32
    %475 = vector.broadcast %cst_162 : f32 to vector<8x128xf32>
    %476 = arith.cmpf ogt, %474, %475 : vector<8x128xf32>
    %cst_163 = arith.constant 0.00999999977 : f32
    %477 = vector.broadcast %cst_163 : f32 to vector<8x128xf32>
    %478 = arith.mulf %477, %474 : vector<8x128xf32>
    %479 = arith.select %476, %474, %478 : vector<8x128xi1>, vector<8x128xf32>
    %cst_164 = arith.constant dense<0.000000e+00> : vector<8x64xf32>
    %480 = tpu.matmul %479, %341, %cst_164 {dimension_numbers = #tpu.dot_dimension_numbers<[1], [0], [0], [1], [0, 0, 1, 1], [], []>} : vector<8x128xf32>, vector<128x64xf32>, vector<8x64xf32> -> vector<8x64xf32>
    %481 = vector.broadcast %342 : vector<1x64xf32> to vector<8x64xf32>
    %482 = arith.addf %480, %481 : vector<8x64xf32>
    %cst_165 = arith.constant 0.000000e+00 : f32
    %483 = vector.broadcast %cst_165 : f32 to vector<8x64xf32>
    %484 = arith.cmpf ogt, %482, %483 : vector<8x64xf32>
    %cst_166 = arith.constant 0.00999999977 : f32
    %485 = vector.broadcast %cst_166 : f32 to vector<8x64xf32>
    %486 = arith.mulf %485, %482 : vector<8x64xf32>
    %487 = arith.select %484, %482, %486 : vector<8x64xi1>, vector<8x64xf32>
    %488 = vector.broadcast %343 : vector<1x64xf32> to vector<8x64xf32>
    %489 = arith.mulf %487, %488 : vector<8x64xf32>
    %cst_167 = arith.constant dense<0.000000e+00> : vector<8xf32>
    %490 = vector.multi_reduction <add>, %489, %cst_167 [1] : vector<8x64xf32> to vector<8xf32>
    %491 = vector.shape_cast %490 : vector<8xf32> to vector<8x1xf32>
    %492 = vector.broadcast %344 : vector<1x1xf32> to vector<8x1xf32>
    %493 = arith.addf %491, %492 : vector<8x1xf32>
    %cst_168 = arith.constant 5.000000e-01 : f32
    %494 = vector.broadcast %cst_168 : f32 to vector<8x1xf32>
    %495 = arith.mulf %494, %493 : vector<8x1xf32>
    %496 = math.tanh %495 : vector<8x1xf32>
    %cst_169 = arith.constant 1.000000e+00 : f32
    %497 = vector.broadcast %cst_169 : f32 to vector<8x1xf32>
    %498 = arith.addf %496, %497 : vector<8x1xf32>
    %cst_170 = arith.constant 5.000000e-01 : f32
    %499 = vector.broadcast %cst_170 : f32 to vector<8x1xf32>
    %500 = arith.mulf %499, %498 : vector<8x1xf32>
    %c3 = arith.constant 3 : index
    %501 = memref.load %arg0[%c3] : memref<8xi32, #tpu.memory_space<smem>>
    %502 = arith.sitofp %501 : i32 to f32
    %c3_171 = arith.constant 3 : index
    %c0_172 = arith.constant 0 : index
    %c0_173 = arith.constant 0 : index
    %503 = vector.load %arg2[%c3_171, %c0_172, %c0_173] : memref<8x8x1xf32, #tpu.memory_space<vmem>>, vector<1x8x1xf32>
    %504 = vector.shape_cast %503 : vector<1x8x1xf32> to vector<8x1xf32>
    %505 = vector.broadcast %502 : f32 to vector<8x1xf32>
    %506 = arith.mulf %505, %504 : vector<8x1xf32>
    %cst_174 = arith.constant 1.000000e+00 : f32
    %507 = arith.subf %cst_174, %502 : f32
    %508 = vector.broadcast %507 : f32 to vector<8x1xf32>
    %509 = arith.mulf %508, %500 : vector<8x1xf32>
    %510 = arith.addf %506, %509 : vector<8x1xf32>
    %511 = vector.extract_strided_slice %339 {offsets = [32, 0], sizes = [8, 128], strides = [1, 1]} : vector<64x128xf32> to vector<8x128xf32>
    %512 = vector.broadcast %510 : vector<8x1xf32> to vector<8x128xf32>
    %513 = vector.broadcast %340 : vector<1x128xf32> to vector<8x128xf32>
    %514 = arith.mulf %512, %513 : vector<8x128xf32>
    %515 = arith.addf %511, %514 : vector<8x128xf32>
    %cst_175 = arith.constant 0.000000e+00 : f32
    %516 = vector.broadcast %cst_175 : f32 to vector<8x128xf32>
    %517 = arith.cmpf ogt, %515, %516 : vector<8x128xf32>
    %cst_176 = arith.constant 0.00999999977 : f32
    %518 = vector.broadcast %cst_176 : f32 to vector<8x128xf32>
    %519 = arith.mulf %518, %515 : vector<8x128xf32>
    %520 = arith.select %517, %515, %519 : vector<8x128xi1>, vector<8x128xf32>
    %cst_177 = arith.constant dense<0.000000e+00> : vector<8x64xf32>
    %521 = tpu.matmul %520, %341, %cst_177 {dimension_numbers = #tpu.dot_dimension_numbers<[1], [0], [0], [1], [0, 0, 1, 1], [], []>} : vector<8x128xf32>, vector<128x64xf32>, vector<8x64xf32> -> vector<8x64xf32>
    %522 = vector.broadcast %342 : vector<1x64xf32> to vector<8x64xf32>
    %523 = arith.addf %521, %522 : vector<8x64xf32>
    %cst_178 = arith.constant 0.000000e+00 : f32
    %524 = vector.broadcast %cst_178 : f32 to vector<8x64xf32>
    %525 = arith.cmpf ogt, %523, %524 : vector<8x64xf32>
    %cst_179 = arith.constant 0.00999999977 : f32
    %526 = vector.broadcast %cst_179 : f32 to vector<8x64xf32>
    %527 = arith.mulf %526, %523 : vector<8x64xf32>
    %528 = arith.select %525, %523, %527 : vector<8x64xi1>, vector<8x64xf32>
    %529 = vector.broadcast %343 : vector<1x64xf32> to vector<8x64xf32>
    %530 = arith.mulf %528, %529 : vector<8x64xf32>
    %cst_180 = arith.constant dense<0.000000e+00> : vector<8xf32>
    %531 = vector.multi_reduction <add>, %530, %cst_180 [1] : vector<8x64xf32> to vector<8xf32>
    %532 = vector.shape_cast %531 : vector<8xf32> to vector<8x1xf32>
    %533 = vector.broadcast %344 : vector<1x1xf32> to vector<8x1xf32>
    %534 = arith.addf %532, %533 : vector<8x1xf32>
    %cst_181 = arith.constant 5.000000e-01 : f32
    %535 = vector.broadcast %cst_181 : f32 to vector<8x1xf32>
    %536 = arith.mulf %535, %534 : vector<8x1xf32>
    %537 = math.tanh %536 : vector<8x1xf32>
    %cst_182 = arith.constant 1.000000e+00 : f32
    %538 = vector.broadcast %cst_182 : f32 to vector<8x1xf32>
    %539 = arith.addf %537, %538 : vector<8x1xf32>
    %cst_183 = arith.constant 5.000000e-01 : f32
    %540 = vector.broadcast %cst_183 : f32 to vector<8x1xf32>
    %541 = arith.mulf %540, %539 : vector<8x1xf32>
    %c4 = arith.constant 4 : index
    %542 = memref.load %arg0[%c4] : memref<8xi32, #tpu.memory_space<smem>>
    %543 = arith.sitofp %542 : i32 to f32
    %c4_184 = arith.constant 4 : index
    %c0_185 = arith.constant 0 : index
    %c0_186 = arith.constant 0 : index
    %544 = vector.load %arg2[%c4_184, %c0_185, %c0_186] : memref<8x8x1xf32, #tpu.memory_space<vmem>>, vector<1x8x1xf32>
    %545 = vector.shape_cast %544 : vector<1x8x1xf32> to vector<8x1xf32>
    %546 = vector.broadcast %543 : f32 to vector<8x1xf32>
    %547 = arith.mulf %546, %545 : vector<8x1xf32>
    %cst_187 = arith.constant 1.000000e+00 : f32
    %548 = arith.subf %cst_187, %543 : f32
    %549 = vector.broadcast %548 : f32 to vector<8x1xf32>
    %550 = arith.mulf %549, %541 : vector<8x1xf32>
    %551 = arith.addf %547, %550 : vector<8x1xf32>
    %552 = vector.extract_strided_slice %339 {offsets = [40, 0], sizes = [8, 128], strides = [1, 1]} : vector<64x128xf32> to vector<8x128xf32>
    %553 = vector.broadcast %551 : vector<8x1xf32> to vector<8x128xf32>
    %554 = vector.broadcast %340 : vector<1x128xf32> to vector<8x128xf32>
    %555 = arith.mulf %553, %554 : vector<8x128xf32>
    %556 = arith.addf %552, %555 : vector<8x128xf32>
    %cst_188 = arith.constant 0.000000e+00 : f32
    %557 = vector.broadcast %cst_188 : f32 to vector<8x128xf32>
    %558 = arith.cmpf ogt, %556, %557 : vector<8x128xf32>
    %cst_189 = arith.constant 0.00999999977 : f32
    %559 = vector.broadcast %cst_189 : f32 to vector<8x128xf32>
    %560 = arith.mulf %559, %556 : vector<8x128xf32>
    %561 = arith.select %558, %556, %560 : vector<8x128xi1>, vector<8x128xf32>
    %cst_190 = arith.constant dense<0.000000e+00> : vector<8x64xf32>
    %562 = tpu.matmul %561, %341, %cst_190 {dimension_numbers = #tpu.dot_dimension_numbers<[1], [0], [0], [1], [0, 0, 1, 1], [], []>} : vector<8x128xf32>, vector<128x64xf32>, vector<8x64xf32> -> vector<8x64xf32>
    %563 = vector.broadcast %342 : vector<1x64xf32> to vector<8x64xf32>
    %564 = arith.addf %562, %563 : vector<8x64xf32>
    %cst_191 = arith.constant 0.000000e+00 : f32
    %565 = vector.broadcast %cst_191 : f32 to vector<8x64xf32>
    %566 = arith.cmpf ogt, %564, %565 : vector<8x64xf32>
    %cst_192 = arith.constant 0.00999999977 : f32
    %567 = vector.broadcast %cst_192 : f32 to vector<8x64xf32>
    %568 = arith.mulf %567, %564 : vector<8x64xf32>
    %569 = arith.select %566, %564, %568 : vector<8x64xi1>, vector<8x64xf32>
    %570 = vector.broadcast %343 : vector<1x64xf32> to vector<8x64xf32>
    %571 = arith.mulf %569, %570 : vector<8x64xf32>
    %cst_193 = arith.constant dense<0.000000e+00> : vector<8xf32>
    %572 = vector.multi_reduction <add>, %571, %cst_193 [1] : vector<8x64xf32> to vector<8xf32>
    %573 = vector.shape_cast %572 : vector<8xf32> to vector<8x1xf32>
    %574 = vector.broadcast %344 : vector<1x1xf32> to vector<8x1xf32>
    %575 = arith.addf %573, %574 : vector<8x1xf32>
    %cst_194 = arith.constant 5.000000e-01 : f32
    %576 = vector.broadcast %cst_194 : f32 to vector<8x1xf32>
    %577 = arith.mulf %576, %575 : vector<8x1xf32>
    %578 = math.tanh %577 : vector<8x1xf32>
    %cst_195 = arith.constant 1.000000e+00 : f32
    %579 = vector.broadcast %cst_195 : f32 to vector<8x1xf32>
    %580 = arith.addf %578, %579 : vector<8x1xf32>
    %cst_196 = arith.constant 5.000000e-01 : f32
    %581 = vector.broadcast %cst_196 : f32 to vector<8x1xf32>
    %582 = arith.mulf %581, %580 : vector<8x1xf32>
    %c5 = arith.constant 5 : index
    %583 = memref.load %arg0[%c5] : memref<8xi32, #tpu.memory_space<smem>>
    %584 = arith.sitofp %583 : i32 to f32
    %c5_197 = arith.constant 5 : index
    %c0_198 = arith.constant 0 : index
    %c0_199 = arith.constant 0 : index
    %585 = vector.load %arg2[%c5_197, %c0_198, %c0_199] : memref<8x8x1xf32, #tpu.memory_space<vmem>>, vector<1x8x1xf32>
    %586 = vector.shape_cast %585 : vector<1x8x1xf32> to vector<8x1xf32>
    %587 = vector.broadcast %584 : f32 to vector<8x1xf32>
    %588 = arith.mulf %587, %586 : vector<8x1xf32>
    %cst_200 = arith.constant 1.000000e+00 : f32
    %589 = arith.subf %cst_200, %584 : f32
    %590 = vector.broadcast %589 : f32 to vector<8x1xf32>
    %591 = arith.mulf %590, %582 : vector<8x1xf32>
    %592 = arith.addf %588, %591 : vector<8x1xf32>
    %593 = vector.extract_strided_slice %339 {offsets = [48, 0], sizes = [8, 128], strides = [1, 1]} : vector<64x128xf32> to vector<8x128xf32>
    %594 = vector.broadcast %592 : vector<8x1xf32> to vector<8x128xf32>
    %595 = vector.broadcast %340 : vector<1x128xf32> to vector<8x128xf32>
    %596 = arith.mulf %594, %595 : vector<8x128xf32>
    %597 = arith.addf %593, %596 : vector<8x128xf32>
    %cst_201 = arith.constant 0.000000e+00 : f32
    %598 = vector.broadcast %cst_201 : f32 to vector<8x128xf32>
    %599 = arith.cmpf ogt, %597, %598 : vector<8x128xf32>
    %cst_202 = arith.constant 0.00999999977 : f32
    %600 = vector.broadcast %cst_202 : f32 to vector<8x128xf32>
    %601 = arith.mulf %600, %597 : vector<8x128xf32>
    %602 = arith.select %599, %597, %601 : vector<8x128xi1>, vector<8x128xf32>
    %cst_203 = arith.constant dense<0.000000e+00> : vector<8x64xf32>
    %603 = tpu.matmul %602, %341, %cst_203 {dimension_numbers = #tpu.dot_dimension_numbers<[1], [0], [0], [1], [0, 0, 1, 1], [], []>} : vector<8x128xf32>, vector<128x64xf32>, vector<8x64xf32> -> vector<8x64xf32>
    %604 = vector.broadcast %342 : vector<1x64xf32> to vector<8x64xf32>
    %605 = arith.addf %603, %604 : vector<8x64xf32>
    %cst_204 = arith.constant 0.000000e+00 : f32
    %606 = vector.broadcast %cst_204 : f32 to vector<8x64xf32>
    %607 = arith.cmpf ogt, %605, %606 : vector<8x64xf32>
    %cst_205 = arith.constant 0.00999999977 : f32
    %608 = vector.broadcast %cst_205 : f32 to vector<8x64xf32>
    %609 = arith.mulf %608, %605 : vector<8x64xf32>
    %610 = arith.select %607, %605, %609 : vector<8x64xi1>, vector<8x64xf32>
    %611 = vector.broadcast %343 : vector<1x64xf32> to vector<8x64xf32>
    %612 = arith.mulf %610, %611 : vector<8x64xf32>
    %cst_206 = arith.constant dense<0.000000e+00> : vector<8xf32>
    %613 = vector.multi_reduction <add>, %612, %cst_206 [1] : vector<8x64xf32> to vector<8xf32>
    %614 = vector.shape_cast %613 : vector<8xf32> to vector<8x1xf32>
    %615 = vector.broadcast %344 : vector<1x1xf32> to vector<8x1xf32>
    %616 = arith.addf %614, %615 : vector<8x1xf32>
    %cst_207 = arith.constant 5.000000e-01 : f32
    %617 = vector.broadcast %cst_207 : f32 to vector<8x1xf32>
    %618 = arith.mulf %617, %616 : vector<8x1xf32>
    %619 = math.tanh %618 : vector<8x1xf32>
    %cst_208 = arith.constant 1.000000e+00 : f32
    %620 = vector.broadcast %cst_208 : f32 to vector<8x1xf32>
    %621 = arith.addf %619, %620 : vector<8x1xf32>
    %cst_209 = arith.constant 5.000000e-01 : f32
    %622 = vector.broadcast %cst_209 : f32 to vector<8x1xf32>
    %623 = arith.mulf %622, %621 : vector<8x1xf32>
    %c6 = arith.constant 6 : index
    %624 = memref.load %arg0[%c6] : memref<8xi32, #tpu.memory_space<smem>>
    %625 = arith.sitofp %624 : i32 to f32
    %c6_210 = arith.constant 6 : index
    %c0_211 = arith.constant 0 : index
    %c0_212 = arith.constant 0 : index
    %626 = vector.load %arg2[%c6_210, %c0_211, %c0_212] : memref<8x8x1xf32, #tpu.memory_space<vmem>>, vector<1x8x1xf32>
    %627 = vector.shape_cast %626 : vector<1x8x1xf32> to vector<8x1xf32>
    %628 = vector.broadcast %625 : f32 to vector<8x1xf32>
    %629 = arith.mulf %628, %627 : vector<8x1xf32>
    %cst_213 = arith.constant 1.000000e+00 : f32
    %630 = arith.subf %cst_213, %625 : f32
    %631 = vector.broadcast %630 : f32 to vector<8x1xf32>
    %632 = arith.mulf %631, %623 : vector<8x1xf32>
    %633 = arith.addf %629, %632 : vector<8x1xf32>
    %634 = vector.extract_strided_slice %339 {offsets = [56, 0], sizes = [8, 128], strides = [1, 1]} : vector<64x128xf32> to vector<8x128xf32>
    %635 = vector.broadcast %633 : vector<8x1xf32> to vector<8x128xf32>
    %636 = vector.broadcast %340 : vector<1x128xf32> to vector<8x128xf32>
    %637 = arith.mulf %635, %636 : vector<8x128xf32>
    %638 = arith.addf %634, %637 : vector<8x128xf32>
    %cst_214 = arith.constant 0.000000e+00 : f32
    %639 = vector.broadcast %cst_214 : f32 to vector<8x128xf32>
    %640 = arith.cmpf ogt, %638, %639 : vector<8x128xf32>
    %cst_215 = arith.constant 0.00999999977 : f32
    %641 = vector.broadcast %cst_215 : f32 to vector<8x128xf32>
    %642 = arith.mulf %641, %638 : vector<8x128xf32>
    %643 = arith.select %640, %638, %642 : vector<8x128xi1>, vector<8x128xf32>
    %cst_216 = arith.constant dense<0.000000e+00> : vector<8x64xf32>
    %644 = tpu.matmul %643, %341, %cst_216 {dimension_numbers = #tpu.dot_dimension_numbers<[1], [0], [0], [1], [0, 0, 1, 1], [], []>} : vector<8x128xf32>, vector<128x64xf32>, vector<8x64xf32> -> vector<8x64xf32>
    %645 = vector.broadcast %342 : vector<1x64xf32> to vector<8x64xf32>
    %646 = arith.addf %644, %645 : vector<8x64xf32>
    %cst_217 = arith.constant 0.000000e+00 : f32
    %647 = vector.broadcast %cst_217 : f32 to vector<8x64xf32>
    %648 = arith.cmpf ogt, %646, %647 : vector<8x64xf32>
    %cst_218 = arith.constant 0.00999999977 : f32
    %649 = vector.broadcast %cst_218 : f32 to vector<8x64xf32>
    %650 = arith.mulf %649, %646 : vector<8x64xf32>
    %651 = arith.select %648, %646, %650 : vector<8x64xi1>, vector<8x64xf32>
    %652 = tpu.concatenate %364, %405, %446, %487, %528, %569, %610, %651 in 0 : vector<8x64xf32>, vector<8x64xf32>, vector<8x64xf32>, vector<8x64xf32>, vector<8x64xf32>, vector<8x64xf32>, vector<8x64xf32>, vector<8x64xf32> -> vector<64x64xf32>
    %c0_219 = arith.constant 0 : index
    %c0_220 = arith.constant 0 : index
    %653 = vector.load %arg17[%c0_219, %c0_220] : memref<64x128xf32, #tpu.memory_space<vmem>>, vector<64x128xf32>
    %cst_221 = arith.constant dense<0.000000e+00> : vector<64x128xf32>
    %654 = tpu.matmul %652, %653, %cst_221 {dimension_numbers = #tpu.dot_dimension_numbers<[1], [0], [0], [1], [0, 0, 1, 1], [], []>} : vector<64x64xf32>, vector<64x128xf32>, vector<64x128xf32> -> vector<64x128xf32>
    %c0_222 = arith.constant 0 : index
    %c0_223 = arith.constant 0 : index
    %655 = vector.load %arg18[%c0_222, %c0_223] : memref<1x128xf32, #tpu.memory_space<vmem>>, vector<1x128xf32>
    %656 = vector.broadcast %655 : vector<1x128xf32> to vector<64x128xf32>
    %657 = arith.addf %654, %656 : vector<64x128xf32>
    %c0_224 = arith.constant 0 : index
    %c0_225 = arith.constant 0 : index
    %658 = vector.load %arg19[%c0_224, %c0_225] : memref<64x128xf32, #tpu.memory_space<vmem>>, vector<64x128xf32>
    tpu.vector_store %arg19[%c0_224, %c0_225], %657 {strides = array<i32>} : memref<64x128xf32, #tpu.memory_space<vmem>>, vector<64x128xf32>,
    return
  }
}

</mosaic_0001>

<bundles_post_ra>
// kernel: dsnet_ar_forward.1
= control target key start
LH: loop header
LB: loop body
LE: loop exit
PB: predicated region body
PF: predicated region fallthrough
CT: control target
= control target key end

     0   :  { %s5463_s0 = inlined_call_operand.vmem [shape: s32[8], index: 0, kind: input, shape index: {}]   ;;  %s5464_s1 = inlined_call_operand.vmem [shape: f32[48,768], index: 1, kind: input, shape index: {}]   ;;  %s5465_s2 = inlined_call_operand.vmem [shape: f32[8,8,1], index: 2, kind: input, shape index: {}]   ;;  %s5466_s3 = inlined_call_operand.vmem [shape: f32[64,64], index: 3, kind: input, shape index: {}]   ;;  %s5467_s4 = inlined_call_operand.vmem [shape: f32[768,32], index: 4, kind: input, shape index: {}]   ;;  %s5468_s5 = inlined_call_operand.vmem [shape: f32[1,32], index: 5, kind: input, shape index: {}]   ;;  %s5469_s6 = inlined_call_operand.vmem [shape: f32[32,128], index: 6, kind: input, shape index: {}]   ;;  %s5470_s7 = inlined_call_operand.vmem [shape: f32[32,128], index: 7, kind: input, shape index: {}]   ;;  %s5471_s8 = inlined_call_operand.vmem [shape: f32[1,128], index: 8, kind: input, shape index: {}]   ;;  %s5472_s9 = inlined_call_operand.vmem [shape: f32[32,128], index: 9, kind: input, shape index: {}]   ;;  %s5473_s10 = inlined_call_operand.vmem [shape: f32[32,128], index: 10, kind: input, shape index: {}]   ;;  %s5474_s11 = inlined_call_operand.vmem [shape: f32[1,128], index: 11, kind: input, shape index: {}]   ;;  %s5475_s12 = inlined_call_operand.vmem [shape: f32[1,128], index: 12, kind: input, shape index: {}]   ;;  %s5476_s13 = inlined_call_operand.vmem [shape: f32[128,64], index: 13, kind: input, shape index: {}]   ;;  %s5477_s14 = inlined_call_operand.vmem [shape: f32[1,64], index: 14, kind: input, shape index: {}]   ;;  %s5478_s15 = inlined_call_operand.vmem [shape: f32[1,64], index: 15, kind: input, shape index: {}]   ;;  %s5479_s16 = inlined_call_operand.<no memory space> [shape: f32[1,1], index: 16, kind: input, shape index: {}]   ;;  %s5480_s17 = inlined_call_operand.vmem [shape: f32[64,128], index: 17, kind: input, shape index: {}]   ;;  %s5481_s18 = inlined_call_operand.vmem [shape: f32[1,128], index: 18, kind: input, shape index: {}]   ;;  %s5482_s19 = inlined_call_operand.vmem [shape: f32[64,128], index: 19, kind: output, shape index: {}]  }
   0x1   :  { %5486 = sst [smem:[#allocation6_spill]] %s5463_s0  ;;  %v24_v0 = vstv %s5479_s16 }
   0x2   :  { %5487 = sst [smem:[#allocation7_spill]] %s5464_s1  ;;  %25 = vst [vmem:[#allocation2] sm:$0x1] %v24_v0 }
   0x3   :  { %5488 = sst [smem:[#allocation8_spill]] %s5465_s2 }
   0x4   :  { %5489 = sst [smem:[#allocation9_spill]] %s5466_s3 }
   0x5   :  { %26 = vsyncpa [#allocation4], 0  ;;  %s5490_s1 = sld [smem:[#allocation6_spill]] }
   0xb   :  { %s33_s22 = sshll.u32 %s5490_s1, 4  ;;  %s34_s22 = int_to_ptr.vmem [resolvable:$true] %s33_s22 }
   0xc   :  { %s4215_s2 = scalar_lea.vmem %s34_s22, 16  ;;  %p4220_p1 = scmp.lt.s32.totalorder %s34_s22, %s34_s22 }
   0xd   :  { %p4216_p0 = scmp.ne.s32.totalorder %s34_s22, %s4215_s2  ;;  %p4221_p2 = scmp.lt.s32.totalorder %s4215_s2, %s4215_s2 }
   0xf   :  { %p4222_p3 = por %p4221_p2, %p4220_p1 }
  0x11   :  { %p4223_p4 = pnand %p4222_p3, %p4216_p0 }
  0x13   :  { %4226 = shalt.err (!%p4223_p4)
}
  0x14   :  { %s4229_s23 = smov [#allocation3]  }
  0x15   :  { %36 = dma.vmem_to_smem %s34_s22, 16, %s4229_s23, [#allocation4]  }
  0x16   :  { %4227 = dma.done.wait [#allocation4], 16  }
  0x17   :  { %4228 = vsyncadd [#allocation4], 4294967280 }
  0x18   :  { %76 = sfence }
  0x19   :  { %v129_v1 = vld [vmem:[%s5467_s4 + $0x80] sm:$0xff]  ;;  %v130_v2 = vld [vmem:[%s5467_s4 + $0x88] sm:$0xff]  ;;  %v131_v12 = vld [vmem:[%s5467_s4 + $0x90] sm:$0xff]  ;;  %s5491_s25 = sld [smem:[#allocation7_spill]]  ;;  %vm509_vm0 = vcmask 261120   ;;  %s5492_s24 = sld [smem:[#allocation9_spill]] }
  0x1a   :  { %v161_v3 = vld [vmem:[%s5467_s4 + $0x180] sm:$0xff]  ;;  %v3736_v4 = vpack.c.bf16 %v130_v2, %v129_v1  ;;  %v162_v5 = vld [vmem:[%s5467_s4 + $0x188] sm:$0xff]  ;;  %v132_v14 = vld [vmem:[%s5467_s4 + $0x98] sm:$0xff]  ;;  %vm723_vm1 = vcmask 523264   ;;  %vm4231_vm2 = vmmov 0   ;;  %s2859_s22 = sld [smem:[#allocation3 + $0x2]] }
  0x1b   :  { %v113_v6 = vld [vmem:[%s5467_s4] sm:$0xff]  ;;  %v114_v7 = vld [vmem:[%s5467_s4 + $0x8] sm:$0xff]  ;;  %v3768_v8 = vpack.c.bf16 %v162_v5, %v161_v3  ;;  %v163_v15 = vld [vmem:[%s5467_s4 + $0x190] sm:$0xff]  ;;  %v3740_v17 = vpack.c.bf16 %v132_v14, %v131_v12  ;;  %s2863_s27 = sld [smem:[#allocation3 + $0x4]] }
  0x1c   :  { %v3738_v9 = vpack.c.bf16 %v114_v7, %v113_v6  ;;  %v145_v10 = vld [vmem:[%s5467_s4 + $0x100] sm:$0xff]  ;;  %v146_v11 = vld [vmem:[%s5467_s4 + $0x108] sm:$0xff]  ;;  %3737 = vmatprep.subr.bf16.mxu0 %v3736_v4  ;;  %v164_v16 = vld [vmem:[%s5467_s4 + $0x198] sm:$0xff] }
  0x1d   :  { %v3770_v13 = vpack.c.bf16 %v146_v11, %v145_v10  ;;  %3769 = vmatprep.subr.bf16.mxu1 %v3768_v8  ;;  %v3772_v18 = vpack.c.bf16 %v164_v16, %v163_v15  ;;  %v115_v19 = vld [vmem:[%s5467_s4 + $0x10] sm:$0xff]  ;;  %v116_v20 = vld [vmem:[%s5467_s4 + $0x18] sm:$0xff]  ;;  %v133_v24 = vld [vmem:[%s5467_s4 + $0xa0] sm:$0xff] }
  0x1e   :  { %3739 = vmatpush3.bf16.msra.mxu0 %v3738_v9  ;;  %v147_v21 = vld [vmem:[%s5467_s4 + $0x110] sm:$0xff]  ;;  %v3742_v22 = vpack.c.bf16 %v116_v20, %v115_v19  ;;  %v148_v23 = vld [vmem:[%s5467_s4 + $0x118] sm:$0xff]  ;;  %v134_v25 = vld [vmem:[%s5467_s4 + $0xa8] sm:$0xff] }
  0x1f   :  { %3771 = vmatpush3.bf16.msra.mxu1 %v3770_v13  ;;  %3741 = vmatprep.subr.bf16.mxu0 %v3740_v17  ;;  %v3774_v26 = vpack.c.bf16 %v148_v23, %v147_v21  ;;  %v3744_v27 = vpack.c.bf16 %v134_v25, %v133_v24  ;;  %v165_v28 = vld [vmem:[%s5467_s4 + $0x1a0] sm:$0xff]  ;;  %v166_v29 = vld [vmem:[%s5467_s4 + $0x1a8] sm:$0xff]  ;;  %v135_v36 = vld [vmem:[%s5467_s4 + $0xb0] sm:$0xff] }
  0x20   :  { %3773 = vmatprep.subr.bf16.mxu1 %v3772_v18  ;;  %v117_v30 = vld [vmem:[%s5467_s4 + $0x20] sm:$0xff]  ;;  %v3776_v31 = vpack.c.bf16 %v166_v29, %v165_v28  ;;  %v118_v32 = vld [vmem:[%s5467_s4 + $0x28] sm:$0xff]  ;;  %v136_v37 = vld [vmem:[%s5467_s4 + $0xb8] sm:$0xff] }
  0x21   :  { %v149_v33 = vld [vmem:[%s5467_s4 + $0x120] sm:$0xff]  ;;  %v150_v34 = vld [vmem:[%s5467_s4 + $0x128] sm:$0xff]  ;;  %v3746_v35 = vpack.c.bf16 %v118_v32, %v117_v30  ;;  %v167_v38 = vld [vmem:[%s5467_s4 + $0x1b0] sm:$0xff]  ;;  %v3748_v40 = vpack.c.bf16 %v136_v37, %v135_v36 }
  0x22   :  { %3743 = vmatpush3.bf16.msra.mxu0 %v3742_v22  ;;  %v3778_v39 = vpack.c.bf16 %v150_v34, %v149_v33  ;;  %v168_v41 = vld [vmem:[%s5467_s4 + $0x1b8] sm:$0xff]  ;;  %v119_v42 = vld [vmem:[%s5467_s4 + $0x30] sm:$0xff]  ;;  %v137_v47 = vld [vmem:[%s5467_s4 + $0xc0] sm:$0xff] }
  0x23   :  { %3775 = vmatpush3.bf16.msra.mxu1 %v3774_v26  ;;  %3745 = vmatprep.subr.bf16.mxu0 %v3744_v27  ;;  %v120_v43 = vld [vmem:[%s5467_s4 + $0x38] sm:$0xff]  ;;  %v3780_v44 = vpack.c.bf16 %v168_v41, %v167_v38  ;;  %v151_v45 = vld [vmem:[%s5467_s4 + $0x130] sm:$0xff]  ;;  %v138_v48 = vld [vmem:[%s5467_s4 + $0xc8] sm:$0xff] }
  0x24   :  { %3777 = vmatprep.subr.bf16.mxu1 %v3776_v31  ;;  %v152_v46 = vld [vmem:[%s5467_s4 + $0x138] sm:$0xff]  ;;  %v169_v49 = vld [vmem:[%s5467_s4 + $0x1c0] sm:$0xff]  ;;  %v170_v50 = vld [vmem:[%s5467_s4 + $0x1c8] sm:$0xff]  ;;  %v3750_v51 = vpack.c.bf16 %v120_v43, %v119_v42  ;;  %v3752_v53 = vpack.c.bf16 %v138_v48, %v137_v47 }
  0x25   :  { %v3782_v52 = vpack.c.bf16 %v152_v46, %v151_v45  ;;  %v121_v54 = vld [vmem:[%s5467_s4 + $0x40] sm:$0xff]  ;;  %v122_v55 = vld [vmem:[%s5467_s4 + $0x48] sm:$0xff]  ;;  %v3784_v57 = vpack.c.bf16 %v170_v50, %v169_v49  ;;  %v139_v59 = vld [vmem:[%s5467_s4 + $0xd0] sm:$0xff] }
  0x26   :  { %3747 = vmatpush3.bf16.msra.mxu0 %v3746_v35  ;;  %v153_v56 = vld [vmem:[%s5467_s4 + $0x140] sm:$0xff]  ;;  %v154_v58 = vld [vmem:[%s5467_s4 + $0x148] sm:$0xff]  ;;  %v140_v60 = vld [vmem:[%s5467_s4 + $0xd8] sm:$0xff]  ;;  %v3754_v63 = vpack.c.bf16 %v122_v55, %v121_v54 }
  0x27   :  { %3779 = vmatpush3.bf16.msra.mxu1 %v3778_v39  ;;  %3749 = vmatprep.subr.bf16.mxu0 %v3748_v40  ;;  %v171_v61 = vld [vmem:[%s5467_s4 + $0x1d0] sm:$0xff]  ;;  %v172_v62 = vld [vmem:[%s5467_s4 + $0x1d8] sm:$0xff]  ;;  %v3786_v0 = vpack.c.bf16 %v154_v58, %v153_v56  ;;  %v3756_v1 = vpack.c.bf16 %v140_v60, %v139_v59  ;;  %v141_v7 = vld [vmem:[%s5467_s4 + $0xe0] sm:$0xff] }
  0x28   :  { %3781 = vmatprep.subr.bf16.mxu1 %v3780_v44  ;;  %v123_v2 = vld [vmem:[%s5467_s4 + $0x50] sm:$0xff]  ;;  %v124_v3 = vld [vmem:[%s5467_s4 + $0x58] sm:$0xff]  ;;  %v3788_v5 = vpack.c.bf16 %v172_v62, %v171_v61  ;;  %v142_v8 = vld [vmem:[%s5467_s4 + $0xe8] sm:$0xff] }
  0x29   :  { %v155_v4 = vld [vmem:[%s5467_s4 + $0x150] sm:$0xff]  ;;  %v156_v6 = vld [vmem:[%s5467_s4 + $0x158] sm:$0xff]  ;;  %v173_v9 = vld [vmem:[%s5467_s4 + $0x1e0] sm:$0xff]  ;;  %v3758_v11 = vpack.c.bf16 %v124_v3, %v123_v2  ;;  %v3760_v15 = vpack.c.bf16 %v142_v8, %v141_v7 }
  0x2a   :  { %3751 = vmatpush3.bf16.msra.mxu0 %v3750_v51  ;;  %v174_v10 = vld [vmem:[%s5467_s4 + $0x1e8] sm:$0xff]  ;;  %v125_v12 = vld [vmem:[%s5467_s4 + $0x60] sm:$0xff]  ;;  %v3790_v14 = vpack.c.bf16 %v156_v6, %v155_v4  ;;  %v143_v20 = vld [vmem:[%s5467_s4 + $0xf0] sm:$0xff] }
  0x2b   :  { %3783 = vmatpush3.bf16.msra.mxu1 %v3782_v52  ;;  %3753 = vmatprep.subr.bf16.mxu0 %v3752_v53  ;;  %v126_v13 = vld [vmem:[%s5467_s4 + $0x68] sm:$0xff]  ;;  %v157_v16 = vld [vmem:[%s5467_s4 + $0x160] sm:$0xff]  ;;  %v3792_v19 = vpack.c.bf16 %v174_v10, %v173_v9  ;;  %v144_v21 = vld [vmem:[%s5467_s4 + $0xf8] sm:$0xff] }
  0x2c   :  { %3785 = vmatprep.subr.bf16.mxu1 %v3784_v57  ;;  %v158_v17 = vld [vmem:[%s5467_s4 + $0x168] sm:$0xff]  ;;  %v80_v22 = vld [vmem:[%s5491_s25 + $0x18] sm:$0xff]  ;;  %v175_v23 = vld [vmem:[%s5467_s4 + $0x1f0] sm:$0xff]  ;;  %v3762_v25 = vpack.c.bf16 %v126_v13, %v125_v12  ;;  %v3764_v27 = vpack.c.bf16 %v144_v21, %v143_v20 }
  0x2d   :  { %v78_v18 = vld [vmem:[%s5491_s25 + $0x8] sm:$0xff]  ;;  %v176_v24 = vld [vmem:[%s5467_s4 + $0x1f8] sm:$0xff]  ;;  %375 = vmatprep.mubr.f32.mxu1 %v80_v22  ;;  %v3794_v26 = vpack.c.bf16 %v158_v17, %v157_v16  ;;  %v127_v28 = vld [vmem:[%s5467_s4 + $0x70] sm:$0xff] }
  0x2e   :  { %3755 = vmatpush3.bf16.msra.mxu0 %v3754_v63  ;;  %280 = vmatprep.mubr.f32.mxu0 %v78_v18  ;;  %v128_v29 = vld [vmem:[%s5467_s4 + $0x78] sm:$0xff]  ;;  %v159_v30 = vld [vmem:[%s5467_s4 + $0x170] sm:$0xff]  ;;  %v3796_v31 = vpack.c.bf16 %v176_v24, %v175_v23  ;;  %v193_v33 = vld [vmem:[%s5467_s4 + $0x280] sm:$0xff] }
  0x2f   :  { %3787 = vmatpush3.bf16.msra.mxu1 %v3786_v0  ;;  %3757 = vmatprep.subr.bf16.mxu0 %v3756_v1  ;;  %v160_v32 = vld [vmem:[%s5467_s4 + $0x178] sm:$0xff]  ;;  %v194_v34 = vld [vmem:[%s5467_s4 + $0x288] sm:$0xff]  ;;  %v3766_v35 = vpack.c.bf16 %v128_v29, %v127_v28  ;;  %v177_v38 = vld [vmem:[%s5467_s4 + $0x200] sm:$0xff] }
  0x30   :  { %3789 = vmatprep.subr.bf16.mxu1 %v3788_v5  ;;  %v3798_v36 = vpack.c.bf16 %v160_v32, %v159_v30  ;;  %v3800_v37 = vpack.c.bf16 %v194_v34, %v193_v33  ;;  %v178_v39 = vld [vmem:[%s5467_s4 + $0x208] sm:$0xff]  ;;  %v195_v40 = vld [vmem:[%s5467_s4 + $0x290] sm:$0xff]  ;;  %v196_v41 = vld [vmem:[%s5467_s4 + $0x298] sm:$0xff] }
  0x31   :  { %v77_v42 = vld [vmem:[%s5491_s25] sm:$0xff]  ;;  %v3802_v43 = vpack.c.bf16 %v178_v39, %v177_v38  ;;  %v79_v44 = vld [vmem:[%s5491_s25 + $0x10] sm:$0xff]  ;;  %v3804_v45 = vpack.c.bf16 %v196_v41, %v195_v40  ;;  %v180_v47 = vld [vmem:[%s5467_s4 + $0x218] sm:$0xff] }
  0x32   :  { %3759 = vmatpush3.bf16.msra.mxu0 %v3758_v11  ;;  %v179_v46 = vld [vmem:[%s5467_s4 + $0x210] sm:$0xff]  ;;  %v197_v48 = vld [vmem:[%s5467_s4 + $0x2a0] sm:$0xff]  ;;  %v198_v49 = vld [vmem:[%s5467_s4 + $0x2a8] sm:$0xff] }
  0x33   :  { %3791 = vmatpush3.bf16.msra.mxu1 %v3790_v14  ;;  %3761 = vmatprep.subr.bf16.mxu0 %v3760_v15  ;;  %v84_v50 = vld [vmem:[%s5491_s25 + $0x38] sm:$0xff]  ;;  %v3806_v51 = vpack.c.bf16 %v180_v47, %v179_v46  ;;  %v83_v52 = vld [vmem:[%s5491_s25 + $0x30] sm:$0xff]  ;;  %v86_v53 = vld [vmem:[%s5491_s25 + $0x48] sm:$0xff]  ;;  %v3808_v54 = vpack.c.bf16 %v198_v49, %v197_v48 }
  0x34   :  { %3793 = vmatprep.subr.bf16.mxu1 %v3792_v19  ;;  %v181_v55 = vld [vmem:[%s5467_s4 + $0x220] sm:$0xff]  ;;  %v182_v56 = vld [vmem:[%s5467_s4 + $0x228] sm:$0xff]  ;;  %v199_v58 = vld [vmem:[%s5467_s4 + $0x2b0] sm:$0xff] }
  0x35   :  { %v85_v57 = vld [vmem:[%s5491_s25 + $0x40] sm:$0xff]  ;;  %v200_v59 = vld [vmem:[%s5467_s4 + $0x2b8] sm:$0xff]  ;;  %v90_v60 = vld [vmem:[%s5491_s25 + $0x68] sm:$0xff]  ;;  %v3810_v61 = vpack.c.bf16 %v182_v56, %v181_v55 }
  0x36   :  { %3763 = vmatpush3.bf16.msra.mxu0 %v3762_v25  ;;  %v89_v62 = vld [vmem:[%s5491_s25 + $0x60] sm:$0xff]  ;;  %v92_v63 = vld [vmem:[%s5491_s25 + $0x78] sm:$0xff]  ;;  %v3812_v0 = vpack.c.bf16 %v200_v59, %v199_v58  ;;  %v183_v1 = vld [vmem:[%s5467_s4 + $0x230] sm:$0xff] }
  0x37   :  { %3795 = vmatpush3.bf16.msra.mxu1 %v3794_v26  ;;  %3765 = vmatprep.subr.bf16.mxu0 %v3764_v27  ;;  %v184_v2 = vld [vmem:[%s5467_s4 + $0x238] sm:$0xff]  ;;  %v91_v3 = vld [vmem:[%s5491_s25 + $0x70] sm:$0xff]  ;;  %v201_v4 = vld [vmem:[%s5467_s4 + $0x2c0] sm:$0xff] }
  0x38   :  { %3797 = vmatprep.subr.bf16.mxu1 %v3796_v31  ;;  %v202_v5 = vld [vmem:[%s5467_s4 + $0x2c8] sm:$0xff]  ;;  %v96_v6 = vld [vmem:[%s5491_s25 + $0x98] sm:$0xff]  ;;  %v3814_v7 = vpack.c.bf16 %v184_v2, %v183_v1  ;;  %v95_v8 = vld [vmem:[%s5491_s25 + $0x90] sm:$0xff] }
  0x39   :  { %v98_v9 = vld [vmem:[%s5491_s25 + $0xa8] sm:$0xff]  ;;  %v3816_v10 = vpack.c.bf16 %v202_v5, %v201_v4  ;;  %v185_v11 = vld [vmem:[%s5467_s4 + $0x240] sm:$0xff]  ;;  %v203_v14 = vld [vmem:[%s5467_s4 + $0x2d0] sm:$0xff] }
  0x3a   :  { %3767 = vmatpush3.bf16.msra.mxu0 %v3766_v35  ;;  %v186_v12 = vld [vmem:[%s5467_s4 + $0x248] sm:$0xff]  ;;  %v97_v13 = vld [vmem:[%s5491_s25 + $0xa0] sm:$0xff]  ;;  %v204_v15 = vld [vmem:[%s5467_s4 + $0x2d8] sm:$0xff] }
  0x3b   :  { %3799 = vmatpush3.bf16.msra.mxu1 %v3798_v36  ;;  %3801 = vmatprep.subr.bf16.mxu0 %v3800_v37  ;;  %v102_v16 = vld [vmem:[%s5491_s25 + $0xc8] sm:$0xff]  ;;  %v3818_v17 = vpack.c.bf16 %v186_v12, %v185_v11  ;;  %v101_v18 = vld [vmem:[%s5491_s25 + $0xc0] sm:$0xff]  ;;  %v104_v19 = vld [vmem:[%s5491_s25 + $0xd8] sm:$0xff]  ;;  %v3820_v20 = vpack.c.bf16 %v204_v15, %v203_v14 }
  0x3c   :  { %4128 = vmatprep.subr.bf16.mxu1 %v3800_v37  ;;  %v187_v21 = vld [vmem:[%s5467_s4 + $0x250] sm:$0xff]  ;;  %v188_v22 = vld [vmem:[%s5467_s4 + $0x258] sm:$0xff]  ;;  %v205_v24 = vld [vmem:[%s5467_s4 + $0x2e0] sm:$0xff] }
  0x3d   :  { %281 = vmatmul.mubr.f32.vlgmr.msra.gmra.mrb[0].mxu0 %v77_v42  ;;  %v103_v23 = vld [vmem:[%s5491_s25 + $0xd0] sm:$0xff]  ;;  %v206_v25 = vld [vmem:[%s5467_s4 + $0x2e8] sm:$0xff]  ;;  %v108_v26 = vld [vmem:[%s5491_s25 + $0xf8] sm:$0xff]  ;;  %v3822_v27 = vpack.c.bf16 %v188_v22, %v187_v21 }
  0x3e   :  { %376 = vmatmul.mubr.f32.vlgmr.msra.gmra.mrb[0].mxu1 %v79_v44  ;;  %3803 = vmatpush3.bf16.msra.mxu0 %v3802_v43  ;;  %v107_v28 = vld [vmem:[%s5491_s25 + $0xf0] sm:$0xff]  ;;  %v110_v29 = vld [vmem:[%s5491_s25 + $0x108] sm:$0xff]  ;;  %v3824_v30 = vpack.c.bf16 %v206_v25, %v205_v24  ;;  %v189_v31 = vld [vmem:[%s5467_s4 + $0x260] sm:$0xff] }
  0x3f   :  { %4136 = vmatpush3.bf16.msra.mxu1 %v3802_v43  ;;  %3805 = vmatprep.subr.bf16.mxu0 %v3804_v45  ;;  %v190_v32 = vld [vmem:[%s5467_s4 + $0x268] sm:$0xff]  ;;  %v109_v33 = vld [vmem:[%s5491_s25 + $0x100] sm:$0xff]  ;;  %v207_v34 = vld [vmem:[%s5467_s4 + $0x2f0] sm:$0xff] }
  0x40   :  { %4129 = vmatprep.subr.bf16.mxu1 %v3804_v45  ;;  %285 = vmatprep.mubr.f32.mxu0 %v84_v50  ;;  %v208_v35 = vld [vmem:[%s5467_s4 + $0x2f8] sm:$0xff]  ;;  %v82_v36 = vld [vmem:[%s5491_s25 + $0x28] sm:$0xff]  ;;  %v3826_v37 = vpack.c.bf16 %v190_v32, %v189_v31  ;;  %v191_v40 = vld [vmem:[%s5467_s4 + $0x270] sm:$0xff] }
  0x41   :  { %286 = vmatmul.mubr.f32.gmra.mrb[2].mxu0 %v83_v52  ;;  %380 = vmatprep.mubr.f32.mxu1 %v86_v53  ;;  %v106_v38 = vld [vmem:[%s5491_s25 + $0xe8] sm:$0xff]  ;;  %v3828_v39 = vpack.c.bf16 %v208_v35, %v207_v34  ;;  %v192_v41 = vld [vmem:[%s5467_s4 + $0x278] sm:$0xff]  ;;  %v81_v43 = vld [vmem:[%s5491_s25 + $0x20] sm:$0xff] }
  0x42   :  { %3807 = vmatpush3.bf16.msra.mxu0 %v3806_v51  ;;  %381 = vmatmul.mubr.f32.gmra.mrb[2].mxu1 %v85_v57  ;;  %v3830_v42 = vpack.c.bf16 %v192_v41, %v191_v40  ;;  %v105_v44 = vld [vmem:[%s5491_s25 + $0xe0] sm:$0xff]  ;;  %v88_v45 = vld [vmem:[%s5491_s25 + $0x58] sm:$0xff]  ;;  %v87_v47 = vld [vmem:[%s5491_s25 + $0x50] sm:$0xff] }
  0x43   :  { %4137 = vmatpush3.bf16.msra.mxu1 %v3806_v51  ;;  %3809 = vmatprep.subr.bf16.mxu0 %v3808_v54  ;;  %v112_v46 = vld [vmem:[%s5491_s25 + $0x118] sm:$0xff]  ;;  %v111_v48 = vld [vmem:[%s5491_s25 + $0x110] sm:$0xff]  ;;  %v94_v49 = vld [vmem:[%s5491_s25 + $0x88] sm:$0xff] }
  0x44   :  { %4130 = vmatprep.subr.bf16.mxu1 %v3808_v54  ;;  %290 = vmatprep.mubr.f32.mxu0 %v90_v60  ;;  %v93_v50 = vld [vmem:[%s5491_s25 + $0x80] sm:$0xff]  ;;  %v100_v51 = vld [vmem:[%s5491_s25 + $0xb8] sm:$0xff]  ;;  %v99_v52 = vld [vmem:[%s5491_s25 + $0xb0] sm:$0xff] }
  0x45   :  { %291 = vmatmul.mubr.f32.gmra.mrb[4].mxu0 %v89_v62  ;;  %385 = vmatprep.mubr.f32.mxu1 %v92_v63  ;;  %v505_v53 = vld [vmem:[%s5469_s6] sm:$0xff]  ;;  %v506_v54 = vld [vmem:[%s5469_s6 + $0x8] sm:$0xff]  ;;  %v507_v56 = vld [vmem:[%s5469_s6 + $0x10] sm:$0xff] }
  0x46   :  { %3811 = vmatpush3.bf16.msra.mxu0 %v3810_v61  ;;  %386 = vmatmul.mubr.f32.gmra.mrb[4].mxu1 %v91_v3  ;;  %v3832_v55 = vpack.c.bf16 %v506_v54, %v505_v53  ;;  %v508_v57 = vld [vmem:[%s5469_s6 + $0x18] sm:$0xff]  ;;  %v623_v59 = vld [vmem:[%s5470_s7] sm:$0xff]  ;;  %v624_v60 = vld [vmem:[%s5470_s7 + $0x8] sm:$0xff] }
  0x47   :  { %4138 = vmatpush3.bf16.msra.mxu1 %v3810_v61  ;;  %3813 = vmatprep.subr.bf16.mxu0 %v3812_v0  ;;  %v3836_v58 = vpack.c.bf16 %v508_v57, %v507_v56  ;;  %v4756_v61 = vpack.c.bf16 %v624_v60, %v623_v59  ;;  %v2819_v63 = vld [vmem:[%s5468_s5] ss:$0 sm:$0xff]  ;;  %v626_v59 = vld [vmem:[%s5470_s7 + $0x18] sm:$0xff]  ;;  %s5495_s5 = sld [smem:[#allocation8_spill]] }
  0x48   :  { %4131 = vmatprep.subr.bf16.mxu1 %v3812_v0  ;;  %295 = vmatprep.mubr.f32.mxu0 %v96_v6 }
  0x49   :  { %296 = vmatmul.mubr.f32.gmra.mrb[6].mxu0 %v95_v8  ;;  %390 = vmatprep.mubr.f32.mxu1 %v98_v9 }
  0x4a   :  { %3815 = vmatpush3.bf16.msra.mxu0 %v3814_v7  ;;  %391 = vmatmul.mubr.f32.gmra.mrb[6].mxu1 %v97_v13 }
  0x4b   :  { %4139 = vmatpush3.bf16.msra.mxu1 %v3814_v7  ;;  %3817 = vmatprep.subr.bf16.mxu0 %v3816_v10 }
  0x4c   :  { %4132 = vmatprep.subr.bf16.mxu1 %v3816_v10  ;;  %300 = vmatprep.mubr.f32.mxu0 %v102_v16 }
  0x4d   :  { %301 = vmatmul.mubr.f32.gmra.mrb[8].mxu0 %v101_v18  ;;  %395 = vmatprep.mubr.f32.mxu1 %v104_v19 }
  0x4e   :  { %3819 = vmatpush3.bf16.msra.mxu0 %v3818_v17  ;;  %396 = vmatmul.mubr.f32.gmra.mrb[8].mxu1 %v103_v23 }
  0x4f   :  { %4140 = vmatpush3.bf16.msra.mxu1 %v3818_v17  ;;  %3821 = vmatprep.subr.bf16.mxu0 %v3820_v20 }
  0x50   :  { %4133 = vmatprep.subr.bf16.mxu1 %v3820_v20  ;;  %305 = vmatprep.mubr.f32.mxu0 %v108_v26 }
  0x51   :  { %306 = vmatmul.mubr.f32.gmra.mrb[10].mxu0 %v107_v28  ;;  %400 = vmatprep.mubr.f32.mxu1 %v110_v29 }
  0x52   :  { %3823 = vmatpush3.bf16.msra.mxu0 %v3822_v27  ;;  %401 = vmatmul.mubr.f32.gmra.mrb[10].mxu1 %v109_v33 }
  0x53   :  { %4141 = vmatpush3.bf16.msra.mxu1 %v3822_v27  ;;  %3825 = vmatprep.subr.bf16.mxu0 %v3824_v30 }
  0x54   :  { %4134 = vmatprep.subr.bf16.mxu1 %v3824_v30  ;;  %470 = vmatprep.mubr.f32.mxu0 %v82_v36 }
  0x55   :  { %490 = vmatprep.mubr.f32.mxu1 %v106_v38 }
  0x56   :  { %3827 = vmatpush3.bf16.msra.mxu0 %v3826_v37 }
  0x57   :  { %4142 = vmatpush3.bf16.msra.mxu1 %v3826_v37  ;;  %3829 = vmatprep.subr.bf16.mxu0 %v3828_v39 }
  0x58   :  { %4135 = vmatprep.subr.bf16.mxu1 %v3828_v39 }
  0x5a   :  { %3831 = vmatpush3.bf16.msra.mxu0 %v3830_v42 }
  0x5b   :  { %4143 = vmatpush3.bf16.msra.mxu1 %v3830_v42 }
  0x5c   :  { %3833 = vmatprep.subr.bf16.mxu1 %v3832_v55 }
  0x5d   :  { %471 = vmatmul.mubr.f32.vlgmr.msra.gmra.mrb[12].mxu0 %v81_v43 }
  0x5e   :  { %491 = vmatmul.mubr.f32.vlgmr.msra.gmra.mrb[12].mxu1 %v105_v44  ;;  %475 = vmatprep.mubr.f32.mxu0 %v88_v45 }
  0x5f   :  { %495 = vmatprep.mubr.f32.mxu1 %v112_v46  ;;  %3835 = vmatpush3.bf16.msra.mxu1 %v3832_v55 }
  0x60   :  { %3837 = vmatprep.subr.bf16.mxu1 %v3836_v58 }
  0x61   :  { %476 = vmatmul.mubr.f32.gmra.mrb[14].mxu0 %v87_v47 }
  0x62   :  { %496 = vmatmul.mubr.f32.gmra.mrb[14].mxu1 %v111_v48  ;;  %480 = vmatprep.mubr.f32.mxu0 %v94_v49 }
  0x63   :  { %3839 = vmatpush3.bf16.msra.mxu1 %v3836_v58  ;;  %v625_v58 = vld [vmem:[%s5470_s7 + $0x10] sm:$0xff]  ;;  %s2861_s7 = sld [smem:[#allocation3 + $0x3]] }
  0x64   :  { %3841 = vmatprep.subr.bf16.mxu1 %v4756_v61 }
  0x65   :  { %481 = vmatmul.mubr.f32.gmra.mrb[16].mxu0 %v93_v50 }
  0x66   :  { %485 = vmatprep.mubr.f32.mxu0 %v100_v51 }
  0x69   :  { %486 = vmatmul.mubr.f32.gmra.mrb[18].mxu0 %v99_v52  ;;  %s2264_s16 = scvt.s32.f32 %s2861_s7 }
  0x6b   :  { %s2269_s4 = ssub.f32 1.0, %s2264_s16 }
 0x110   :  { %v2910_v62 = vpop.f32.mrb[0].mxu0 }
 0x111   :  { %v2911_v0 = vpop.f32.mrb[1].mxu0  ;;  %v2960_v1 = vpop.f32.mrb[0].mxu1 }
 0x112   :  { %v2912_v2 = vadd.f32 %v2911_v0, %v2910_v62  ;;  %v2961_v3 = vpop.f32.mrb[1].mxu1 }
 0x113   :  { %v2962_v4 = vadd.f32 %v2961_v3, %v2960_v1 }
 0x114   :  { %v283_v5 = vadd.f32 %v2912_v2, %v2819_v63  ;;  %v2913_v6 = vpop.f32.mrb[2].mxu0  ;;  %v3844_v2 = vpack.c.bf16 %v626_v59, %v625_v58 }
 0x115   :  { %v2914_v7 = vpop.f32.mrb[3].mxu0  ;;  %v2963_v8 = vpop.f32.mrb[2].mxu1 }
 0x116   :  { %v378_v9 = vadd.f32 %v2962_v4, %v283_v5  ;;  %v2915_v10 = vadd.f32 %v2914_v7, %v2913_v6  ;;  %v2964_v11 = vpop.f32.mrb[3].mxu1 }
 0x117   :  { %v2965_v12 = vadd.f32 %v2964_v11, %v2963_v8 }
 0x118   :  { %v288_v13 = vadd.f32 %v2915_v10, %v2819_v63  ;;  %v2916_v14 = vpop.f32.mrb[4].mxu0 }
 0x119   :  { %v2917_v15 = vpop.f32.mrb[5].mxu0  ;;  %v2966_v16 = vpop.f32.mrb[4].mxu1 }
 0x11a   :  { %v383_v17 = vadd.f32 %v2965_v12, %v288_v13  ;;  %v2918_v18 = vadd.f32 %v2917_v15, %v2916_v14  ;;  %v2967_v19 = vpop.f32.mrb[5].mxu1  ;;  %v876_v15 = vld [vmem:[%s5472_s9] sm:$0xff] }
 0x11b   :  { %v2968_v20 = vadd.f32 %v2967_v19, %v2966_v16  ;;  %v877_v16 = vld [vmem:[%s5472_s9 + $0x8] sm:$0xff]  ;;  %v878_v19 = vld [vmem:[%s5472_s9 + $0x10] sm:$0xff] }
 0x11c   :  { %v293_v21 = vadd.f32 %v2918_v18, %v2819_v63  ;;  %v2919_v22 = vpop.f32.mrb[6].mxu0  ;;  %v4788_v18 = vpack.c.bf16 %v877_v16, %v876_v15 }
 0x11d   :  { %v2920_v23 = vpop.f32.mrb[7].mxu0  ;;  %v2969_v24 = vpop.f32.mrb[6].mxu1 }
 0x11e   :  { %v388_v25 = vadd.f32 %v2968_v20, %v293_v21  ;;  %v2921_v26 = vadd.f32 %v2920_v23, %v2919_v22  ;;  %v2970_v27 = vpop.f32.mrb[7].mxu1  ;;  %v879_v20 = vld [vmem:[%s5472_s9 + $0x18] sm:$0xff]  ;;  %v4232_v22 = vmov 0.0  }
 0x11f   :  { %v2971_v28 = vadd.f32 %v2970_v27, %v2969_v24  ;;  %v4798_v21 = vpack.c.bf16 %v879_v20, %v878_v19  ;;  %3328 = vmatprep.mubr.msk.f32.mxu0 %vm4231_vm2, %v4232_v22 }
 0x120   :  { %v298_v29 = vadd.f32 %v2921_v26, %v2819_v63  ;;  %v2922_v30 = vpop.f32.mrb[8].mxu0 }
 0x121   :  { %v2923_v31 = vpop.f32.mrb[9].mxu0  ;;  %v2972_v32 = vpop.f32.mrb[8].mxu1 }
 0x122   :  { %v393_v33 = vadd.f32 %v2971_v28, %v298_v29  ;;  %v2924_v34 = vadd.f32 %v2923_v31, %v2922_v30  ;;  %v2973_v35 = vpop.f32.mrb[9].mxu1 }
 0x123   :  { %v2974_v36 = vadd.f32 %v2973_v35, %v2972_v32  ;;  %v709_v35 = vld [vmem:[%s5492_s24 + $0x8] sm:$0xff] }
 0x124   :  { %v303_v37 = vadd.f32 %v2924_v34, %v2819_v63  ;;  %v2925_v38 = vpop.f32.mrb[10].mxu0 }
 0x125   :  { %v2926_v39 = vpop.f32.mrb[11].mxu0  ;;  %v2975_v40 = vpop.f32.mrb[10].mxu1 }
 0x126   :  { %v398_v41 = vadd.f32 %v2974_v36, %v303_v37  ;;  %v2927_v42 = vadd.f32 %v2926_v39, %v2925_v38  ;;  %v2976_v43 = vpop.f32.mrb[11].mxu1  ;;  %v710_v36 = vld [vmem:[%s5492_s24 + $0x10] sm:$0xff]  ;;  %v711_v37 = vld [vmem:[%s5492_s24 + $0x18] sm:$0xff]  ;;  %v712_v38 = vld [vmem:[%s5492_s24 + $0x20] sm:$0xff] }
 0x127   :  { %v2977_v44 = vadd.f32 %v2976_v43, %v2975_v40  ;;  %v713_v39 = vld [vmem:[%s5492_s24 + $0x28] sm:$0xff]  ;;  %v714_v40 = vld [vmem:[%s5492_s24 + $0x30] sm:$0xff] }
 0x128   :  { %v308_v45 = vadd.f32 %v2927_v42, %v2819_v63 }
 0x12a   :  { %v403_v46 = vadd.f32 %v2977_v44, %v308_v45  ;;  %v853_v44 = vlaneseq  ;;  %v2828_v45 = vld [vmem:[%s5471_s8] ss:$0 sm:$0xff]  ;;  %s4233_s8 = smov 64  }
 0x130   :  { %v3010_v47 = vpop.f32.mrb[12].mxu0 }
 0x131   :  { %v3022_v48 = vpop.f32.mrb[12].mxu1  ;;  %v3011_v49 = vpop.f32.mrb[13].mxu0 }
 0x132   :  { %v3012_v50 = vadd.f32 %v3011_v49, %v3010_v47  ;;  %v3023_v51 = vpop.f32.mrb[13].mxu1  ;;  %v4849_v47 = vand.u32 127, %v853_v44 }
 0x133   :  { %v3024_v52 = vadd.f32 %v3023_v51, %v3022_v48 }
 0x134   :  { %v473_v53 = vadd.f32 %v3012_v50, %v378_v9  ;;  %v3013_v54 = vpop.f32.mrb[14].mxu0  ;;  %v859_v51 = vand.u32 31, %v4849_v47  ;;  %vm1662_vm4 = vcmp.lt.s32.totalorder %v4849_v47, 16  ;;  %v1835_v47 = vld [vmem:[%s5476_s13 + $0x60] sm:$0xff] }
 0x135   :  { %v493_v55 = vadd.f32 %v3024_v52, %v398_v41  ;;  %v3025_v56 = vpop.f32.mrb[14].mxu1  ;;  %v3014_v57 = vpop.f32.mrb[15].mxu0  ;;  %v715_v41 = vld [vmem:[%s5492_s24 + $0x38] sm:$0xff] }
 0x136   :  { %v3015_v60 = vadd.f32 %v3014_v57, %v3013_v54  ;;  %v3026_v62 = vpop.f32.mrb[15].mxu1  ;;  %3272 = vmatprep.mubr.msk.f32.mxu1 %vm509_vm0, %v473_v53  ;;  %vm4858_vm3 = vcmp.lt.s32.totalorder %v859_v51, 16 }
 0x137   :  { %v3027_v63 = vadd.f32 %v3026_v62, %v3025_v56 }
 0x138   :  { %v478_v0 = vadd.f32 %v3015_v60, %v383_v17  ;;  %v3016_v1 = vpop.f32.mrb[16].mxu0  ;;  %v4230_v17 = vmov 0.0|0.0  }
 0x139   :  { %v498_v3 = vadd.f32 %v3027_v63, %v403_v46  ;;  %v3017_v4 = vpop.f32.mrb[17].mxu0  ;;  %3864 = vmatprep.subr.bf16.mxu0 %v4230_v17 }
 0x13a   :  { %v3018_v5 = vadd.f32 %v3017_v4, %v3016_v1  ;;  %3273 = vmatmul.mubr.msk.f32.vlgmr.msra.gmra.mrb[16].mxu1 %vm509_vm0, %v478_v0  ;;  %3866 = vmatpush3.bf16.msra.mxu0 %v4788_v18 }
 0x13b   :  { %3843 = vmatpush3.bf16.msra.mxu1 %v4756_v61  ;;  %v708_v61 = vld [vmem:[%s5492_s24] sm:$0xff]  ;;  %3867 = vmatprep.subr.bf16.mxu0 %v4230_v17  ;;  %s4234_s24 = smov 32  }
 0x13c   :  { %v483_v6 = vadd.f32 %v3018_v5, %v388_v25  ;;  %v3019_v7 = vpop.f32.mrb[18].mxu0  ;;  %3845 = vmatprep.subr.bf16.mxu1 %v3844_v2 }
 0x13d   :  { %v3020_v8 = vpop.f32.mrb[19].mxu0 }
 0x13e   :  { %v501_v9 = vmax.f32 %v473_v53, %v483_v6  ;;  %v3021_v10 = vadd.f32 %v3020_v8, %v3019_v7  ;;  %3275 = vmatprep.mubr.msk.f32.mxu1 %vm509_vm0, %v483_v6  ;;  %3869 = vmatpush3.bf16.msra.mxu0 %v4798_v21 }
 0x13f   :  { %3847 = vmatpush3.bf16.msra.mxu1 %v3844_v2  ;;  %3870 = vmatprep.subr.bf16.mxu0 %v4230_v17 }
 0x140   :  { %v503_v11 = vmax.f32 %v501_v9, %v493_v55  ;;  %v488_v12 = vadd.f32 %v3021_v10, %v393_v33 }
 0x141   :  { %3329 = vmatmul.mubr.f32.vlgmr.msra.gmra.mrb[20].mxu0 %v4232_v22 }
 0x142   :  { %v502_v13 = vmax.f32 %v478_v0, %v488_v12  ;;  %3276 = vmatmul.mubr.msk.f32.gmra.mrb[18].mxu1 %vm509_vm0, %v488_v12  ;;  %3872 = vmatpush3.bf16.msra.mxu0 %v4788_v18 }
 0x143   :  { %3278 = vmatprep.mubr.msk.f32.mxu1 %vm509_vm0, %v493_v55  ;;  %3339 = vmatprep.mubr.msk.f32.mxu0 %vm4231_vm2, %v4232_v22 }
 0x144   :  { %v504_v14 = vmax.f32 %v502_v13, %v498_v3  ;;  %3873 = vmatprep.subr.bf16.mxu0 %v4230_v17 }
 0x146   :  { %3279 = vmatmul.mubr.msk.f32.gmra.mrb[20].mxu1 %vm509_vm0, %v498_v3  ;;  %3875 = vmatpush3.bf16.msra.mxu0 %v4798_v21 }
 0x147   :  { %3289 = vmatprep.mubr.msk.f32.mxu1 %vm509_vm0, %v503_v11  ;;  %3882 = vmatprep.subr.bf16.mxu0 %v4230_v17 }
 0x14a   :  { %3290 = vmatmul.mubr.msk.f32.vlgmr.msra.gmra.mrb[22].mxu1 %vm509_vm0, %v504_v14 }
 0x14b   :  { %3308 = vmatprep.mubr.msk.f32.mxu1 %vm723_vm1, %v708_v61 }
 0x20d   :  { %v3274_v23 = vpop.f32.mrb[16].mxu1 }
 0x20e   :  { %v594_v24 = vpop.f32.mrb[17].mxu1 }
 0x20f   :  { %v3848_v25 = vpack.c.bf16 %v3274_v23, %v594_v24 }
 0x211   :  { %3849 = vmatprep.subr.bf16.mxu1 %v3848_v25 }
 0x212   :  { %3851 = vmatpush3.bf16.msra.mxu1 %v3848_v25 }
 0x214   :  { %v949_v42 = vpop.f32.mrb[20].mxu0 }
 0x215   :  { %v3277_v26 = vpop.f32.mrb[18].mxu1  ;;  %v3330_v43 = vpop.f32.mrb[21].mxu0 }
 0x216   :  { %v604_v27 = vpop.f32.mrb[19].mxu1 }
 0x217   :  { %v3852_v28 = vpack.c.bf16 %v3277_v26, %v604_v27 }
 0x219   :  { %v3280_v29 = vpop.f32.mrb[20].mxu1  ;;  %3853 = vmatprep.subr.bf16.mxu1 %v3852_v28 }
 0x21a   :  { %v614_v30 = vpop.f32.mrb[21].mxu1  ;;  %3855 = vmatpush3.bf16.msra.mxu1 %v3852_v28 }
 0x21b   :  { %v3856_v31 = vpack.c.bf16 %v3280_v29, %v614_v30 }
 0x21d   :  { %v3291_v32 = vpop.f32.mrb[22].mxu1  ;;  %3857 = vmatprep.subr.bf16.mxu1 %v3856_v31 }
 0x21e   :  { %v699_v33 = vpop.f32.mrb[23].mxu1  ;;  %3859 = vmatpush3.bf16.msra.mxu1 %v3856_v31 }
 0x21f   :  { %v3860_v34 = vpack.c.bf16 %v3291_v32, %v699_v33 }
 0x221   :  { %3861 = vmatprep.subr.bf16.mxu1 %v3860_v34 }
 0x222   :  { %3863 = vmatpush3.bf16.msra.mxu1 %v3860_v34 }
 0x223   :  { %3876 = vmatprep.subr.bf16.mxu1 %v4230_v17 }
 0x225   :  { %3309 = vmatmul.mubr.msk.f32.vlgmr.msra.gmra.mrb[24].mxu1 %vm723_vm1, %v709_v35 }
 0x226   :  { %3311 = vmatprep.mubr.msk.f32.mxu1 %vm723_vm1, %v710_v36  ;;  %3878 = vmatpush3.bf16.msra.mxu1 %v4788_v18 }
 0x227   :  { %3879 = vmatprep.subr.bf16.mxu1 %v4230_v17 }
 0x229   :  { %3312 = vmatmul.mubr.msk.f32.gmra.mrb[26].mxu1 %vm723_vm1, %v711_v37 }
 0x22a   :  { %3314 = vmatprep.mubr.msk.f32.mxu1 %vm723_vm1, %v712_v38  ;;  %3881 = vmatpush3.bf16.msra.mxu1 %v4798_v21 }
 0x22b   :  { %3888 = vmatprep.subr.bf16.mxu1 %v4230_v17 }
 0x22d   :  { %3315 = vmatmul.mubr.msk.f32.gmra.mrb[28].mxu1 %vm723_vm1, %v713_v39 }
 0x22e   :  { %3317 = vmatprep.mubr.msk.f32.mxu1 %vm723_vm1, %v714_v40 }
 0x231   :  { %3318 = vmatmul.mubr.msk.f32.gmra.mrb[30].mxu1 %vm723_vm1, %v715_v41 }
 0x232   :  { %3350 = vmatprep.mubr.msk.f32.mxu1 %vm4231_vm2, %v4232_v22 }
 0x2f8   :  { %v3310_v46 = vpop.f32.mrb[24].mxu1 }
 0x2f9   :  { %v4851_v48 = vadd.f32 %v3310_v46, %v2828_v45  ;;  %v814_v49 = vpop.f32.mrb[25].mxu1 }
 0x2fa   :  { %v4882_v2 = vadd.f32 %v2828_v45, %v814_v49 }
 0x2fc   :  { %v3313_v50 = vpop.f32.mrb[26].mxu1 }
 0x2fd   :  { %v4854_v52 = vadd.f32 %v3313_v50, %v2828_v45  ;;  %v824_v53 = vpop.f32.mrb[27].mxu1 }
 0x2fe   :  { %v4856_v54 = vadd.f32 %v2828_v45, %v824_v53 }
 0x300   :  { %v3316_v55 = vpop.f32.mrb[28].mxu1 }
 0x301   :  { %v4862_v57 = vadd.f32 %v3316_v55, %v2828_v45  ;;  %v834_v58 = vpop.f32.mrb[29].mxu1 }
 0x302   :  { %v4864_v59 = vadd.f32 %v2828_v45, %v834_v58 }
 0x303   :  { %v870_v60 = vsel %vm4858_vm3, %v4856_v54, %v4862_v57  ;;  %v873_v62 = vsel %vm4858_vm3, %v4862_v57, %v4856_v54 }
 0x304   :  { %v3319_v63 = vpop.f32.mrb[30].mxu1  ;;  %v871_v0 = vsel %vm4858_vm3, %v4854_v52, %v4864_v59  ;;  %v872_v1 = vsel %vm4858_vm3, %v4864_v59, %v4854_v52 }
 0x305   :  { %v4884_v3 = vadd.f32 %v3319_v63, %v2828_v45  ;;  %v844_v4 = vpop.f32.mrb[31].mxu1 }
 0x306   :  { %v4886_v5 = vadd.f32 %v2828_v45, %v844_v4 }
 0x307   :  { %v868_v6 = vsel %vm4858_vm3, %v4882_v2, %v4884_v3  ;;  %v875_v7 = vsel %vm4858_vm3, %v4884_v3, %v4882_v2  ;;  %v1682_v2 = vld [vmem:[%s5473_s10] sm:$0xff]  ;;  %v1683_v3 = vld [vmem:[%s5473_s10 + $0x8] sm:$0xff] }
 0x308   :  { %v953_v8 = vadd.f32 %v949_v42, %v868_v6  ;;  %v869_v9 = vsel %vm4858_vm3, %v4851_v48, %v4886_v5  ;;  %v874_v10 = vsel %vm4858_vm3, %v4886_v5, %v4851_v48 }
 0x30a   :  { %4153 = vtanh.f32 %v953_v8  ;;  %v954_v12 = vmul.f32 0.5, %v953_v8 }
 0x30c   :  { %4155 = vtanh.f32 %v954_v12 }
 0x314   :  { %v4154_v11 = vpop.eup %4153 }
 0x315   :  { %961 = vrot.lane.b32.xlu0 %v4154_v11, %s4233_s8 }
 0x316   :  { %v4156_v13 = vpop.eup %4155 }
 0x317   :  { %v956_v14 = vadd.f32 1.0, %v4156_v13 }
 0x319   :  { %v957_v61 = vmul.f32 0.5, %v956_v14 }
 0x31b   :  { %v959_v19 = vmul.f32 0.0, %v957_v61 }
 0x387   :  { %v962_v15 = vpop.permute.xlu0 %961 }
 0x388   :  { %v964_v16 = vmul.f32 %v962_v15, %v957_v61 }
 0x38a   :  { %966 = vrot.lane.b32.xlu0 %v964_v16, %s4234_s24 }
 0x3fc   :  { %v967_v20 = vpop.permute.xlu0 %966 }
 0x3fd   :  { %v969_v23 = vadd.f32 %v967_v20, %v959_v19 }
 0x3ff   :  { %4157 = vtanh.f32 %v969_v23 }
 0x409   :  { %v4158_v24 = vpop.eup %4157 }
 0x40a   :  { %972 = vrot.lane.b32.xlu1 %v4158_v24, %s4233_s8 }
 0x47c   :  { %v973_v25 = vpop.permute.xlu1 %972 }
 0x47d   :  { %v975_v26 = vmul.f32 %v973_v25, %v957_v61 }
 0x47f   :  { %977 = vrot.lane.b32.xlu1 %v975_v26, %s4234_s24 }
 0x4f1   :  { %v4908_v27 = vpop.permute.xlu1 %977 }
 0x4f2   :  { %3340 = vmatmul.mubr.msk.f32.vlgmr.msra.gmra.mrb[22].mxu0 %vm509_vm0, %v4908_v27 }
 0x4f3   :  { %3884 = vmatpush3.bf16.msra.mxu0 %v4788_v18  ;;  %3361 = vmatprep.mubr.msk.f32.mxu0 %vm4231_vm2, %v4232_v22 }
 0x4f4   :  { %3885 = vmatprep.subr.bf16.mxu0 %v4230_v17 }
 0x4f7   :  { %3887 = vmatpush3.bf16.msra.mxu0 %v4798_v21 }
 0x4f8   :  { %3894 = vmatprep.subr.bf16.mxu0 %v4230_v17 }
 0x5c5   :  { %v1047_v28 = vpop.f32.mrb[22].mxu0 }
 0x5c6   :  { %v1051_v29 = vadd.f32 %v1047_v28, %v869_v9  ;;  %v3341_v30 = vpop.f32.mrb[23].mxu0 }
 0x5c8   :  { %4159 = vtanh.f32 %v1051_v29  ;;  %v1052_v32 = vmul.f32 0.5, %v1051_v29 }
 0x5ca   :  { %4161 = vtanh.f32 %v1052_v32 }
 0x5d2   :  { %v4160_v31 = vpop.eup %4159 }
 0x5d3   :  { %1059 = vrot.lane.b32.xlu0 %v4160_v31, %s4233_s8 }
 0x5d4   :  { %v4162_v33 = vpop.eup %4161 }
 0x5d5   :  { %v1054_v34 = vadd.f32 1.0, %v4162_v33 }
 0x5d7   :  { %v1055_v35 = vmul.f32 0.5, %v1054_v34 }
 0x5d9   :  { %v1057_v38 = vmul.f32 %v1055_v35, %v969_v23 }
 0x645   :  { %v1060_v36 = vpop.permute.xlu0 %1059 }
 0x646   :  { %v1062_v37 = vmul.f32 %v1060_v36, %v1055_v35 }
 0x648   :  { %1064 = vrot.lane.b32.xlu1 %v1062_v37, %s4234_s24 }
 0x6ba   :  { %v1065_v39 = vpop.permute.xlu1 %1064 }
 0x6bb   :  { %v1067_v40 = vadd.f32 %v1065_v39, %v1057_v38 }
 0x6bd   :  { %4163 = vtanh.f32 %v1067_v40 }
 0x6c7   :  { %v4164_v41 = vpop.eup %4163 }
 0x6c8   :  { %1070 = vrot.lane.b32.xlu0 %v4164_v41, %s4233_s8 }
 0x73a   :  { %v1071_v42 = vpop.permute.xlu0 %1070 }
 0x73b   :  { %v1073_v43 = vmul.f32 %v1071_v42, %v1055_v35 }
 0x73d   :  { %1075 = vrot.lane.b32.xlu1 %v1073_v43, %s4234_s24 }
 0x7af   :  { %v4922_v44 = vpop.permute.xlu1 %1075 }
 0x7b0   :  { %3351 = vmatmul.mubr.msk.f32.vlgmr.msra.gmra.mrb[32].mxu1 %vm509_vm0, %v4922_v44 }
 0x7b1   :  { %3890 = vmatpush3.bf16.msra.mxu1 %v4788_v18  ;;  %3372 = vmatprep.mubr.msk.f32.mxu1 %vm4231_vm2, %v4232_v22 }
 0x7b2   :  { %3891 = vmatprep.subr.bf16.mxu1 %v4230_v17 }
 0x7b5   :  { %3893 = vmatpush3.bf16.msra.mxu1 %v4798_v21 }
 0x7b6   :  { %3900 = vmatprep.subr.bf16.mxu1 %v4230_v17 }
 0x883   :  { %v1145_v45 = vpop.f32.mrb[32].mxu1 }
 0x884   :  { %v1149_v46 = vadd.f32 %v1145_v45, %v870_v60  ;;  %v3352_v49 = vpop.f32.mrb[33].mxu1 }
 0x886   :  { %4165 = vtanh.f32 %v1149_v46  ;;  %v1150_v51 = vmul.f32 0.5, %v1149_v46 }
 0x888   :  { %4167 = vtanh.f32 %v1150_v51 }
 0x890   :  { %v4166_v50 = vpop.eup %4165 }
 0x891   :  { %1157 = vrot.lane.b32.xlu0 %v4166_v50, %s4233_s8 }
 0x892   :  { %v4168_v53 = vpop.eup %4167 }
 0x893   :  { %v1152_v55 = vadd.f32 1.0, %v4168_v53 }
 0x895   :  { %v1153_v58 = vmul.f32 0.5, %v1152_v55 }
 0x897   :  { %v1155_v6 = vmul.f32 %v1153_v58, %v1067_v40 }
 0x903   :  { %v1158_v63 = vpop.permute.xlu0 %1157 }
 0x904   :  { %v1160_v4 = vmul.f32 %v1158_v63, %v1153_v58 }
 0x906   :  { %1162 = vrot.lane.b32.xlu1 %v1160_v4, %s4234_s24 }
 0x978   :  { %v1163_v8 = vpop.permute.xlu1 %1162 }
 0x979   :  { %v1165_v9 = vadd.f32 %v1163_v8, %v1155_v6 }
 0x97b   :  { %4169 = vtanh.f32 %v1165_v9 }
 0x985   :  { %v4170_v11 = vpop.eup %4169 }
 0x986   :  { %1168 = vrot.lane.b32.xlu0 %v4170_v11, %s4233_s8 }
 0x9f8   :  { %v1169_v60 = vpop.permute.xlu0 %1168 }
 0x9f9   :  { %v1171_v12 = vmul.f32 %v1169_v60, %v1153_v58 }
 0x9fb   :  { %1173 = vrot.lane.b32.xlu1 %v1171_v12, %s4234_s24 }
 0xa6d   :  { %v4941_v13 = vpop.permute.xlu1 %1173 }
 0xa6e   :  { %3362 = vmatmul.mubr.msk.f32.vlgmr.msra.gmra.mrb[24].mxu0 %vm509_vm0, %v4941_v13 }
 0xa6f   :  { %3896 = vmatpush3.bf16.msra.mxu0 %v4788_v18  ;;  %3383 = vmatprep.mubr.msk.f32.mxu0 %vm4231_vm2, %v4232_v22 }
 0xa70   :  { %3897 = vmatprep.subr.bf16.mxu0 %v4230_v17 }
 0xa73   :  { %3899 = vmatpush3.bf16.msra.mxu0 %v4798_v21 }
 0xa74   :  { %3906 = vmatprep.subr.bf16.mxu0 %v4230_v17 }
 0xb41   :  { %v1243_v14 = vpop.f32.mrb[24].mxu0 }
 0xb42   :  { %v1247_v61 = vadd.f32 %v1243_v14, %v871_v0  ;;  %v3363_v15 = vpop.f32.mrb[25].mxu0 }
 0xb44   :  { %4171 = vtanh.f32 %v1247_v61  ;;  %v1248_v19 = vmul.f32 0.5, %v1247_v61 }
 0xb46   :  { %4173 = vtanh.f32 %v1248_v19 }
 0xb4e   :  { %v4172_v16 = vpop.eup %4171 }
 0xb4f   :  { %1255 = vrot.lane.b32.xlu0 %v4172_v16, %s4233_s8 }
 0xb50   :  { %v4174_v20 = vpop.eup %4173 }
 0xb51   :  { %v1250_v23 = vadd.f32 1.0, %v4174_v20 }
 0xb53   :  { %v1251_v24 = vmul.f32 0.5, %v1250_v23 }
 0xb55   :  { %v1253_v28 = vmul.f32 %v1251_v24, %v1165_v9 }
 0xbc1   :  { %v1256_v25 = vpop.permute.xlu0 %1255 }
 0xbc2   :  { %v1258_v26 = vmul.f32 %v1256_v25, %v1251_v24 }
 0xbc4   :  { %1260 = vrot.lane.b32.xlu1 %v1258_v26, %s4234_s24 }
 0xc36   :  { %v1261_v29 = vpop.permute.xlu1 %1260 }
 0xc37   :  { %v1263_v30 = vadd.f32 %v1261_v29, %v1253_v28 }
 0xc39   :  { %4175 = vtanh.f32 %v1263_v30 }
 0xc43   :  { %v4176_v31 = vpop.eup %4175 }
 0xc44   :  { %1266 = vrot.lane.b32.xlu0 %v4176_v31, %s4233_s8 }
 0xcb6   :  { %v1267_v0 = vpop.permute.xlu0 %1266 }
 0xcb7   :  { %v1269_v32 = vmul.f32 %v1267_v0, %v1251_v24 }
 0xcb9   :  { %1271 = vrot.lane.b32.xlu1 %v1269_v32, %s4234_s24 }
 0xd2b   :  { %v4960_v33 = vpop.permute.xlu1 %1271 }
 0xd2c   :  { %3373 = vmatmul.mubr.msk.f32.vlgmr.msra.gmra.mrb[34].mxu1 %vm509_vm0, %v4960_v33 }
 0xd2d   :  { %3902 = vmatpush3.bf16.msra.mxu1 %v4788_v18  ;;  %3394 = vmatprep.mubr.msk.f32.mxu1 %vm4231_vm2, %v4232_v22 }
 0xd2e   :  { %3903 = vmatprep.subr.bf16.mxu1 %v4230_v17 }
 0xd31   :  { %3905 = vmatpush3.bf16.msra.mxu1 %v4798_v21 }
 0xdff   :  { %v1341_v34 = vpop.f32.mrb[34].mxu1 }
 0xe00   :  { %v1345_v35 = vadd.f32 %v1341_v34, %v872_v1  ;;  %v3374_v36 = vpop.f32.mrb[35].mxu1 }
 0xe02   :  { %4177 = vtanh.f32 %v1345_v35  ;;  %v1346_v38 = vmul.f32 0.5, %v1345_v35 }
 0xe04   :  { %4179 = vtanh.f32 %v1346_v38 }
 0xe0c   :  { %v4178_v37 = vpop.eup %4177 }
 0xe0d   :  { %1353 = vrot.lane.b32.xlu0 %v4178_v37, %s4233_s8 }
 0xe0e   :  { %v4180_v39 = vpop.eup %4179 }
 0xe0f   :  { %v1348_v40 = vadd.f32 1.0, %v4180_v39 }
 0xe11   :  { %v1349_v41 = vmul.f32 0.5, %v1348_v40 }
 0xe13   :  { %v1351_v45 = vmul.f32 %v1349_v41, %v1263_v30 }
 0xe7f   :  { %v1354_v42 = vpop.permute.xlu0 %1353 }
 0xe80   :  { %v1356_v43 = vmul.f32 %v1354_v42, %v1349_v41 }
 0xe82   :  { %1358 = vrot.lane.b32.xlu1 %v1356_v43, %s4234_s24 }
 0xef4   :  { %v1359_v46 = vpop.permute.xlu1 %1358 }
 0xef5   :  { %v1361_v49 = vadd.f32 %v1359_v46, %v1351_v45  ;;  %v3912_v45 = vpack.c.bf16 %v1683_v3, %v1682_v2  ;;  %v1685_v46 = vld [vmem:[%s5473_s10 + $0x18] sm:$0xff] }
 0xef7   :  { %4181 = vtanh.f32 %v1361_v49  ;;  %3913 = vmatprep.subr.bf16.mxu1 %v3912_v45 }
 0xf01   :  { %v4182_v52 = vpop.eup %4181 }
 0xf02   :  { %1364 = vrot.lane.b32.xlu0 %v4182_v52, %s4233_s8 }
 0xf74   :  { %v1365_v59 = vpop.permute.xlu0 %1364 }
 0xf75   :  { %v1367_v1 = vmul.f32 %v1365_v59, %v1349_v41 }
 0xf77   :  { %1369 = vrot.lane.b32.xlu1 %v1367_v1, %s4234_s24 }
 0xfe9   :  { %v4978_v50 = vpop.permute.xlu1 %1369 }
 0xfea   :  { %3384 = vmatmul.mubr.msk.f32.vlgmr.msra.gmra.mrb[26].mxu0 %vm509_vm0, %v4978_v50 }
 0xfeb   :  { %3908 = vmatpush3.bf16.msra.mxu0 %v4788_v18  ;;  %3405 = vmatprep.mubr.msk.f32.mxu0 %vm4231_vm2, %v4232_v22 }
 0xfec   :  { %3909 = vmatprep.subr.bf16.mxu0 %v4230_v17 }
 0xfef   :  { %3911 = vmatpush3.bf16.msra.mxu0 %v4798_v21 }
 0xff0   :  { %3920 = vmatprep.subr.bf16.mxu0 %v4230_v17 }
0x10bd   :  { %v1439_v51 = vpop.f32.mrb[26].mxu0 }
0x10be   :  { %v1443_v53 = vadd.f32 %v1439_v51, %v873_v62  ;;  %v3385_v55 = vpop.f32.mrb[27].mxu0  ;;  %v5041_v51 = vld [vmem:[%s5495_s5] sm:$0xff] }
0x10bf   :  { %v1824_v55 = vld [vmem:[%s5476_s13 + $0x8] sm:$0xff] }
0x10c0   :  { %4183 = vtanh.f32 %v1443_v53  ;;  %v1444_v18 = vmul.f32 0.5, %v1443_v53  ;;  %v1823_v53 = vld [vmem:[%s5476_s13] sm:$0xff] }
0x10c2   :  { %4185 = vtanh.f32 %v1444_v18  ;;  %v5049_v18 = vpack.c.bf16 %v1824_v55, %v1823_v53  ;;  %v5231_v55 = vld [vmem:[%s5478_s15] ss:$0 sm:$0xff]  ;;  %s2857_s15 = sld [smem:[#allocation3 + $0x1]] }
0x10c8   :  { %s2060_s30 = scvt.s32.f32 %s2857_s15 }
0x10ca   :  { %v4184_v58 = vpop.eup %4183  ;;  %s2065_s20 = ssub.f32 1.0, %s2060_s30 }
0x10cb   :  { %1451 = vrot.lane.b32.xlu0 %v4184_v58, %s4233_s8  ;;  %v4235_v58 = vmov 0  }
0x10cc   :  { %v4186_v63 = vpop.eup %4185  ;;  %4151 = vset.pattern.permute.xlu0 %v4235_v58  ;;  %4152 = vset.pattern.permute.xlu1 %v4235_v58 }
0x10cd   :  { %v1446_v4 = vadd.f32 1.0, %v4186_v63  ;;  %v1825_v63 = vld [vmem:[%s5476_s13 + $0x10] sm:$0xff] }
0x10cf   :  { %v1447_v6 = vmul.f32 0.5, %v1446_v4  ;;  %v1826_v4 = vld [vmem:[%s5476_s13 + $0x18] sm:$0xff] }
0x10d1   :  { %v1449_v9 = vmul.f32 %v1447_v6, %v1361_v49 }
0x113d   :  { %v1452_v21 = vpop.permute.xlu0 %1451 }
0x113e   :  { %v1454_v8 = vmul.f32 %v1452_v21, %v1447_v6  ;;  %v1827_v21 = vld [vmem:[%s5476_s13 + $0x20] sm:$0xff] }
0x1140   :  { %1456 = vrot.lane.b32.xlu1 %v1454_v8, %s4234_s24  ;;  %v1828_v8 = vld [vmem:[%s5476_s13 + $0x28] sm:$0xff] }
0x11b2   :  { %v1457_v11 = vpop.permute.xlu1 %1456 }
0x11b3   :  { %v1459_v60 = vadd.f32 %v1457_v11, %v1449_v9  ;;  %v5069_v9 = vpack.c.bf16 %v1828_v8, %v1827_v21  ;;  %v1829_v11 = vld [vmem:[%s5476_s13 + $0x30] sm:$0xff]  ;;  %v5238_v21 = vld [vmem:[#allocation2] ss:$0 sm:$0xff] }
0x11b5   :  { %4187 = vtanh.f32 %v1459_v60 }
0x11bf   :  { %v4188_v54 = vpop.eup %4187 }
0x11c0   :  { %1462 = vrot.lane.b32.xlu0 %v4188_v54, %s4233_s8 }
0x1232   :  { %v1463_v57 = vpop.permute.xlu0 %1462 }
0x1233   :  { %v1465_v62 = vmul.f32 %v1463_v57, %v1447_v6  ;;  %v5059_v6 = vpack.c.bf16 %v1826_v4, %v1825_v63  ;;  %v1831_v57 = vld [vmem:[%s5476_s13 + $0x40] sm:$0xff] }
0x1235   :  { %1467 = vrot.lane.b32.xlu1 %v1465_v62, %s4234_s24  ;;  %v1832_v62 = vld [vmem:[%s5476_s13 + $0x48] sm:$0xff] }
0x12a7   :  { %v4997_v12 = vpop.permute.xlu1 %1467 }
0x12a8   :  { %3395 = vmatmul.mubr.msk.f32.vlgmr.msra.gmra.mrb[36].mxu1 %vm509_vm0, %v4997_v12 }
0x12a9   :  { %3915 = vmatpush3.bf16.msra.mxu1 %v3912_v45 }
0x137b   :  { %v1537_v14 = vpop.f32.mrb[36].mxu1 }
0x137c   :  { %v1541_v61 = vadd.f32 %v1537_v14, %v874_v10  ;;  %v3396_v15 = vpop.f32.mrb[37].mxu1  ;;  %v5089_v14 = vpack.c.bf16 %v1832_v62, %v1831_v57 }
0x137d   :  { %v1834_v15 = vld [vmem:[%s5476_s13 + $0x58] sm:$0xff] }
0x137e   :  { %4189 = vtanh.f32 %v1541_v61  ;;  %v1542_v19 = vmul.f32 0.5, %v1541_v61  ;;  %v1833_v61 = vld [vmem:[%s5476_s13 + $0x50] sm:$0xff] }
0x1380   :  { %4191 = vtanh.f32 %v1542_v19 }
0x1388   :  { %v4190_v16 = vpop.eup %4189 }
0x1389   :  { %1549 = vrot.lane.b32.xlu0 %v4190_v16, %s4233_s8  ;;  %v5099_v16 = vpack.c.bf16 %v1834_v15, %v1833_v61 }
0x138a   :  { %v4192_v20 = vpop.eup %4191 }
0x138b   :  { %v1544_v23 = vadd.f32 1.0, %v4192_v20 }
0x138d   :  { %v1545_v24 = vmul.f32 0.5, %v1544_v23 }
0x138f   :  { %v1547_v28 = vmul.f32 %v1545_v24, %v1459_v60  ;;  %v1830_v60 = vld [vmem:[%s5476_s13 + $0x38] sm:$0xff] }
0x1390   :  { %v5079_v54 = vpack.c.bf16 %v1830_v60, %v1829_v11 }
0x13fb   :  { %v1550_v25 = vpop.permute.xlu0 %1549 }
0x13fc   :  { %v1552_v26 = vmul.f32 %v1550_v25, %v1545_v24  ;;  %v1677_v25 = vsel %vm1662_vm4, %v4960_v33, %v4978_v50 }
0x13fe   :  { %1554 = vrot.lane.b32.xlu1 %v1552_v26, %s4234_s24  ;;  %v1678_v26 = vsel %vm1662_vm4, %v4978_v50, %v4960_v33  ;;  %v1838_v50 = vld [vmem:[%s5476_s13 + $0x78] sm:$0xff] }
0x1470   :  { %v1555_v29 = vpop.permute.xlu1 %1554 }
0x1471   :  { %v1557_v30 = vadd.f32 %v1555_v29, %v1547_v28  ;;  %v1679_v28 = vsel %vm1662_vm4, %v4997_v12, %v4941_v13 }
0x1473   :  { %4193 = vtanh.f32 %v1557_v30 }
0x147d   :  { %v4194_v48 = vpop.eup %4193 }
0x147e   :  { %1560 = vrot.lane.b32.xlu0 %v4194_v48, %s4233_s8 }
0x14f0   :  { %v1561_v5 = vpop.permute.xlu0 %1560 }
0x14f1   :  { %v1563_v10 = vmul.f32 %v1561_v5, %v1545_v24  ;;  %v1674_v24 = vsel %vm1662_vm4, %v4941_v13, %v4997_v12  ;;  %v1837_v13 = vld [vmem:[%s5476_s13 + $0x70] sm:$0xff]  ;;  %v2844_v5 = vld [vmem:[%s5474_s11] ss:$0 sm:$0xff]  ;;  %s2865_s11 = sld [smem:[#allocation3 + $0x5]] }
0x14f2   :  { %v5175_v12 = vpack.c.bf16 %v1838_v50, %v1837_v13 }
0x14f3   :  { %1565 = vrot.lane.b32.xlu1 %v1563_v10, %s4234_s24 }
0x1565   :  { %v5010_v31 = vpop.permute.xlu1 %1565 }
0x1566   :  { %3406 = vmatmul.mubr.msk.f32.vlgmr.msra.gmra.mrb[28].mxu0 %vm509_vm0, %v5010_v31  ;;  %v1671_v23 = vsel %vm1662_vm4, %v4922_v44, %v5010_v31  ;;  %v1680_v29 = vsel %vm1662_vm4, %v5010_v31, %v4922_v44 }
0x1567   :  { %3460 = vmatprep.mubr.msk.f32.mxu0 %vm4231_vm2, %v4232_v22  ;;  %3922 = vmatpush3.bf16.msra.mxu0 %v5049_v18 }
0x1568   :  { %3923 = vmatprep.subr.bf16.mxu0 %v4230_v17 }
0x156b   :  { %3925 = vmatpush3.bf16.msra.mxu0 %v5059_v6 }
0x156c   :  { %3926 = vmatprep.subr.bf16.mxu0 %v4230_v17 }
0x156f   :  { %3928 = vmatpush3.bf16.msra.mxu0 %v5069_v9 }
0x1570   :  { %3929 = vmatprep.subr.bf16.mxu0 %v4230_v17 }
0x1573   :  { %3931 = vmatpush3.bf16.msra.mxu0 %v5079_v54 }
0x1574   :  { %3932 = vmatprep.subr.bf16.mxu0 %v4230_v17 }
0x1577   :  { %3934 = vmatpush3.bf16.msra.mxu0 %v5089_v14 }
0x1578   :  { %3935 = vmatprep.subr.bf16.mxu0 %v4230_v17 }
0x157b   :  { %3937 = vmatpush3.bf16.msra.mxu0 %v5099_v16 }
0x157c   :  { %3938 = vmatprep.subr.bf16.mxu0 %v4230_v17 }
0x1639   :  { %v1635_v0 = vpop.f32.mrb[28].mxu0 }
0x163a   :  { %v1639_v32 = vadd.f32 %v1635_v0, %v875_v7  ;;  %v3407_v34 = vpop.f32.mrb[29].mxu0  ;;  %v1684_v7 = vld [vmem:[%s5473_s10 + $0x10] sm:$0xff]  ;;  %s2162_s10 = scvt.s32.f32 %s2859_s22 }
0x163b   :  { %v3916_v49 = vpack.c.bf16 %v1685_v46, %v1684_v7 }
0x163c   :  { %4195 = vtanh.f32 %v1639_v32  ;;  %v1640_v36 = vmul.f32 0.5, %v1639_v32  ;;  %s2167_s6 = ssub.f32 1.0, %s2162_s10 }
0x163d   :  { %3917 = vmatprep.subr.bf16.mxu1 %v3916_v49 }
0x163e   :  { %4197 = vtanh.f32 %v1640_v36  ;;  %3919 = vmatpush3.bf16.msra.mxu1 %v3916_v49  ;;  %v5225_v49 = vld [vmem:[%s5477_s14] ss:$0 sm:$0xff]  ;;  %s1959_s14 = sld [smem:[#allocation3]] }
0x163f   :  { %3944 = vmatprep.subr.bf16.mxu1 %v4230_v17 }
0x1644   :  { %s1960_s25 = scvt.s32.f32 %s1959_s14 }
0x1646   :  { %v4196_v35 = vpop.eup %4195  ;;  %s1963_s9 = ssub.f32 1.0, %s1960_s25  ;;  %v1961_v62 = vstv %s1960_s25 }
0x1647   :  { %1647 = vrot.lane.b32.xlu0 %v4196_v35, %s4233_s8 }
0x1648   :  { %v4198_v37 = vpop.eup %4197  ;;  %v1964_v15 = vstv %s1963_s9  ;;  %s2867_s9 = sld [smem:[#allocation3 + $0x6]] }
0x1649   :  { %v1642_v38 = vadd.f32 1.0, %v4198_v37 }
0x164b   :  { %v1643_v39 = vmul.f32 0.5, %v1642_v38 }
0x164d   :  { %v1645_v42 = vmul.f32 %v1643_v39, %v1557_v30  ;;  %v5184_v30 = vld [vmem:[%s5475_s12] ss:$0 sm:$0xff]  ;;  %s2468_s12 = scvt.s32.f32 %s2865_s11 }
0x164e   :  { %s2570_s15 = scvt.s32.f32 %s2867_s9 }
0x164f   :  { %s2473_s29 = ssub.f32 1.0, %s2468_s12 }
0x16b9   :  { %v1648_v40 = vpop.permute.xlu0 %1647 }
0x16ba   :  { %v1650_v41 = vmul.f32 %v1648_v40, %v1643_v39 }
0x16bc   :  { %1652 = vrot.lane.b32.xlu1 %v1650_v41, %s4234_s24 }
0x172e   :  { %v1653_v56 = vpop.permute.xlu1 %1652 }
0x172f   :  { %v1655_v43 = vadd.f32 %v1653_v56, %v1645_v42 }
0x1731   :  { %4199 = vtanh.f32 %v1655_v43 }
0x173b   :  { %v4200_v52 = vpop.eup %4199 }
0x173c   :  { %1658 = vrot.lane.b32.xlu0 %v4200_v52, %s4233_s8  ;;  %s2366_s8 = scvt.s32.f32 %s2863_s27 }
0x1740   :  { %1845 = vperm.xlu0 %4151, %v5041_v51  }
0x17ae   :  { %v1659_v59 = vpop.permute.xlu0 %1658 }
0x17af   :  { %v1661_v1 = vmul.f32 %v1659_v59, %v1643_v39 }
0x17b1   :  { %1665 = vrot.lane.b32.xlu1 %v1661_v1, %s4234_s24  ;;  %s2371_s24 = ssub.f32 1.0, %s2366_s8 }
0x17bf   :  { %v1846_v48 = vpop.permute.xlu0 %1845 }
0x17c0   :  { %v1854_v31 = vmul.f32 %v5184_v30, %v1846_v48 }
0x1823   :  { %v1666_v19 = vpop.permute.xlu1 %1665 }
0x1824   :  { %v1668_v20 = vsel %vm1662_vm4, %v4908_v27, %v1666_v19  ;;  %v1681_v33 = vsel %vm1662_vm4, %v1666_v19, %v4908_v27  ;;  %v1836_v27 = vld [vmem:[%s5476_s13 + $0x68] sm:$0xff]  ;;  %v1962_v19 = vmul.f32 %v1961_v62, %v5041_v51 }
0x1825   :  { %3416 = vmatprep.mubr.msk.f32.mxu1 %vm509_vm0, %v1668_v20  ;;  %v5163_v44 = vpack.c.bf16 %v1836_v27, %v1835_v47 }
0x1826   :  { %3417 = vmatmul.mubr.msk.f32.vlgmr.msra.gmra.mrb[38].mxu1 %vm509_vm0, %v1671_v23 }
0x1827   :  { %3419 = vmatprep.mubr.msk.f32.mxu1 %vm509_vm0, %v1674_v24  ;;  %3946 = vmatpush3.bf16.msra.mxu1 %v5049_v18 }
0x1828   :  { %3947 = vmatprep.subr.bf16.mxu1 %v4230_v17  ;;  %3940 = vmatpush3.bf16.msra.mxu0 %v5163_v44 }
0x1829   :  { %3941 = vmatprep.subr.bf16.mxu0 %v4230_v17 }
0x182a   :  { %3420 = vmatmul.mubr.msk.f32.gmra.mrb[40].mxu1 %vm509_vm0, %v1677_v25 }
0x182b   :  { %3422 = vmatprep.mubr.msk.f32.mxu1 %vm509_vm0, %v1678_v26  ;;  %3949 = vmatpush3.bf16.msra.mxu1 %v5059_v6 }
0x182c   :  { %3950 = vmatprep.subr.bf16.mxu1 %v4230_v17  ;;  %3943 = vmatpush3.bf16.msra.mxu0 %v5175_v12 }
0x182d   :  { %3968 = vmatprep.subr.bf16.mxu0 %v4230_v17 }
0x182e   :  { %3423 = vmatmul.mubr.msk.f32.gmra.mrb[42].mxu1 %vm509_vm0, %v1679_v28 }
0x182f   :  { %3425 = vmatprep.mubr.msk.f32.mxu1 %vm509_vm0, %v1680_v29  ;;  %3952 = vmatpush3.bf16.msra.mxu1 %v5069_v9 }
0x1830   :  { %3953 = vmatprep.subr.bf16.mxu1 %v4230_v17 }
0x1832   :  { %3426 = vmatmul.mubr.msk.f32.gmra.mrb[44].mxu1 %vm509_vm0, %v1681_v33 }
0x1833   :  { %3955 = vmatpush3.bf16.msra.mxu1 %v5079_v54  ;;  %3495 = vmatprep.mubr.msk.f32.mxu1 %vm4231_vm2, %v4232_v22 }
0x1834   :  { %3956 = vmatprep.subr.bf16.mxu1 %v4230_v17 }
0x1837   :  { %3958 = vmatpush3.bf16.msra.mxu1 %v5089_v14 }
0x1838   :  { %3959 = vmatprep.subr.bf16.mxu1 %v4230_v17 }
0x183b   :  { %3961 = vmatpush3.bf16.msra.mxu1 %v5099_v16 }
0x183c   :  { %3962 = vmatprep.subr.bf16.mxu1 %v4230_v17 }
0x183f   :  { %3964 = vmatpush3.bf16.msra.mxu1 %v5163_v44 }
0x1840   :  { %3965 = vmatprep.subr.bf16.mxu1 %v4230_v17 }
0x1843   :  { %3967 = vmatpush3.bf16.msra.mxu1 %v5175_v12 }
0x1844   :  { %3992 = vmatprep.subr.bf16.mxu1 %v4230_v17 }
0x18f9   :  { %v3418_v10 = vpop.f32.mrb[38].mxu1 }
0x18fa   :  { %v5190_v0 = vadd.f32 %v3418_v10, %v2844_v5  ;;  %v1783_v32 = vpop.f32.mrb[39].mxu1 }
0x18fb   :  { %v1784_v34 = vadd.f32 %v2844_v5, %v1783_v32 }
0x18fd   :  { %v1855_v35 = vadd.f32 %v1854_v31, %v1784_v34  ;;  %v3421_v36 = vpop.f32.mrb[40].mxu1  ;;  %v2858_v34 = vld [vmem:[%s5495_s5 + $0x8] sm:$0xff] }
0x18fe   :  { %v5192_v37 = vadd.f32 %v3421_v36, %v2844_v5  ;;  %v1793_v38 = vpop.f32.mrb[41].mxu1 }
0x18ff   :  { %v1857_v39 = vmul.f32 0.01, %v1855_v35  ;;  %v5194_v40 = vadd.f32 %v2844_v5, %v1793_v38  ;;  %vm1856_vm5 = vcmp.gt.f32.partialorder %v1855_v35, 0.0  ;;  %v2066_v38 = vstv %s2065_s20 }
0x1901   :  { %v3424_v41 = vpop.f32.mrb[42].mxu1  ;;  %v1858_v42 = vsel %vm1856_vm5, %v1855_v35, %v1857_v39  ;;  %v2063_v35 = vstv %s2060_s30  ;;  %s2575_s30 = ssub.f32 1.0, %s2570_s15 }
0x1902   :  { %v5196_v56 = vadd.f32 %v3424_v41, %v2844_v5  ;;  %v1803_v43 = vpop.f32.mrb[43].mxu1  ;;  %3461 = vmatmul.mubr.f32.vlgmr.msra.gmra.mrb[30].mxu0 %v1858_v42  ;;  %v2064_v41 = vmul.f32 %v2858_v34, %v2063_v35 }
0x1903   :  { %v5198_v2 = vadd.f32 %v2844_v5, %v1803_v43  ;;  %3970 = vmatpush3.bf16.msra.mxu0 %v5049_v18  ;;  %3530 = vmatprep.mubr.msk.f32.mxu0 %vm4231_vm2, %v4232_v22 }
0x1904   :  { %3971 = vmatprep.subr.bf16.mxu0 %v4230_v17 }
0x1905   :  { %v3427_v3 = vpop.f32.mrb[44].mxu1 }
0x1906   :  { %v5204_v7 = vadd.f32 %v3427_v3, %v2844_v5  ;;  %v1813_v45 = vpop.f32.mrb[45].mxu1 }
0x1907   :  { %v5206_v46 = vadd.f32 %v2844_v5, %v1813_v45  ;;  %3973 = vmatpush3.bf16.msra.mxu0 %v5059_v6 }
0x1908   :  { %3974 = vmatprep.subr.bf16.mxu0 %v4230_v17 }
0x190b   :  { %3976 = vmatpush3.bf16.msra.mxu0 %v5069_v9 }
0x190c   :  { %3977 = vmatprep.subr.bf16.mxu0 %v4230_v17 }
0x190f   :  { %3979 = vmatpush3.bf16.msra.mxu0 %v5079_v54 }
0x1910   :  { %3980 = vmatprep.subr.bf16.mxu0 %v4230_v17 }
0x1913   :  { %3982 = vmatpush3.bf16.msra.mxu0 %v5089_v14 }
0x1914   :  { %3983 = vmatprep.subr.bf16.mxu0 %v4230_v17 }
0x1917   :  { %3985 = vmatpush3.bf16.msra.mxu0 %v5099_v16 }
0x1918   :  { %3986 = vmatprep.subr.bf16.mxu0 %v4230_v17 }
0x191b   :  { %3988 = vmatpush3.bf16.msra.mxu0 %v5163_v44 }
0x191c   :  { %3989 = vmatprep.subr.bf16.mxu0 %v4230_v17 }
0x191f   :  { %3991 = vmatpush3.bf16.msra.mxu0 %v5175_v12 }
0x1920   :  { %4016 = vmatprep.subr.bf16.mxu0 %v4230_v17 }
0x19d5   :  { %v1931_v52 = vpop.f32.mrb[30].mxu0 }
0x19d6   :  { %v1932_v59 = vadd.f32 %v5225_v49, %v1931_v52  ;;  %v3462_v1 = vpop.f32.mrb[31].mxu0 }
0x19d8   :  { %vm1935_vm6 = vcmp.gt.f32.partialorder %v1932_v59, 0.0  ;;  %v1936_v53 = vmul.f32 0.01, %v1932_v59 }
0x19da   :  { %v5233_v58 = vsel %vm1935_vm6, %v1932_v59, %v1936_v53 }
0x19db   :  { %v1944_v63 = vmul.f32 %v5231_v55, %v5233_v58 }
0x19dd   :  { %v1945_v4 = vsel %vm723_vm1, %v1944_v63, 0.0 }
0x19de   :  { %1946 = vadd.xlane.f32.xlu1 %v1945_v4 }
0x1a6b   :  { %v1947_v8 = vpop.xlane.xlu1 %1946 }
0x1a6c   :  { %v1954_v11 = vadd.f32 %v5238_v21, %v1947_v8 }
0x1a6e   :  { %v1955_v60 = vmul.f32 0.5, %v1954_v11 }
0x1a70   :  { %4201 = vtanh.f32 %v1955_v60 }
0x1a7a   :  { %v4202_v57 = vpop.eup %4201 }
0x1a7b   :  { %v1957_v61 = vadd.f32 1.0, %v4202_v57 }
0x1a7d   :  { %v1958_v20 = vmul.f32 0.5, %v1957_v61 }
0x1a7f   :  { %v1965_v23 = vmul.f32 %v1964_v15, %v1958_v20  ;;  %v2165_v20 = vstv %s2162_s10 }
0x1a81   :  { %v1966_v24 = vadd.f32 %v1965_v23, %v1962_v19  ;;  %v2860_v19 = vld [vmem:[%s5495_s5 + $0x10] sm:$0xff] }
0x1a83   :  { %1969 = vperm.xlu0 %4151, %v1966_v24   ;;  %v2168_v24 = vstv %s2167_s6 }
0x1b02   :  { %v1970_v25 = vpop.permute.xlu0 %1969 }
0x1b03   :  { %v1972_v26 = vmul.f32 %v5184_v30, %v1970_v25 }
0x1b05   :  { %v1973_v28 = vadd.f32 %v1972_v26, %v5190_v0  ;;  %v2166_v26 = vmul.f32 %v2860_v19, %v2165_v20 }
0x1b07   :  { %vm1974_vm7 = vcmp.gt.f32.partialorder %v1973_v28, 0.0  ;;  %v1975_v29 = vmul.f32 0.01, %v1973_v28 }
0x1b09   :  { %v1976_v33 = vsel %vm1974_vm7, %v1973_v28, %v1975_v29 }
0x1b0a   :  { %3496 = vmatmul.mubr.f32.vlgmr.msra.gmra.mrb[46].mxu1 %v1976_v33 }
0x1b0b   :  { %3994 = vmatpush3.bf16.msra.mxu1 %v5049_v18  ;;  %3565 = vmatprep.mubr.msk.f32.mxu1 %vm4231_vm2, %v4232_v22 }
0x1b0c   :  { %3995 = vmatprep.subr.bf16.mxu1 %v4230_v17 }
0x1b0f   :  { %3997 = vmatpush3.bf16.msra.mxu1 %v5059_v6 }
0x1b10   :  { %3998 = vmatprep.subr.bf16.mxu1 %v4230_v17 }
0x1b13   :  { %4000 = vmatpush3.bf16.msra.mxu1 %v5069_v9 }
0x1b14   :  { %4001 = vmatprep.subr.bf16.mxu1 %v4230_v17 }
0x1b17   :  { %4003 = vmatpush3.bf16.msra.mxu1 %v5079_v54 }
0x1b18   :  { %4004 = vmatprep.subr.bf16.mxu1 %v4230_v17 }
0x1b1b   :  { %4006 = vmatpush3.bf16.msra.mxu1 %v5089_v14 }
0x1b1c   :  { %4007 = vmatprep.subr.bf16.mxu1 %v4230_v17 }
0x1b1f   :  { %4009 = vmatpush3.bf16.msra.mxu1 %v5099_v16 }
0x1b20   :  { %4010 = vmatprep.subr.bf16.mxu1 %v4230_v17 }
0x1b23   :  { %4012 = vmatpush3.bf16.msra.mxu1 %v5163_v44 }
0x1b24   :  { %4013 = vmatprep.subr.bf16.mxu1 %v4230_v17 }
0x1b27   :  { %4015 = vmatpush3.bf16.msra.mxu1 %v5175_v12 }
0x1b28   :  { %4040 = vmatprep.subr.bf16.mxu1 %v4230_v17 }
0x1bdd   :  { %v2043_v51 = vpop.f32.mrb[46].mxu1 }
0x1bde   :  { %v2044_v47 = vadd.f32 %v5225_v49, %v2043_v51  ;;  %v3497_v27 = vpop.f32.mrb[47].mxu1 }
0x1be0   :  { %vm2047_vm8 = vcmp.gt.f32.partialorder %v2044_v47, 0.0  ;;  %v2048_v13 = vmul.f32 0.01, %v2044_v47 }
0x1be2   :  { %v5263_v50 = vsel %vm2047_vm8, %v2044_v47, %v2048_v13 }
0x1be3   :  { %v2050_v48 = vmul.f32 %v5231_v55, %v5263_v50 }
0x1be5   :  { %v2051_v5 = vsel %vm723_vm1, %v2050_v48, 0.0 }
0x1be6   :  { %2052 = vadd.xlane.f32.xlu0 %v2051_v5 }
0x1c73   :  { %v2053_v10 = vpop.xlane.xlu0 %2052 }
0x1c74   :  { %v2054_v31 = vadd.f32 %v5238_v21, %v2053_v10 }
0x1c76   :  { %v2055_v0 = vmul.f32 0.5, %v2054_v31 }
0x1c78   :  { %4203 = vtanh.f32 %v2055_v0 }
0x1c82   :  { %v4204_v32 = vpop.eup %4203 }
0x1c83   :  { %v2057_v36 = vadd.f32 1.0, %v4204_v32 }
0x1c85   :  { %v2058_v39 = vmul.f32 0.5, %v2057_v36 }
0x1c87   :  { %v2067_v42 = vmul.f32 %v2066_v38, %v2058_v39  ;;  %v2862_v39 = vld [vmem:[%s5495_s5 + $0x18] sm:$0xff] }
0x1c89   :  { %v2068_v43 = vadd.f32 %v2067_v42, %v2064_v41  ;;  %v2267_v41 = vstv %s2264_s16 }
0x1c8b   :  { %2071 = vperm.xlu1 %4152, %v2068_v43   ;;  %v2270_v43 = vstv %s2269_s4 }
0x1d0a   :  { %v2072_v3 = vpop.permute.xlu1 %2071 }
0x1d0b   :  { %v2074_v45 = vmul.f32 %v5184_v30, %v2072_v3 }
0x1d0d   :  { %v2075_v52 = vadd.f32 %v2074_v45, %v5194_v40  ;;  %v2268_v45 = vmul.f32 %v2862_v39, %v2267_v41 }
0x1d0f   :  { %v2077_v59 = vmul.f32 0.01, %v2075_v52  ;;  %vm2076_vm9 = vcmp.gt.f32.partialorder %v2075_v52, 0.0 }
0x1d11   :  { %v2078_v1 = vsel %vm2076_vm9, %v2075_v52, %v2077_v59 }
0x1d12   :  { %3531 = vmatmul.mubr.f32.vlgmr.msra.gmra.mrb[32].mxu0 %v2078_v1 }
0x1d13   :  { %4018 = vmatpush3.bf16.msra.mxu0 %v5049_v18  ;;  %3600 = vmatprep.mubr.msk.f32.mxu0 %vm4231_vm2, %v4232_v22 }
0x1d14   :  { %4019 = vmatprep.subr.bf16.mxu0 %v4230_v17 }
0x1d17   :  { %4021 = vmatpush3.bf16.msra.mxu0 %v5059_v6 }
0x1d18   :  { %4022 = vmatprep.subr.bf16.mxu0 %v4230_v17 }
0x1d1b   :  { %4024 = vmatpush3.bf16.msra.mxu0 %v5069_v9 }
0x1d1c   :  { %4025 = vmatprep.subr.bf16.mxu0 %v4230_v17 }
0x1d1f   :  { %4027 = vmatpush3.bf16.msra.mxu0 %v5079_v54 }
0x1d20   :  { %4028 = vmatprep.subr.bf16.mxu0 %v4230_v17 }
0x1d23   :  { %4030 = vmatpush3.bf16.msra.mxu0 %v5089_v14 }
0x1d24   :  { %4031 = vmatprep.subr.bf16.mxu0 %v4230_v17 }
0x1d27   :  { %4033 = vmatpush3.bf16.msra.mxu0 %v5099_v16 }
0x1d28   :  { %4034 = vmatprep.subr.bf16.mxu0 %v4230_v17 }
0x1d2b   :  { %4036 = vmatpush3.bf16.msra.mxu0 %v5163_v44 }
0x1d2c   :  { %4037 = vmatprep.subr.bf16.mxu0 %v4230_v17 }
0x1d2f   :  { %4039 = vmatpush3.bf16.msra.mxu0 %v5175_v12 }
0x1d30   :  { %4064 = vmatprep.subr.bf16.mxu0 %v4230_v17 }
0x1de5   :  { %v2145_v40 = vpop.f32.mrb[32].mxu0 }
0x1de6   :  { %v2146_v53 = vadd.f32 %v5225_v49, %v2145_v40  ;;  %v3532_v63 = vpop.f32.mrb[33].mxu0 }
0x1de8   :  { %vm2149_vm10 = vcmp.gt.f32.partialorder %v2146_v53, 0.0  ;;  %v2150_v4 = vmul.f32 0.01, %v2146_v53 }
0x1dea   :  { %v5293_v8 = vsel %vm2149_vm10, %v2146_v53, %v2150_v4 }
0x1deb   :  { %v2152_v11 = vmul.f32 %v5231_v55, %v5293_v8 }
0x1ded   :  { %v2153_v60 = vsel %vm723_vm1, %v2152_v11, 0.0 }
0x1dee   :  { %2154 = vadd.xlane.f32.xlu0 %v2153_v60 }
0x1e7b   :  { %v2155_v57 = vpop.xlane.xlu0 %2154 }
0x1e7c   :  { %v2156_v62 = vadd.f32 %v5238_v21, %v2155_v57 }
0x1e7e   :  { %v2157_v61 = vmul.f32 0.5, %v2156_v62 }
0x1e80   :  { %4205 = vtanh.f32 %v2157_v61 }
0x1e8a   :  { %v4206_v15 = vpop.eup %4205 }
0x1e8b   :  { %v2159_v23 = vadd.f32 1.0, %v4206_v15 }
0x1e8d   :  { %v2160_v25 = vmul.f32 0.5, %v2159_v23 }
0x1e8f   :  { %v2169_v28 = vmul.f32 %v2168_v24, %v2160_v25  ;;  %v2864_v25 = vld [vmem:[%s5495_s5 + $0x20] sm:$0xff] }
0x1e91   :  { %v2170_v29 = vadd.f32 %v2169_v28, %v2166_v26  ;;  %v2369_v26 = vstv %s2366_s8 }
0x1e93   :  { %2173 = vperm.xlu0 %4151, %v2170_v29   ;;  %v2372_v29 = vstv %s2371_s24 }
0x1f12   :  { %v2174_v33 = vpop.permute.xlu0 %2173 }
0x1f13   :  { %v2176_v51 = vmul.f32 %v5184_v30, %v2174_v33 }
0x1f15   :  { %v2177_v47 = vadd.f32 %v2176_v51, %v5192_v37  ;;  %v2370_v51 = vmul.f32 %v2864_v25, %v2369_v26 }
0x1f17   :  { %v2179_v27 = vmul.f32 0.01, %v2177_v47  ;;  %vm2178_vm11 = vcmp.gt.f32.partialorder %v2177_v47, 0.0 }
0x1f19   :  { %v2180_v13 = vsel %vm2178_vm11, %v2177_v47, %v2179_v27 }
0x1f1a   :  { %3566 = vmatmul.mubr.f32.vlgmr.msra.gmra.mrb[48].mxu1 %v2180_v13 }
0x1f1b   :  { %4042 = vmatpush3.bf16.msra.mxu1 %v5049_v18  ;;  %3635 = vmatprep.mubr.msk.f32.mxu1 %vm4231_vm2, %v4232_v22 }
0x1f1c   :  { %4043 = vmatprep.subr.bf16.mxu1 %v4230_v17 }
0x1f1f   :  { %4045 = vmatpush3.bf16.msra.mxu1 %v5059_v6 }
0x1f20   :  { %4046 = vmatprep.subr.bf16.mxu1 %v4230_v17 }
0x1f23   :  { %4048 = vmatpush3.bf16.msra.mxu1 %v5069_v9 }
0x1f24   :  { %4049 = vmatprep.subr.bf16.mxu1 %v4230_v17 }
0x1f27   :  { %4051 = vmatpush3.bf16.msra.mxu1 %v5079_v54 }
0x1f28   :  { %4052 = vmatprep.subr.bf16.mxu1 %v4230_v17 }
0x1f2b   :  { %4054 = vmatpush3.bf16.msra.mxu1 %v5089_v14 }
0x1f2c   :  { %4055 = vmatprep.subr.bf16.mxu1 %v4230_v17 }
0x1f2f   :  { %4057 = vmatpush3.bf16.msra.mxu1 %v5099_v16 }
0x1f30   :  { %4058 = vmatprep.subr.bf16.mxu1 %v4230_v17 }
0x1f33   :  { %4060 = vmatpush3.bf16.msra.mxu1 %v5163_v44 }
0x1f34   :  { %4061 = vmatprep.subr.bf16.mxu1 %v4230_v17 }
0x1f37   :  { %4063 = vmatpush3.bf16.msra.mxu1 %v5175_v12 }
0x1f38   :  { %4088 = vmatprep.subr.bf16.mxu1 %v4230_v17 }
0x1fed   :  { %v2247_v37 = vpop.f32.mrb[48].mxu1 }
0x1fee   :  { %v2248_v48 = vadd.f32 %v5225_v49, %v2247_v37  ;;  %v3567_v5 = vpop.f32.mrb[49].mxu1 }
0x1ff0   :  { %vm2251_vm12 = vcmp.gt.f32.partialorder %v2248_v48, 0.0  ;;  %v2252_v10 = vmul.f32 0.01, %v2248_v48 }
0x1ff2   :  { %v5323_v31 = vsel %vm2251_vm12, %v2248_v48, %v2252_v10 }
0x1ff3   :  { %v2254_v0 = vmul.f32 %v5231_v55, %v5323_v31 }
0x1ff5   :  { %v2255_v32 = vsel %vm723_vm1, %v2254_v0, 0.0 }
0x1ff6   :  { %2256 = vadd.xlane.f32.xlu1 %v2255_v32  ;;  %v2471_v32 = vstv %s2468_s12 }
0x2083   :  { %v2257_v34 = vpop.xlane.xlu1 %2256 }
0x2084   :  { %v2258_v35 = vadd.f32 %v5238_v21, %v2257_v34 }
0x2086   :  { %v2259_v36 = vmul.f32 0.5, %v2258_v35  ;;  %v2474_v35 = vstv %s2473_s29 }
0x2088   :  { %4207 = vtanh.f32 %v2259_v36 }
0x2092   :  { %v4208_v38 = vpop.eup %4207 }
0x2093   :  { %v2261_v42 = vadd.f32 1.0, %v4208_v38 }
0x2095   :  { %v2262_v3 = vmul.f32 0.5, %v2261_v42  ;;  %v2662_v42 = vld [vmem:[%s5480_s17] sm:$0xff] }
0x2097   :  { %v2271_v52 = vmul.f32 %v2270_v43, %v2262_v3  ;;  %v2663_v43 = vld [vmem:[%s5480_s17 + $0x8] sm:$0xff] }
0x2098   :  { %v4112_v3 = vpack.c.bf16 %v2663_v43, %v2662_v42 }
0x2099   :  { %v2272_v59 = vadd.f32 %v2271_v52, %v2268_v45 }
0x209b   :  { %2275 = vperm.xlu0 %4151, %v2272_v59  }
0x211a   :  { %v2276_v1 = vpop.permute.xlu0 %2275 }
0x211b   :  { %v2278_v40 = vmul.f32 %v5184_v30, %v2276_v1  ;;  %v2664_v1 = vld [vmem:[%s5480_s17 + $0x10] sm:$0xff] }
0x211d   :  { %v2279_v53 = vadd.f32 %v2278_v40, %v5198_v2  ;;  %v2665_v40 = vld [vmem:[%s5480_s17 + $0x18] sm:$0xff] }
0x211f   :  { %v2281_v63 = vmul.f32 0.01, %v2279_v53  ;;  %vm2280_vm13 = vcmp.gt.f32.partialorder %v2279_v53, 0.0 }
0x2121   :  { %v2282_v4 = vsel %vm2280_vm13, %v2279_v53, %v2281_v63  ;;  %v4116_v63 = vpack.c.bf16 %v2665_v40, %v2664_v1 }
0x2122   :  { %3601 = vmatmul.mubr.f32.vlgmr.msra.gmra.mrb[34].mxu0 %v2282_v4 }
0x2123   :  { %4066 = vmatpush3.bf16.msra.mxu0 %v5049_v18  ;;  %3670 = vmatprep.mubr.msk.f32.mxu0 %vm4231_vm2, %v4232_v22 }
0x2124   :  { %4067 = vmatprep.subr.bf16.mxu0 %v4230_v17 }
0x2127   :  { %4069 = vmatpush3.bf16.msra.mxu0 %v5059_v6 }
0x2128   :  { %4070 = vmatprep.subr.bf16.mxu0 %v4230_v17 }
0x212b   :  { %4072 = vmatpush3.bf16.msra.mxu0 %v5069_v9 }
0x212c   :  { %4073 = vmatprep.subr.bf16.mxu0 %v4230_v17 }
0x212f   :  { %4075 = vmatpush3.bf16.msra.mxu0 %v5079_v54 }
0x2130   :  { %4076 = vmatprep.subr.bf16.mxu0 %v4230_v17 }
0x2133   :  { %4078 = vmatpush3.bf16.msra.mxu0 %v5089_v14 }
0x2134   :  { %4079 = vmatprep.subr.bf16.mxu0 %v4230_v17 }
0x2137   :  { %4081 = vmatpush3.bf16.msra.mxu0 %v5099_v16 }
0x2138   :  { %4082 = vmatprep.subr.bf16.mxu0 %v4230_v17 }
0x213b   :  { %4084 = vmatpush3.bf16.msra.mxu0 %v5163_v44 }
0x213c   :  { %4085 = vmatprep.subr.bf16.mxu0 %v4230_v17 }
0x213f   :  { %4087 = vmatpush3.bf16.msra.mxu0 %v5175_v12 }
0x2140   :  { %4113 = vmatprep.subr.bf16.mxu0 %v4112_v3 }
0x21f5   :  { %v2349_v2 = vpop.f32.mrb[34].mxu0 }
0x21f6   :  { %v2350_v11 = vadd.f32 %v5225_v49, %v2349_v2  ;;  %v3602_v60 = vpop.f32.mrb[35].mxu0  ;;  %v2666_v2 = vld [vmem:[%s5480_s17 + $0x20] sm:$0xff] }
0x21f7   :  { %v2668_v60 = vld [vmem:[%s5480_s17 + $0x30] sm:$0xff] }
0x21f8   :  { %vm2353_vm14 = vcmp.gt.f32.partialorder %v2350_v11, 0.0  ;;  %v2354_v57 = vmul.f32 0.01, %v2350_v11 }
0x21fa   :  { %v5352_v62 = vsel %vm2353_vm14, %v2350_v11, %v2354_v57  ;;  %v2669_v57 = vld [vmem:[%s5480_s17 + $0x38] sm:$0xff] }
0x21fb   :  { %v2356_v61 = vmul.f32 %v5231_v55, %v5352_v62 }
0x21fd   :  { %v2357_v15 = vsel %vm723_vm1, %v2356_v61, 0.0  ;;  %v4124_v61 = vpack.c.bf16 %v2669_v57, %v2668_v60 }
0x21fe   :  { %2358 = vadd.xlane.f32.xlu0 %v2357_v15 }
0x228b   :  { %v2359_v19 = vpop.xlane.xlu0 %2358 }
0x228c   :  { %v2360_v20 = vadd.f32 %v5238_v21, %v2359_v19 }
0x228e   :  { %v2361_v23 = vmul.f32 0.5, %v2360_v20 }
0x2290   :  { %4209 = vtanh.f32 %v2361_v23 }
0x229a   :  { %v4210_v24 = vpop.eup %4209 }
0x229b   :  { %v2363_v28 = vadd.f32 1.0, %v4210_v24 }
0x229d   :  { %v2364_v33 = vmul.f32 0.5, %v2363_v28 }
0x229f   :  { %v2373_v47 = vmul.f32 %v2372_v29, %v2364_v33 }
0x22a1   :  { %v2374_v27 = vadd.f32 %v2373_v47, %v2370_v51 }
0x22a3   :  { %2377 = vperm.xlu1 %4152, %v2374_v27  }
0x2322   :  { %v2378_v13 = vpop.permute.xlu1 %2377 }
0x2323   :  { %v2380_v37 = vmul.f32 %v5184_v30, %v2378_v13 }
0x2325   :  { %v2381_v48 = vadd.f32 %v2380_v37, %v5196_v56 }
0x2327   :  { %v2383_v5 = vmul.f32 0.01, %v2381_v48  ;;  %vm2382_vm15 = vcmp.gt.f32.partialorder %v2381_v48, 0.0 }
0x2329   :  { %v2384_v10 = vsel %vm2382_vm15, %v2381_v48, %v2383_v5 }
0x232a   :  { %3636 = vmatmul.mubr.f32.vlgmr.msra.gmra.mrb[50].mxu1 %v2384_v10 }
0x232b   :  { %4090 = vmatpush3.bf16.msra.mxu1 %v5049_v18  ;;  %3705 = vmatprep.mubr.msk.f32.mxu1 %vm4231_vm2, %v4232_v22 }
0x232c   :  { %4091 = vmatprep.subr.bf16.mxu1 %v4230_v17 }
0x232f   :  { %4093 = vmatpush3.bf16.msra.mxu1 %v5059_v6 }
0x2330   :  { %4094 = vmatprep.subr.bf16.mxu1 %v4230_v17 }
0x2333   :  { %4096 = vmatpush3.bf16.msra.mxu1 %v5069_v9 }
0x2334   :  { %4097 = vmatprep.subr.bf16.mxu1 %v4230_v17 }
0x2337   :  { %4099 = vmatpush3.bf16.msra.mxu1 %v5079_v54 }
0x2338   :  { %4100 = vmatprep.subr.bf16.mxu1 %v4230_v17 }
0x233b   :  { %4102 = vmatpush3.bf16.msra.mxu1 %v5089_v14 }
0x233c   :  { %4103 = vmatprep.subr.bf16.mxu1 %v4230_v17 }
0x233f   :  { %4105 = vmatpush3.bf16.msra.mxu1 %v5099_v16 }
0x2340   :  { %4106 = vmatprep.subr.bf16.mxu1 %v4230_v17 }
0x2343   :  { %4108 = vmatpush3.bf16.msra.mxu1 %v5163_v44 }
0x2344   :  { %4109 = vmatprep.subr.bf16.mxu1 %v4230_v17 }
0x2347   :  { %4111 = vmatpush3.bf16.msra.mxu1 %v5175_v12  ;;  %v2866_v12 = vld [vmem:[%s5495_s5 + $0x28] sm:$0xff] }
0x2348   :  { %v2472_v38 = vmul.f32 %v2866_v12, %v2471_v32 }
0x23fd   :  { %v2451_v22 = vpop.f32.mrb[50].mxu1 }
0x23fe   :  { %v2452_v18 = vadd.f32 %v5225_v49, %v2451_v22  ;;  %v3637_v6 = vpop.f32.mrb[51].mxu1  ;;  %v2868_v22 = vld [vmem:[%s5495_s5 + $0x30] sm:$0xff] }
0x2400   :  { %vm2455_vm0 = vcmp.gt.f32.partialorder %v2452_v18, 0.0  ;;  %v2456_v9 = vmul.f32 0.01, %v2452_v18 }
0x2402   :  { %v2457_v54 = vsel %vm2455_vm0, %v2452_v18, %v2456_v9  ;;  %v2573_v18 = vstv %s2570_s15  ;;  %v2576_v9 = vstv %s2575_s30 }
0x2403   :  { %v2458_v14 = vmul.f32 %v5231_v55, %v2457_v54 }
0x2405   :  { %v2459_v56 = vsel %vm723_vm1, %v2458_v14, 0.0  ;;  %v2574_v14 = vmul.f32 %v2868_v22, %v2573_v18 }
0x2406   :  { %2460 = vadd.xlane.f32.xlu0 %v2459_v56 }
0x2493   :  { %v2461_v16 = vpop.xlane.xlu0 %2460 }
0x2494   :  { %v2462_v0 = vadd.f32 %v5238_v21, %v2461_v16 }
0x2496   :  { %v2463_v44 = vmul.f32 0.5, %v2462_v0 }
0x2498   :  { %4211 = vtanh.f32 %v2463_v44 }
0x24a2   :  { %v4212_v17 = vpop.eup %4211 }
0x24a3   :  { %v2465_v34 = vadd.f32 1.0, %v4212_v17 }
0x24a5   :  { %v2466_v36 = vmul.f32 0.5, %v2465_v34 }
0x24a7   :  { %v2475_v39 = vmul.f32 %v2474_v35, %v2466_v36 }
0x24a9   :  { %v2476_v41 = vadd.f32 %v2475_v39, %v2472_v38 }
0x24ab   :  { %2479 = vperm.xlu1 %4152, %v2476_v41  }
0x252a   :  { %v2480_v45 = vpop.permute.xlu1 %2479 }
0x252b   :  { %v2482_v52 = vmul.f32 %v5184_v30, %v2480_v45 }
0x252d   :  { %v2483_v59 = vadd.f32 %v2482_v52, %v5206_v46  ;;  %v2667_v46 = vld [vmem:[%s5480_s17 + $0x28] sm:$0xff] }
0x252e   :  { %v4120_v11 = vpack.c.bf16 %v2667_v46, %v2666_v2 }
0x252f   :  { %v2485_v53 = vmul.f32 0.01, %v2483_v59  ;;  %vm2484_vm2 = vcmp.gt.f32.partialorder %v2483_v59, 0.0 }
0x2531   :  { %v2486_v4 = vsel %vm2484_vm2, %v2483_v59, %v2485_v53 }
0x2532   :  { %3671 = vmatmul.mubr.f32.vlgmr.msra.gmra.mrb[36].mxu0 %v2486_v4 }
0x2533   :  { %4115 = vmatpush3.bf16.msra.mxu0 %v4112_v3  ;;  %3724 = vmatprep.mubr.msk.f32.mxu0 %vm723_vm1, %v5233_v58 }
0x2534   :  { %4117 = vmatprep.subr.bf16.mxu0 %v4116_v63 }
0x2537   :  { %4119 = vmatpush3.bf16.msra.mxu0 %v4116_v63 }
0x2538   :  { %4121 = vmatprep.subr.bf16.mxu0 %v4120_v11 }
0x253b   :  { %4123 = vmatpush3.bf16.msra.mxu0 %v4120_v11 }
0x253c   :  { %4125 = vmatprep.subr.bf16.mxu0 %v4124_v61 }
0x253f   :  { %4127 = vmatpush3.bf16.msra.mxu0 %v4124_v61 }
0x2542   :  { %3725 = vmatmul.mubr.msk.f32.vlgmr.msra.gmra.mrb[38].mxu0 %vm723_vm1, %v5263_v50 }
0x2543   :  { %3727 = vmatprep.mubr.msk.f32.mxu0 %vm723_vm1, %v5293_v8 }
0x2546   :  { %3728 = vmatmul.mubr.msk.f32.gmra.mrb[40].mxu0 %vm723_vm1, %v5323_v31  ;;  %v2869_v31 = vld [vmem:[%s5481_s18] ss:$0 sm:$0xff] }
0x2547   :  { %3730 = vmatprep.mubr.msk.f32.mxu0 %vm723_vm1, %v5352_v62 }
0x254a   :  { %3731 = vmatmul.mubr.msk.f32.gmra.mrb[42].mxu0 %vm723_vm1, %v2457_v54 }
0x2605   :  { %v2553_v58 = vpop.f32.mrb[36].mxu0 }
0x2606   :  { %v2554_v15 = vadd.f32 %v5225_v49, %v2553_v58  ;;  %v3672_v19 = vpop.f32.mrb[37].mxu0 }
0x2608   :  { %vm2557_vm3 = vcmp.gt.f32.partialorder %v2554_v15, 0.0  ;;  %v2558_v20 = vmul.f32 0.01, %v2554_v15 }
0x260a   :  { %v2559_v23 = vsel %vm2557_vm3, %v2554_v15, %v2558_v20 }
0x260b   :  { %3733 = vmatprep.mubr.msk.f32.mxu0 %vm723_vm1, %v2559_v23  ;;  %v2560_v50 = vmul.f32 %v5231_v55, %v2559_v23 }
0x260d   :  { %v2561_v8 = vsel %vm723_vm1, %v2560_v50, 0.0 }
0x260e   :  { %2562 = vadd.xlane.f32.xlu0 %v2561_v8 }
0x2615   :  { %v3726_v62 = vpop.f32.mrb[38].mxu0 }
0x2616   :  { %v2773_v24 = vadd.f32 %v3726_v62, %v2869_v31  ;;  %v2767_v25 = vpop.f32.mrb[39].mxu0 }
0x2617   :  { %v2768_v26 = vadd.f32 %v2869_v31, %v2767_v25 }
0x2618   :  { %2807 = vst [vmem:[%s5482_s19 + $0x8] sm:$0xff] %v2773_v24 }
0x2619   :  { %2806 = vst [vmem:[%s5482_s19] sm:$0xff] %v2768_v26  ;;  %v3729_v55 = vpop.f32.mrb[40].mxu0 }
0x261a   :  { %v2783_v28 = vadd.f32 %v3729_v55, %v2869_v31  ;;  %v2777_v29 = vpop.f32.mrb[41].mxu0 }
0x261b   :  { %v2778_v33 = vadd.f32 %v2869_v31, %v2777_v29 }
0x261c   :  { %2809 = vst [vmem:[%s5482_s19 + $0x18] sm:$0xff] %v2783_v28 }
0x261d   :  { %2808 = vst [vmem:[%s5482_s19 + $0x10] sm:$0xff] %v2778_v33  ;;  %v3732_v51 = vpop.f32.mrb[42].mxu0 }
0x261e   :  { %v2793_v47 = vadd.f32 %v3732_v51, %v2869_v31  ;;  %v2787_v27 = vpop.f32.mrb[43].mxu0 }
0x261f   :  { %v2788_v13 = vadd.f32 %v2869_v31, %v2787_v27 }
0x2620   :  { %2811 = vst [vmem:[%s5482_s19 + $0x28] sm:$0xff] %v2793_v47 }
0x2621   :  { %2810 = vst [vmem:[%s5482_s19 + $0x20] sm:$0xff] %v2788_v13 }
0x269b   :  { %v2563_v37 = vpop.xlane.xlu0 %2562 }
0x269c   :  { %v2564_v48 = vadd.f32 %v5238_v21, %v2563_v37 }
0x269e   :  { %v2565_v5 = vmul.f32 0.5, %v2564_v48 }
0x26a0   :  { %4213 = vtanh.f32 %v2565_v5 }
0x26aa   :  { %v4214_v10 = vpop.eup %4213 }
0x26ab   :  { %v2567_v6 = vadd.f32 1.0, %v4214_v10 }
0x26ad   :  { %v2568_v54 = vmul.f32 0.5, %v2567_v6 }
0x26af   :  { %v2577_v56 = vmul.f32 %v2576_v9, %v2568_v54 }
0x26b1   :  { %v2578_v16 = vadd.f32 %v2577_v56, %v2574_v14 }
0x26b3   :  { %2581 = vperm.xlu1 %4152, %v2578_v16  }
0x2732   :  { %v2582_v0 = vpop.permute.xlu1 %2581 }
0x2733   :  { %v2584_v21 = vmul.f32 %v5184_v30, %v2582_v0 }
0x2735   :  { %v2585_v44 = vadd.f32 %v2584_v21, %v5204_v7 }
0x2737   :  { %v2587_v17 = vmul.f32 0.01, %v2585_v44  ;;  %vm2586_vm4 = vcmp.gt.f32.partialorder %v2585_v44, 0.0 }
0x2739   :  { %v2588_v12 = vsel %vm2586_vm4, %v2585_v44, %v2587_v17 }
0x273a   :  { %3706 = vmatmul.mubr.f32.vlgmr.msra.gmra.mrb[52].mxu1 %v2588_v12 }
0x280d   :  { %v2655_v32 = vpop.f32.mrb[52].mxu1 }
0x280e   :  { %v2656_v34 = vadd.f32 %v5225_v49, %v2655_v32  ;;  %v3707_v35 = vpop.f32.mrb[53].mxu1 }
0x2810   :  { %vm2659_vm5 = vcmp.gt.f32.partialorder %v2656_v34, 0.0  ;;  %v2660_v36 = vmul.f32 0.01, %v2656_v34 }
0x2812   :  { %v2661_v38 = vsel %vm2659_vm5, %v2656_v34, %v2660_v36 }
0x2813   :  { %3734 = vmatmul.mubr.msk.f32.gmra.mrb[44].mxu0 %vm723_vm1, %v2661_v38 }
0x28e6   :  { %v3735_v39 = vpop.f32.mrb[44].mxu0 }
0x28e7   :  { %v2803_v41 = vadd.f32 %v3735_v39, %v2869_v31  ;;  %v2797_v42 = vpop.f32.mrb[45].mxu0 }
0x28e8   :  { %v2798_v43 = vadd.f32 %v2869_v31, %v2797_v42 }
0x28e9   :  { %2813 = vst [vmem:[%s5482_s19 + $0x38] sm:$0xff] %v2803_v41 }
0x28ea   :  { %2812 = vst [vmem:[%s5482_s19 + $0x30] sm:$0xff] %v2798_v43 }
0x28eb   :  { %2818 = vsyncpa [#allocation4], 1 }

</bundles_post_ra>
